<compile_context>
chip_gen: v6e
topology: v6e:2x2x1
jax: 0.10.0
libtpu: 0.0.40
codegen_flags: <defaults>
</compile_context>

<pallas_src>
import jax
import jax.numpy as jnp
from jax.experimental import pallas as pl
from jax.experimental.pallas import tpu as pltpu

# ----------------------------------------------------------------------------
# Hyper-parameters (small, consistent with the module's forward)
# ----------------------------------------------------------------------------
BERT_DIM = 32          # bert feature dim
GST_DIM = 16           # gst embedding dim
PRENET_SIZES = (32, 16)
CBHG_DIM = 16          # == last prenet size == GRU hidden size
CBHG_K = 4
PROJECTIONS = (32, 16)  # last projection == CBHG_DIM -> no pre-highway proj
NUM_HIGHWAYS = 4
FEAT_DIM = 2 * CBHG_DIM  # BiGRU output of each LocalEncoder
ATTN_DIM = 16
NUM_ENC = 4              # local_1, local_2, text_1, text_2 grouped together
ENC_IN_DIM = BERT_DIM + 1  # text inputs are zero-padded up to this width

_PARALLEL = pltpu.CompilerParams(dimension_semantics=("parallel",))


# ----------------------------------------------------------------------------
# Pallas kernels
# ----------------------------------------------------------------------------


def _prenet_kernel(x_ref, w1_ref, b1_ref, w2_ref, b2_ref, o_ref):
    """Two Linear+ReLU layers chained inside one kernel (per encoder group)."""
    h = jnp.dot(x_ref[0], w1_ref[0], preferred_element_type=jnp.float32) + b1_ref[0]
    h = jnp.maximum(h, 0.0)
    y = jnp.dot(h, w2_ref[0], preferred_element_type=jnp.float32) + b2_ref[0]
    o_ref[0] = jnp.maximum(y, 0.0)
    # TODO(synk): Prenet dropout(p=0.5) omitted (deterministic / eval mode).


def prenet_pallas(x, w1, b1, w2, b2):
    G, M, K0 = x.shape
    K1 = w1.shape[2]
    N = w2.shape[2]
    return pl.pallas_call(
        _prenet_kernel,
        out_shape=jax.ShapeDtypeStruct((G, M, N), jnp.float32),
        grid=(G,),
        in_specs=[
            pl.BlockSpec((1, M, K0), lambda g: (g, 0, 0)),
            pl.BlockSpec((1, K0, K1), lambda g: (g, 0, 0)),
            pl.BlockSpec((1, 1, K1), lambda g: (g, 0, 0)),
            pl.BlockSpec((1, K1, N), lambda g: (g, 0, 0)),
            pl.BlockSpec((1, 1, N), lambda g: (g, 0, 0)),
        ],
        out_specs=pl.BlockSpec((1, M, N), lambda g: (g, 0, 0)),
        compiler_params=_PARALLEL,
    )(x, w1, b1, w2, b2)


def _make_gmm_kernel(act, has_residual):
    """Grouped matmul + bias, with optional fused ReLU / residual add."""
    def kernel(*refs):
        if has_residual:
            x_ref, w_ref, b_ref, r_ref, o_ref = refs
        else:
            x_ref, w_ref, b_ref, o_ref = refs
        acc = jnp.dot(x_ref[0], w_ref[0],
                      preferred_element_type=jnp.float32) + b_ref[0]
        if has_residual:
            acc = acc + r_ref[0]
        if act == "relu":
            acc = jnp.maximum(acc, 0.0)
        o_ref[0] = acc
    return kernel


def grouped_matmul(x, w, b, act=None, residual=None):
    """(G, M, K) @ (G, K, N) + (G, 1, N) [-> +residual] [-> ReLU]."""
    G, M, K = x.shape
    N = w.shape[2]
    ins = [x, w, b]
    in_specs = [
        pl.BlockSpec((1, M, K), lambda g: (g, 0, 0)),
        pl.BlockSpec((1, K, N), lambda g: (g, 0, 0)),
        pl.BlockSpec((1, 1, N), lambda g: (g, 0, 0)),
    ]
    if residual is not None:
        ins.append(residual)
        in_specs.append(pl.BlockSpec((1, M, N), lambda g: (g, 0, 0)))
    return pl.pallas_call(
        _make_gmm_kernel(act, residual is not None),
        out_shape=jax.ShapeDtypeStruct((G, M, N), jnp.float32),
        grid=(G,),
        in_specs=in_specs,
        out_specs=pl.BlockSpec((1, M, N), lambda g: (g, 0, 0)),
        compiler_params=_PARALLEL,
    )(*ins)


def _highway_gruproj_kernel(y_ref, hww_ref, hwb_ref, wi_ref, bi_ref, o_ref):
    """4 highway layers (merged Wh|Wt) + BiGRU input projection, one kernel."""
    y = y_ref[0]                        # (M, D)
    d = y.shape[1]
    n_layers = hww_ref.shape[1]
    for layer in range(n_layers):
        w = hww_ref[0, layer]           # (D, 2D) = [Wh | Wt]
        b = hwb_ref[0, layer]           # (1, 2D)
        hz = jnp.dot(y, w, preferred_element_type=jnp.float32) + b
        h = jnp.maximum(hz[:, :d], 0.0)
        t = 1.0 / (1.0 + jnp.exp(-hz[:, d:]))
        y = h * t + y * (1.0 - t)
    # Fused GRU input projection: (M, D) @ (D, 6H) -> x-part of both directions
    o_ref[0] = jnp.dot(y, wi_ref[0], preferred_element_type=jnp.float32) + bi_ref[0]


def highway_gruproj_pallas(y, hw_w, hw_b, gru_wi, gru_bi):
    G, M, D = y.shape
    L = hw_w.shape[1]
    N = gru_wi.shape[2]
    return pl.pallas_call(
        _highway_gruproj_kernel,
        out_shape=jax.ShapeDtypeStruct((G, M, N), jnp.float32),
        grid=(G,),
        in_specs=[
            pl.BlockSpec((1, M, D), lambda g: (g, 0, 0)),
            pl.BlockSpec((1, L, D, 2 * D), lambda g: (g, 0, 0, 0)),
            pl.BlockSpec((1, L, 1, 2 * D), lambda g: (g, 0, 0, 0)),
            pl.BlockSpec((1, D, N), lambda g: (g, 0, 0)),
            pl.BlockSpec((1, 1, N), lambda g: (g, 0, 0)),
        ],
        out_specs=pl.BlockSpec((1, M, N), lambda g: (g, 0, 0)),
        compiler_params=_PARALLEL,
    )(y, hw_w, hw_b, gru_wi, gru_bi)


def _bigru_kernel(xp_ref, wh_ref, bh_ref, o_ref):
    """Bidirectional GRU recurrence.

    xp_ref: (1, T, B, 6H) precomputed x@Wi+bi, layout [rzn_fwd | rzn_bwd].
    wh_ref: (1, 2H, 6H) block-diagonal [Wh_fwd 0; 0 Wh_bwd] kept in VMEM.
    o_ref:  (1, T, B, 2H) -> [fwd | bwd] outputs in original time order.
    """
    t_len = xp_ref.shape[1]
    b_sz = xp_ref.shape[2]
    h6 = xp_ref.shape[3]
    h3 = h6 // 2
    hh = h3 // 3
    wh = wh_ref[0]
    bh = bh_ref[0]
    h = jnp.zeros((b_sz, 2 * hh), jnp.float32)   # [h_fwd | h_bwd]

    def gates(xd, hd, hprev):
        r = 1.0 / (1.0 + jnp.exp(-(xd[:, 0:hh] + hd[:, 0:hh])))
        z = 1.0 / (1.0 + jnp.exp(-(xd[:, hh:2 * hh] + hd[:, hh:2 * hh])))
        n = jnp.tanh(xd[:, 2 * hh:] + r * hd[:, 2 * hh:])
        return (1.0 - z) * n + z * hprev

    for t in range(t_len):
        xf = xp_ref[0, t, :, 0:h3]                  # fwd x-gates at time t
        xb = xp_ref[0, t_len - 1 - t, :, h3:h6]     # bwd x-gates at time T-1-t
        hp = jnp.dot(h, wh, preferred_element_type=jnp.float32) + bh
        hf = gates(xf, hp[:, 0:h3], h[:, 0:hh])
        hb = gates(xb, hp[:, h3:h6], h[:, hh:2 * hh])
        h = jnp.concatenate([hf, hb], axis=-1)
        o_ref[0, t, :, 0:hh] = hf
        o_ref[0, t_len - 1 - t, :, hh:2 * hh] = hb
    # TODO(synk): pack_padded_sequence semantics (stopping the backward pass at
    # each sequence length) are not reproduced; the GRU runs over padding.


def bigru_pallas(xp_tbf, gru_wh, gru_bh):
    G, T, B, H6 = xp_tbf.shape
    H2 = gru_wh.shape[1]
    return pl.pallas_call(
        _bigru_kernel,
        out_shape=jax.ShapeDtypeStruct((G, T, B, H2), jnp.float32),
        grid=(G,),
        in_specs=[
            pl.BlockSpec((1, T, B, H6), lambda g: (g, 0, 0, 0)),
            pl.BlockSpec((1, H2, H6), lambda g: (g, 0, 0)),
            pl.BlockSpec((1, 1, H6), lambda g: (g, 0, 0)),
        ],
        out_specs=pl.BlockSpec((1, T, B, H2), lambda g: (g, 0, 0, 0)),
        compiler_params=_PARALLEL,
    )(xp_tbf, gru_wh, gru_bh)


def _attention_lst_kernel(ltf1_ref, ltf2_ref, lf1_ref, lf2_ref, m1_ref, m2_ref,
                          wq_ref, wk_ref, w1a_ref, w1b_ref, b1_ref,
                          w2a_ref, w2b_ref, b2_ref, p1_ref, p2_ref):
    """Bidirectional masked cross-attention with the LST heads fused in."""
    ltf1 = ltf1_ref[0]      # (T1p, F)
    ltf2 = ltf2_ref[0]      # (T2p, F)
    lf1 = lf1_ref[0]        # (T1p, F)
    lf2 = lf2_ref[0]        # (T2p, F)

    q = jnp.dot(ltf1, wq_ref[...], preferred_element_type=jnp.float32)  # (T1p, A)
    k = jnp.dot(ltf2, wk_ref[...], preferred_element_type=jnp.float32)  # (T2p, A)
    s = jax.lax.dot_general(q, k, (((1,), (1,)), ((), ())),
                            preferred_element_type=jnp.float32)         # (T1p, T2p)

    # softmax over seq-2 -> context of seq-2 values at seq-1 slots
    s2 = s + m2_ref[0]
    s2 = s2 - jnp.max(s2, axis=-1, keepdims=True)
    e2 = jnp.exp(s2)
    a2 = e2 / jnp.sum(e2, axis=-1, keepdims=True)
    o21 = jnp.dot(a2, lf2, preferred_element_type=jnp.float32)          # (T1p, F)

    # softmax over seq-1 -> context of seq-1 values at seq-2 slots
    s1 = s + m1_ref[0]
    s1 = s1 - jnp.max(s1, axis=0, keepdims=True)
    e1 = jnp.exp(s1)
    a1 = e1 / jnp.sum(e1, axis=0, keepdims=True)
    o12 = jax.lax.dot_general(a1, lf1, (((0,), (0,)), ((), ())),
                              preferred_element_type=jnp.float32)       # (T2p, F)

    # Fused lst_linear heads: concat([ctx, ltf]) @ W + b == ctx@Wa + ltf@Wb + b
    p1_ref[0] = (jnp.dot(o21, w1a_ref[...], preferred_element_type=jnp.float32)
                 + jnp.dot(ltf1, w1b_ref[...], preferred_element_type=jnp.float32)
                 + b1_ref[...])
    p2_ref[0] = (jnp.dot(o12, w2a_ref[...], preferred_element_type=jnp.float32)
                 + jnp.dot(ltf2, w2b_ref[...], preferred_element_type=jnp.float32)
                 + b2_ref[...])


def attention_lst_pallas(ltf1, ltf2, lf1, lf2, bias1, bias2,
                         wq, wk, w1a, w1b, b1, w2a, w2b, b2):
    B, T1p, F = ltf1.shape
    T2p = ltf2.shape[1]
    A = wq.shape[1]
    return pl.pallas_call(
        _attention_lst_kernel,
        out_shape=(jax.ShapeDtypeStruct((B, T1p, 1), jnp.float32),
                   jax.ShapeDtypeStruct((B, T2p, 1), jnp.float32)),
        grid=(B,),
        in_specs=[
            pl.BlockSpec((1, T1p, F), lambda b: (b, 0, 0)),
            pl.BlockSpec((1, T2p, F), lambda b: (b, 0, 0)),
            pl.BlockSpec((1, T1p, F), lambda b: (b, 0, 0)),
            pl.BlockSpec((1, T2p, F), lambda b: (b, 0, 0)),
            pl.BlockSpec((1, T1p, 1), lambda b: (b, 0, 0)),
            pl.BlockSpec((1, 1, T2p), lambda b: (b, 0, 0)),
            pl.BlockSpec((F, A), lambda b: (0, 0)),
            pl.BlockSpec((F, A), lambda b: (0, 0)),
            pl.BlockSpec((F, 1), lambda b: (0, 0)),
            pl.BlockSpec((F, 1), lambda b: (0, 0)),
            pl.BlockSpec((1, 1), lambda b: (0, 0)),
            pl.BlockSpec((F, 1), lambda b: (0, 0)),
            pl.BlockSpec((F, 1), lambda b: (0, 0)),
            pl.BlockSpec((1, 1), lambda b: (0, 0)),
        ],
        out_specs=(
            pl.BlockSpec((1, T1p, 1), lambda b: (b, 0, 0)),
            pl.BlockSpec((1, T2p, 1), lambda b: (b, 0, 0)),
        ),
        compiler_params=_PARALLEL,
    )(ltf1, ltf2, lf1, lf2, bias1, bias2, wq, wk, w1a, w1b, b1, w2a, w2b, b2)


# ----------------------------------------------------------------------------
# Grouped LocalEncoder forward (all 4 encoders share one pass)
# ----------------------------------------------------------------------------


def encoders_forward(x_all, p):
    """x_all: (G, B, T, ENC_IN_DIM) -> (G, B, T, 2*CBHG_DIM)."""
    G, B, T, Din = x_all.shape
    M = B * T
    dim = CBHG_DIM
    x2 = x_all.reshape(G, M, Din)

    # --- Prenet (both layers fused) ---
    y = prenet_pallas(x2, p["pre_w1"], p["pre_b1"], p["pre_w2"], p["pre_b2"])
    residual = y                                        # (G, M, dim)
    y3 = y.reshape(G, B, T, dim)

    # --- Conv1d bank (K=1..4) as ONE matmul over a fixed 4-tap im2col ---
    # Taps cover offsets -2..+1 (enough for every k with padding k//2, crop T).
    # BatchNorm in eval mode with fresh running stats is identity.
    yp = jnp.pad(y3, ((0, 0), (0, 0), (2, 1), (0, 0)))
    patches = jnp.concatenate([yp[:, :, tap:tap + T, :] for tap in range(4)],
                              axis=-1)                  # (G, B, T, 4*dim)
    bank = grouped_matmul(patches.reshape(G, M, 4 * dim),
                          p["bank_w"], p["bank_b"], act="relu")  # (G, M, K*dim)

    # --- MaxPool1d(kernel=2, stride=1, padding=1), cropped to T (XLA) ---
    b3 = bank.reshape(G, B, T, CBHG_K * dim)
    bp = jnp.pad(b3, ((0, 0), (0, 0), (1, 0), (0, 0)),
                 constant_values=-jnp.inf)
    pooled = jnp.maximum(bp[:, :, :T, :], bp[:, :, 1:T + 1, :])

    # --- Conv projection 1 (k=3, ReLU fused) ---
    pp = jnp.pad(pooled, ((0, 0), (0, 0), (1, 1), (0, 0)))
    pat1 = jnp.concatenate([pp[:, :, tap:tap + T, :] for tap in range(3)],
                           axis=-1)                     # (G, B, T, 3*K*dim)
    h1 = grouped_matmul(pat1.reshape(G, M, 3 * CBHG_K * dim),
                        p["proj1_w"], p["proj1_b"], act="relu")

    # --- Conv projection 2 (k=3, residual add fused) ---
    h13 = h1.reshape(G, B, T, PROJECTIONS[0])
    hp = jnp.pad(h13, ((0, 0), (0, 0), (1, 1), (0, 0)))
    pat2 = jnp.concatenate([hp[:, :, tap:tap + T, :] for tap in range(3)],
                           axis=-1)                     # (G, B, T, 3*proj0)
    y2 = grouped_matmul(pat2.reshape(G, M, 3 * PROJECTIONS[0]),
                        p["proj2_w"], p["proj2_b"], act=None,
                        residual=residual)              # (G, M, dim)

    # --- Highway x4 + BiGRU input projection (fused) ---
    xp = highway_gruproj_pallas(y2, p["hw_w"], p["hw_b"],
                                p["gru_wi"], p["gru_bi"])  # (G, M, 6H)

    # --- BiGRU recurrence (time-major layout so time indexing stays on a
    #     leading, non-tiled dimension inside the kernel) ---
    xp_tbf = jnp.transpose(xp.reshape(G, B, T, 6 * dim), (0, 2, 1, 3))
    out_tbf = bigru_pallas(xp_tbf, p["gru_wh"], p["gru_bh"])  # (G, T, B, 2H)
    return jnp.transpose(out_tbf, (0, 2, 1, 3))               # (G, B, T, 2H)


# ----------------------------------------------------------------------------
# Baseline forward
# ----------------------------------------------------------------------------


def baseline_forward(packed, bert1, bert2, lst1, lst2, gst1, gst2,
                     length1, length2):
    B, T, _ = bert1.shape

    # p_gst are simply the stacked provided GST embeddings (as in the module).
    p_gst1, p_gst2 = gst1, gst2

    # Group the four LocalEncoder inputs: lst-conditioned encoders use
    # concat([bert, lst]); text encoders are zero-padded to the same width
    # (their first prenet weight row for that channel is zero -> identical).
    zpad = jnp.zeros((B, T, 1), jnp.float32)
    x_all = jnp.stack([
        jnp.concatenate([bert1, lst1], axis=-1),
        jnp.concatenate([bert2, lst2], axis=-1),
        jnp.concatenate([bert1, zpad], axis=-1),
        jnp.concatenate([bert2, zpad], axis=-1),
    ], axis=0)                                          # (4, B, T, 33)

    feats = encoders_forward(x_all, packed["enc"])      # (4, B, T, 2H)

    zrow = jnp.zeros((B, 1, feats.shape[-1]), jnp.float32)
    lf1 = jnp.concatenate([feats[0], zrow], axis=1)
    lf2 = jnp.concatenate([feats[1], zrow], axis=1)
    ltf1 = jnp.concatenate([feats[2], zrow], axis=1)
    ltf2 = jnp.concatenate([feats[3], zrow], axis=1)

    # TODO(synk): exact Attention module definition not provided; implemented
    # as dot-product cross-attention in a projected space with length masking
    # (the appended zero row is kept attendable as a "null" slot).
    T1p, T2p = T + 1, T + 1
    idx1 = jnp.arange(T1p)[None, :]
    idx2 = jnp.arange(T2p)[None, :]
    valid1 = (idx1 < length1[:, None]) | (idx1 == T1p - 1)
    valid2 = (idx2 < length2[:, None]) | (idx2 == T2p - 1)
    bias1 = jnp.where(valid1, 0.0, -1e9).astype(jnp.float32)[:, :, None]
    bias2 = jnp.where(valid2, 0.0, -1e9).astype(jnp.float32)[:, None, :]

    a = packed["attn"]
    p_lst1_pad, p_lst2_pad = attention_lst_pallas(
        ltf1, ltf2, lf1, lf2, bias1, bias2,
        a["wq"], a["wk"], a["w1a"], a["w1b"], a["b1"],
        a["w2a"], a["w2b"], a["b2"])
    return p_gst1, p_gst2, p_lst1_pad, p_lst2_pad


# ----------------------------------------------------------------------------
# Deterministic parameter initialization + packing into fused layouts
# ----------------------------------------------------------------------------


def _key_iter(key):
    while True:
        key, sub = jax.random.split(key)
        yield sub


def _w(keys, shape, scale=0.1):
    return scale * jax.random.normal(next(keys), shape, dtype=jnp.float32)


def init_local_encoder(keys, input_dim):
    prenet = []
    in_dim = input_dim
    for size in PRENET_SIZES:
        prenet.append((_w(keys, (in_dim, size)), _w(keys, (size,))))
        in_dim = size
    dim = CBHG_DIM
    bank = [(_w(keys, (dim, dim, k)), _w(keys, (dim,)))
            for k in range(1, CBHG_K + 1)]
    proj_in = (CBHG_K * dim,) + PROJECTIONS[:-1]
    proj = [(_w(keys, (out, cin, 3)), _w(keys, (out,)))
            for cin, out in zip(proj_in, PROJECTIONS)]
    highways = [{"Wh": _w(keys, (dim, dim)), "bh": _w(keys, (dim,)),
                 "Wt": _w(keys, (dim, dim)),
                 "bt": jnp.full((dim,), -1.0, jnp.float32)}
                for _ in range(NUM_HIGHWAYS)]
    gru = {d: {"Wi": _w(keys, (dim, 3 * dim)), "Wh": _w(keys, (dim, 3 * dim)),
               "bi": _w(keys, (3 * dim,)), "bh": _w(keys, (3 * dim,))}
           for d in ("fwd", "bwd")}
    return {"prenet": prenet,
            "cbhg": {"bank": bank, "proj": proj, "highways": highways,
                     "gru": gru}}


def init_params(key):
    keys = _key_iter(key)
    return {
        "local_encoder_1": init_local_encoder(keys, BERT_DIM + 1),
        "local_encoder_2": init_local_encoder(keys, BERT_DIM + 1),
        "local_text_encoder_1": init_local_encoder(keys, BERT_DIM),
        "local_text_encoder_2": init_local_encoder(keys, BERT_DIM),
        "attention": {"W1": _w(keys, (FEAT_DIM, ATTN_DIM)),
                      "W2": _w(keys, (FEAT_DIM, ATTN_DIM))},
        "lst_linear_1": {"W": _w(keys, (2 * FEAT_DIM, 1)), "b": _w(keys, (1,))},
        "lst_linear_2": {"W": _w(keys, (2 * FEAT_DIM, 1)), "b": _w(keys, (1,))},
    }


def pack_encoder(pe):
    """Repack one LocalEncoder's params into the fused-kernel layouts."""
    dim = CBHG_DIM
    (w1, b1), (w2, b2) = pe["prenet"]
    if w1.shape[0] < ENC_IN_DIM:             # text encoders: zero-pad input row
        w1 = jnp.pad(w1, ((0, ENC_IN_DIM - w1.shape[0]), (0, 0)))

    # Conv bank: one (4*dim, K*dim) weight over the fixed 4-tap im2col.
    wbank = jnp.zeros((4 * dim, CBHG_K * dim), jnp.float32)
    bbank = []
    for kk in range(1, CBHG_K + 1):
        w, b = pe["cbhg"]["bank"][kk - 1]     # (dim, dim, kk), PyTorch layout
        pad = kk // 2
        for j in range(kk):
            tap = j - pad + 2                 # offsets -2..+1 -> taps 0..3
            wbank = wbank.at[tap * dim:(tap + 1) * dim,
                             (kk - 1) * dim:kk * dim].set(w[:, :, j].T)
        bbank.append(b)
    bbank = jnp.concatenate(bbank).reshape(1, -1)

    # Conv projections (k=3) as im2col matmul weights (tap-major rows).
    pw1, pb1 = pe["cbhg"]["proj"][0]
    pw2, pb2 = pe["cbhg"]["proj"][1]
    proj1_w = jnp.transpose(pw1, (2, 1, 0)).reshape(3 * pw1.shape[1], pw1.shape[0])
    proj2_w = jnp.transpose(pw2, (2, 1, 0)).reshape(3 * pw2.shape[1], pw2.shape[0])

    # Highway layers: merge H/T branches -> (layers, dim, 2*dim).
    hw_w = jnp.stack([jnp.concatenate([hw["Wh"], hw["Wt"]], axis=1)
                      for hw in pe["cbhg"]["highways"]])
    hw_b = jnp.stack([jnp.concatenate([hw["bh"], hw["bt"]]).reshape(1, -1)
                      for hw in pe["cbhg"]["highways"]])

    # BiGRU: concat fwd/bwd input projections; block-diagonal hidden weights.
    g = pe["cbhg"]["gru"]
    gru_wi = jnp.concatenate([g["fwd"]["Wi"], g["bwd"]["Wi"]], axis=1)  # (dim, 6H)
    gru_bi = jnp.concatenate([g["fwd"]["bi"], g["bwd"]["bi"]]).reshape(1, -1)
    gru_wh = jnp.zeros((2 * dim, 6 * dim), jnp.float32)
    gru_wh = gru_wh.at[:dim, :3 * dim].set(g["fwd"]["Wh"])
    gru_wh = gru_wh.at[dim:, 3 * dim:].set(g["bwd"]["Wh"])
    gru_bh = jnp.concatenate([g["fwd"]["bh"], g["bwd"]["bh"]]).reshape(1, -1)

    return dict(
        pre_w1=w1, pre_b1=b1.reshape(1, -1), pre_w2=w2, pre_b2=b2.reshape(1, -1),
        bank_w=wbank, bank_b=bbank,
        proj1_w=proj1_w, proj1_b=pb1.reshape(1, -1),
        proj2_w=proj2_w, proj2_b=pb2.reshape(1, -1),
        hw_w=hw_w, hw_b=hw_b,
        gru_wi=gru_wi, gru_bi=gru_bi, gru_wh=gru_wh, gru_bh=gru_bh)


def pack_params(params):
    enc_names = ["local_encoder_1", "local_encoder_2",
                 "local_text_encoder_1", "local_text_encoder_2"]
    per = [pack_encoder(params[n]) for n in enc_names]
    enc = {k: jnp.stack([d[k] for d in per], axis=0) for k in per[0]}
    F = FEAT_DIM
    attn = {
        "wq": params["attention"]["W1"],
        "wk": params["attention"]["W2"],
        "w1a": params["lst_linear_1"]["W"][:F],
        "w1b": params["lst_linear_1"]["W"][F:],
        "b1": params["lst_linear_1"]["b"].reshape(1, 1),
        "w2a": params["lst_linear_2"]["W"][:F],
        "w2b": params["lst_linear_2"]["W"][F:],
        "b2": params["lst_linear_2"]["b"].reshape(1, 1),
    }
    return {"enc": enc, "attn": attn}


# ----------------------------------------------------------------------------
# Main
# ----------------------------------------------------------------------------

if __name__ == "__main__":
    key_params, key_data = jax.random.split(jax.random.PRNGKey(0))
    B, T = 2, 8
    lengths1 = [8, 6]
    lengths2 = [7, 8]

    kd = _key_iter(key_data)

    def padded(lengths, dim):
        # equivalent to pad_sequence(list of (T_i, dim) tensors, batch_first)
        x = jax.random.normal(next(kd), (B, T, dim), dtype=jnp.float32)
        mask = (jnp.arange(T)[None, :] <
                jnp.asarray(lengths)[:, None])[:, :, None]
        return x * mask

    bert1 = padded(lengths1, BERT_DIM)
    bert2 = padded(lengths2, BERT_DIM)
    lst1 = padded(lengths1, 1)   # pad_sequence(lst).unsqueeze(-1)
    lst2 = padded(lengths2, 1)
    gst1 = jax.random.normal(next(kd), (B, GST_DIM), dtype=jnp.float32)
    gst2 = jax.random.normal(next(kd), (B, GST_DIM), dtype=jnp.float32)
    length1 = jnp.asarray(lengths1, jnp.int32)
    length2 = jnp.asarray(lengths2, jnp.int32)

    params = init_params(key_params)
    packed = pack_params(params)

    fwd = jax.jit(baseline_forward)
    p_gst1, p_gst2, p_lst1_pad, p_lst2_pad = fwd(
        packed, bert1, bert2, lst1, lst2, gst1, gst2, length1, length2)

    # per-utterance slicing, matching `p_lst1 = [i[:l] for i, l in zip(...)]`
    p_lst1 = [p_lst1_pad[i, :l] for i, l in enumerate(lengths1)]
    p_lst2 = [p_lst2_pad[i, :l] for i, l in enumerate(lengths2)]

    jax.block_until_ready((p_gst1, p_gst2, p_lst1, p_lst2))
    print("KERNEL_OK")
</pallas_src>

<mosaic_0001>
module attributes {stable_mosaic.version = 11 : i64} {
  func.func @kernel(%arg0: i32, %arg1: memref<1x16x64xf32, #tpu.memory_space<vmem>>, %arg2: memref<1x64x64xf32, #tpu.memory_space<vmem>>, %arg3: memref<1x1x64xf32, #tpu.memory_space<vmem>>, %arg4: memref<1x16x64xf32, #tpu.memory_space<vmem>>) attributes {dimension_semantics = [#tpu.dimension_semantics<parallel>], iteration_bounds = array<i64: 4>, scalar_prefetch = 0 : i64, scratch_operands = 0 : i64, tpu.core_type = #tpu.core_type<tc>, window_params = [{transform_indices = @transform_0, window_bounds = array<i64: 1, 16, 64>}, {transform_indices = @transform_1, window_bounds = array<i64: 1, 64, 64>}, {transform_indices = @transform_2, window_bounds = array<i64: 1, 1, 64>}, {transform_indices = @transform_3, window_bounds = array<i64: 1, 16, 64>}]} {
    %c0 = arith.constant 0 : index
    %c0_0 = arith.constant 0 : index
    %c0_1 = arith.constant 0 : index
    %0 = vector.load %arg1[%c0, %c0_0, %c0_1] : memref<1x16x64xf32, #tpu.memory_space<vmem>>, vector<1x16x64xf32>
    %1 = vector.shape_cast %0 : vector<1x16x64xf32> to vector<16x64xf32>
    %c0_2 = arith.constant 0 : index
    %c0_3 = arith.constant 0 : index
    %c0_4 = arith.constant 0 : index
    %2 = vector.load %arg2[%c0_2, %c0_3, %c0_4] : memref<1x64x64xf32, #tpu.memory_space<vmem>>, vector<1x64x64xf32>
    %3 = vector.shape_cast %2 : vector<1x64x64xf32> to vector<64x64xf32>
    %cst = arith.constant dense<0.000000e+00> : vector<16x64xf32>
    %4 = tpu.matmul %1, %3, %cst {dimension_numbers = #tpu.dot_dimension_numbers<[1], [0], [0], [1], [0, 0, 1, 1], [], []>} : vector<16x64xf32>, vector<64x64xf32>, vector<16x64xf32> -> vector<16x64xf32>
    %c0_5 = arith.constant 0 : index
    %c0_6 = arith.constant 0 : index
    %c0_7 = arith.constant 0 : index
    %5 = vector.load %arg3[%c0_5, %c0_6, %c0_7] : memref<1x1x64xf32, #tpu.memory_space<vmem>>, vector<1x1x64xf32>
    %6 = vector.shape_cast %5 : vector<1x1x64xf32> to vector<1x64xf32>
    %7 = vector.broadcast %6 : vector<1x64xf32> to vector<16x64xf32>
    %8 = arith.addf %4, %7 : vector<16x64xf32>
    %cst_8 = arith.constant 0.000000e+00 : f32
    %9 = vector.broadcast %cst_8 : f32 to vector<16x64xf32>
    %10 = arith.maximumf %8, %9 : vector<16x64xf32>
    %c0_9 = arith.constant 0 : index
    %c0_10 = arith.constant 0 : index
    %c0_11 = arith.constant 0 : index
    %11 = vector.load %arg4[%c0_9, %c0_10, %c0_11] : memref<1x16x64xf32, #tpu.memory_space<vmem>>, vector<1x16x64xf32>
    %12 = vector.shape_cast %11 : vector<1x16x64xf32> to vector<16x64xf32>
    %13 = vector.shape_cast %10 : vector<16x64xf32> to vector<1x16x64xf32>
    tpu.vector_store %arg4[%c0_9, %c0_10, %c0_11], %13 {strides = array<i32>} : memref<1x16x64xf32, #tpu.memory_space<vmem>>, vector<1x16x64xf32>,
    return
  }
  func.func @transform_0(%arg0: i32) -> (i32, i32, i32) {
    %c0_i32 = arith.constant 0 : i32
    %c0_i32_0 = arith.constant 0 : i32
    %c0_i32_1 = arith.constant 0 : i32
    return %arg0, %c0_i32, %c0_i32_0 : i32, i32, i32
  }
  func.func @transform_1(%arg0: i32) -> (i32, i32, i32) {
    %c0_i32 = arith.constant 0 : i32
    %c0_i32_0 = arith.constant 0 : i32
    %c0_i32_1 = arith.constant 0 : i32
    return %arg0, %c0_i32, %c0_i32_0 : i32, i32, i32
  }
  func.func @transform_2(%arg0: i32) -> (i32, i32, i32) {
    %c0_i32 = arith.constant 0 : i32
    %c0_i32_0 = arith.constant 0 : i32
    %c0_i32_1 = arith.constant 0 : i32
    return %arg0, %c0_i32, %c0_i32_0 : i32, i32, i32
  }
  func.func @transform_3(%arg0: i32) -> (i32, i32, i32) {
    %c0_i32 = arith.constant 0 : i32
    %c0_i32_0 = arith.constant 0 : i32
    %c0_i32_1 = arith.constant 0 : i32
    return %arg0, %c0_i32, %c0_i32_0 : i32, i32, i32
  }
}

module attributes {stable_mosaic.version = 11 : i64} {
  func.func @_prenet_kernel(%arg0: i32, %arg1: memref<1x16x33xf32, #tpu.memory_space<vmem>>, %arg2: memref<1x33x32xf32, #tpu.memory_space<vmem>>, %arg3: memref<1x1x32xf32, #tpu.memory_space<vmem>>, %arg4: memref<1x32x16xf32, #tpu.memory_space<vmem>>, %arg5: memref<1x1x16xf32, #tpu.memory_space<vmem>>, %arg6: memref<1x16x16xf32, #tpu.memory_space<vmem>>) attributes {dimension_semantics = [#tpu.dimension_semantics<parallel>], iteration_bounds = array<i64: 4>, scalar_prefetch = 0 : i64, scratch_operands = 0 : i64, tpu.core_type = #tpu.core_type<tc>, window_params = [{transform_indices = @transform_0, window_bounds = array<i64: 1, 16, 33>}, {transform_indices = @transform_1, window_bounds = array<i64: 1, 33, 32>}, {transform_indices = @transform_2, window_bounds = array<i64: 1, 1, 32>}, {transform_indices = @transform_3, window_bounds = array<i64: 1, 32, 16>}, {transform_indices = @transform_4, window_bounds = array<i64: 1, 1, 16>}, {transform_indices = @transform_5, window_bounds = array<i64: 1, 16, 16>}]} {
    %c0 = arith.constant 0 : index
    %c0_0 = arith.constant 0 : index
    %c0_1 = arith.constant 0 : index
    %0 = vector.load %arg1[%c0, %c0_0, %c0_1] : memref<1x16x33xf32, #tpu.memory_space<vmem>>, vector<1x16x33xf32>
    %1 = vector.shape_cast %0 : vector<1x16x33xf32> to vector<16x33xf32>
    %c0_2 = arith.constant 0 : index
    %c0_3 = arith.constant 0 : index
    %c0_4 = arith.constant 0 : index
    %2 = vector.load %arg2[%c0_2, %c0_3, %c0_4] : memref<1x33x32xf32, #tpu.memory_space<vmem>>, vector<1x33x32xf32>
    %3 = vector.shape_cast %2 : vector<1x33x32xf32> to vector<33x32xf32>
    %cst = arith.constant dense<0.000000e+00> : vector<16x32xf32>
    %4 = tpu.matmul %1, %3, %cst {dimension_numbers = #tpu.dot_dimension_numbers<[1], [0], [0], [1], [0, 0, 1, 1], [], []>} : vector<16x33xf32>, vector<33x32xf32>, vector<16x32xf32> -> vector<16x32xf32>
    %c0_5 = arith.constant 0 : index
    %c0_6 = arith.constant 0 : index
    %c0_7 = arith.constant 0 : index
    %5 = vector.load %arg3[%c0_5, %c0_6, %c0_7] : memref<1x1x32xf32, #tpu.memory_space<vmem>>, vector<1x1x32xf32>
    %6 = vector.shape_cast %5 : vector<1x1x32xf32> to vector<1x32xf32>
    %7 = vector.broadcast %6 : vector<1x32xf32> to vector<16x32xf32>
    %8 = arith.addf %4, %7 : vector<16x32xf32>
    %cst_8 = arith.constant 0.000000e+00 : f32
    %9 = vector.broadcast %cst_8 : f32 to vector<16x32xf32>
    %10 = arith.maximumf %8, %9 : vector<16x32xf32>
    %c0_9 = arith.constant 0 : index
    %c0_10 = arith.constant 0 : index
    %c0_11 = arith.constant 0 : index
    %11 = vector.load %arg4[%c0_9, %c0_10, %c0_11] : memref<1x32x16xf32, #tpu.memory_space<vmem>>, vector<1x32x16xf32>
    %12 = vector.shape_cast %11 : vector<1x32x16xf32> to vector<32x16xf32>
    %cst_12 = arith.constant dense<0.000000e+00> : vector<16x16xf32>
    %13 = tpu.matmul %10, %12, %cst_12 {dimension_numbers = #tpu.dot_dimension_numbers<[1], [0], [0], [1], [0, 0, 1, 1], [], []>} : vector<16x32xf32>, vector<32x16xf32>, vector<16x16xf32> -> vector<16x16xf32>
    %c0_13 = arith.constant 0 : index
    %c0_14 = arith.constant 0 : index
    %c0_15 = arith.constant 0 : index
    %14 = vector.load %arg5[%c0_13, %c0_14, %c0_15] : memref<1x1x16xf32, #tpu.memory_space<vmem>>, vector<1x1x16xf32>
    %15 = vector.shape_cast %14 : vector<1x1x16xf32> to vector<1x16xf32>
    %16 = vector.broadcast %15 : vector<1x16xf32> to vector<16x16xf32>
    %17 = arith.addf %13, %16 : vector<16x16xf32>
    %cst_16 = arith.constant 0.000000e+00 : f32
    %18 = vector.broadcast %cst_16 : f32 to vector<16x16xf32>
    %19 = arith.maximumf %17, %18 : vector<16x16xf32>
    %c0_17 = arith.constant 0 : index
    %c0_18 = arith.constant 0 : index
    %c0_19 = arith.constant 0 : index
    %20 = vector.load %arg6[%c0_17, %c0_18, %c0_19] : memref<1x16x16xf32, #tpu.memory_space<vmem>>, vector<1x16x16xf32>
    %21 = vector.shape_cast %20 : vector<1x16x16xf32> to vector<16x16xf32>
    %22 = vector.shape_cast %19 : vector<16x16xf32> to vector<1x16x16xf32>
    tpu.vector_store %arg6[%c0_17, %c0_18, %c0_19], %22 {strides = array<i32>} : memref<1x16x16xf32, #tpu.memory_space<vmem>>, vector<1x16x16xf32>,
    return
  }
  func.func @transform_0(%arg0: i32) -> (i32, i32, i32) {
    %c0_i32 = arith.constant 0 : i32
    %c0_i32_0 = arith.constant 0 : i32
    %c0_i32_1 = arith.constant 0 : i32
    return %arg0, %c0_i32, %c0_i32_0 : i32, i32, i32
  }
  func.func @transform_1(%arg0: i32) -> (i32, i32, i32) {
    %c0_i32 = arith.constant 0 : i32
    %c0_i32_0 = arith.constant 0 : i32
    %c0_i32_1 = arith.constant 0 : i32
    return %arg0, %c0_i32, %c0_i32_0 : i32, i32, i32
  }
  func.func @transform_2(%arg0: i32) -> (i32, i32, i32) {
    %c0_i32 = arith.constant 0 : i32
    %c0_i32_0 = arith.constant 0 : i32
    %c0_i32_1 = arith.constant 0 : i32
    return %arg0, %c0_i32, %c0_i32_0 : i32, i32, i32
  }
  func.func @transform_3(%arg0: i32) -> (i32, i32, i32) {
    %c0_i32 = arith.constant 0 : i32
    %c0_i32_0 = arith.constant 0 : i32
    %c0_i32_1 = arith.constant 0 : i32
    return %arg0, %c0_i32, %c0_i32_0 : i32, i32, i32
  }
  func.func @transform_4(%arg0: i32) -> (i32, i32, i32) {
    %c0_i32 = arith.constant 0 : i32
    %c0_i32_0 = arith.constant 0 : i32
    %c0_i32_1 = arith.constant 0 : i32
    return %arg0, %c0_i32, %c0_i32_0 : i32, i32, i32
  }
  func.func @transform_5(%arg0: i32) -> (i32, i32, i32) {
    %c0_i32 = arith.constant 0 : i32
    %c0_i32_0 = arith.constant 0 : i32
    %c0_i32_1 = arith.constant 0 : i32
    return %arg0, %c0_i32, %c0_i32_0 : i32, i32, i32
  }
}

module attributes {stable_mosaic.version = 11 : i64} {
  func.func @kernel(%arg0: i32, %arg1: memref<1x16x192xf32, #tpu.memory_space<vmem>>, %arg2: memref<1x192x32xf32, #tpu.memory_space<vmem>>, %arg3: memref<1x1x32xf32, #tpu.memory_space<vmem>>, %arg4: memref<1x16x32xf32, #tpu.memory_space<vmem>>) attributes {dimension_semantics = [#tpu.dimension_semantics<parallel>], iteration_bounds = array<i64: 4>, scalar_prefetch = 0 : i64, scratch_operands = 0 : i64, tpu.core_type = #tpu.core_type<tc>, window_params = [{transform_indices = @transform_0, window_bounds = array<i64: 1, 16, 192>}, {transform_indices = @transform_1, window_bounds = array<i64: 1, 192, 32>}, {transform_indices = @transform_2, window_bounds = array<i64: 1, 1, 32>}, {transform_indices = @transform_3, window_bounds = array<i64: 1, 16, 32>}]} {
    %c0 = arith.constant 0 : index
    %c0_0 = arith.constant 0 : index
    %c0_1 = arith.constant 0 : index
    %0 = vector.load %arg1[%c0, %c0_0, %c0_1] : memref<1x16x192xf32, #tpu.memory_space<vmem>>, vector<1x16x192xf32>
    %1 = vector.shape_cast %0 : vector<1x16x192xf32> to vector<16x192xf32>
    %c0_2 = arith.constant 0 : index
    %c0_3 = arith.constant 0 : index
    %c0_4 = arith.constant 0 : index
    %2 = vector.load %arg2[%c0_2, %c0_3, %c0_4] : memref<1x192x32xf32, #tpu.memory_space<vmem>>, vector<1x192x32xf32>
    %3 = vector.shape_cast %2 : vector<1x192x32xf32> to vector<192x32xf32>
    %cst = arith.constant dense<0.000000e+00> : vector<16x32xf32>
    %4 = tpu.matmul %1, %3, %cst {dimension_numbers = #tpu.dot_dimension_numbers<[1], [0], [0], [1], [0, 0, 1, 1], [], []>} : vector<16x192xf32>, vector<192x32xf32>, vector<16x32xf32> -> vector<16x32xf32>
    %c0_5 = arith.constant 0 : index
    %c0_6 = arith.constant 0 : index
    %c0_7 = arith.constant 0 : index
    %5 = vector.load %arg3[%c0_5, %c0_6, %c0_7] : memref<1x1x32xf32, #tpu.memory_space<vmem>>, vector<1x1x32xf32>
    %6 = vector.shape_cast %5 : vector<1x1x32xf32> to vector<1x32xf32>
    %7 = vector.broadcast %6 : vector<1x32xf32> to vector<16x32xf32>
    %8 = arith.addf %4, %7 : vector<16x32xf32>
    %cst_8 = arith.constant 0.000000e+00 : f32
    %9 = vector.broadcast %cst_8 : f32 to vector<16x32xf32>
    %10 = arith.maximumf %8, %9 : vector<16x32xf32>
    %c0_9 = arith.constant 0 : index
    %c0_10 = arith.constant 0 : index
    %c0_11 = arith.constant 0 : index
    %11 = vector.load %arg4[%c0_9, %c0_10, %c0_11] : memref<1x16x32xf32, #tpu.memory_space<vmem>>, vector<1x16x32xf32>
    %12 = vector.shape_cast %11 : vector<1x16x32xf32> to vector<16x32xf32>
    %13 = vector.shape_cast %10 : vector<16x32xf32> to vector<1x16x32xf32>
    tpu.vector_store %arg4[%c0_9, %c0_10, %c0_11], %13 {strides = array<i32>} : memref<1x16x32xf32, #tpu.memory_space<vmem>>, vector<1x16x32xf32>,
    return
  }
  func.func @transform_0(%arg0: i32) -> (i32, i32, i32) {
    %c0_i32 = arith.constant 0 : i32
    %c0_i32_0 = arith.constant 0 : i32
    %c0_i32_1 = arith.constant 0 : i32
    return %arg0, %c0_i32, %c0_i32_0 : i32, i32, i32
  }
  func.func @transform_1(%arg0: i32) -> (i32, i32, i32) {
    %c0_i32 = arith.constant 0 : i32
    %c0_i32_0 = arith.constant 0 : i32
    %c0_i32_1 = arith.constant 0 : i32
    return %arg0, %c0_i32, %c0_i32_0 : i32, i32, i32
  }
  func.func @transform_2(%arg0: i32) -> (i32, i32, i32) {
    %c0_i32 = arith.constant 0 : i32
    %c0_i32_0 = arith.constant 0 : i32
    %c0_i32_1 = arith.constant 0 : i32
    return %arg0, %c0_i32, %c0_i32_0 : i32, i32, i32
  }
  func.func @transform_3(%arg0: i32) -> (i32, i32, i32) {
    %c0_i32 = arith.constant 0 : i32
    %c0_i32_0 = arith.constant 0 : i32
    %c0_i32_1 = arith.constant 0 : i32
    return %arg0, %c0_i32, %c0_i32_0 : i32, i32, i32
  }
}

module attributes {stable_mosaic.version = 11 : i64} {
  func.func @kernel(%arg0: i32, %arg1: memref<1x16x96xf32, #tpu.memory_space<vmem>>, %arg2: memref<1x96x16xf32, #tpu.memory_space<vmem>>, %arg3: memref<1x1x16xf32, #tpu.memory_space<vmem>>, %arg4: memref<1x16x16xf32, #tpu.memory_space<vmem>>, %arg5: memref<1x16x16xf32, #tpu.memory_space<vmem>>) attributes {dimension_semantics = [#tpu.dimension_semantics<parallel>], iteration_bounds = array<i64: 4>, scalar_prefetch = 0 : i64, scratch_operands = 0 : i64, tpu.core_type = #tpu.core_type<tc>, window_params = [{transform_indices = @transform_0, window_bounds = array<i64: 1, 16, 96>}, {transform_indices = @transform_1, window_bounds = array<i64: 1, 96, 16>}, {transform_indices = @transform_2, window_bounds = array<i64: 1, 1, 16>}, {transform_indices = @transform_3, window_bounds = array<i64: 1, 16, 16>}, {transform_indices = @transform_4, window_bounds = array<i64: 1, 16, 16>}]} {
    %c0 = arith.constant 0 : index
    %c0_0 = arith.constant 0 : index
    %c0_1 = arith.constant 0 : index
    %0 = vector.load %arg1[%c0, %c0_0, %c0_1] : memref<1x16x96xf32, #tpu.memory_space<vmem>>, vector<1x16x96xf32>
    %1 = vector.shape_cast %0 : vector<1x16x96xf32> to vector<16x96xf32>
    %c0_2 = arith.constant 0 : index
    %c0_3 = arith.constant 0 : index
    %c0_4 = arith.constant 0 : index
    %2 = vector.load %arg2[%c0_2, %c0_3, %c0_4] : memref<1x96x16xf32, #tpu.memory_space<vmem>>, vector<1x96x16xf32>
    %3 = vector.shape_cast %2 : vector<1x96x16xf32> to vector<96x16xf32>
    %cst = arith.constant dense<0.000000e+00> : vector<16x16xf32>
    %4 = tpu.matmul %1, %3, %cst {dimension_numbers = #tpu.dot_dimension_numbers<[1], [0], [0], [1], [0, 0, 1, 1], [], []>} : vector<16x96xf32>, vector<96x16xf32>, vector<16x16xf32> -> vector<16x16xf32>
    %c0_5 = arith.constant 0 : index
    %c0_6 = arith.constant 0 : index
    %c0_7 = arith.constant 0 : index
    %5 = vector.load %arg3[%c0_5, %c0_6, %c0_7] : memref<1x1x16xf32, #tpu.memory_space<vmem>>, vector<1x1x16xf32>
    %6 = vector.shape_cast %5 : vector<1x1x16xf32> to vector<1x16xf32>
    %7 = vector.broadcast %6 : vector<1x16xf32> to vector<16x16xf32>
    %8 = arith.addf %4, %7 : vector<16x16xf32>
    %c0_8 = arith.constant 0 : index
    %c0_9 = arith.constant 0 : index
    %c0_10 = arith.constant 0 : index
    %9 = vector.load %arg4[%c0_8, %c0_9, %c0_10] : memref<1x16x16xf32, #tpu.memory_space<vmem>>, vector<1x16x16xf32>
    %10 = vector.shape_cast %9 : vector<1x16x16xf32> to vector<16x16xf32>
    %11 = arith.addf %8, %10 : vector<16x16xf32>
    %c0_11 = arith.constant 0 : index
    %c0_12 = arith.constant 0 : index
    %c0_13 = arith.constant 0 : index
    %12 = vector.load %arg5[%c0_11, %c0_12, %c0_13] : memref<1x16x16xf32, #tpu.memory_space<vmem>>, vector<1x16x16xf32>
    %13 = vector.shape_cast %12 : vector<1x16x16xf32> to vector<16x16xf32>
    %14 = vector.shape_cast %11 : vector<16x16xf32> to vector<1x16x16xf32>
    tpu.vector_store %arg5[%c0_11, %c0_12, %c0_13], %14 {strides = array<i32>} : memref<1x16x16xf32, #tpu.memory_space<vmem>>, vector<1x16x16xf32>,
    return
  }
  func.func @transform_0(%arg0: i32) -> (i32, i32, i32) {
    %c0_i32 = arith.constant 0 : i32
    %c0_i32_0 = arith.constant 0 : i32
    %c0_i32_1 = arith.constant 0 : i32
    return %arg0, %c0_i32, %c0_i32_0 : i32, i32, i32
  }
  func.func @transform_1(%arg0: i32) -> (i32, i32, i32) {
    %c0_i32 = arith.constant 0 : i32
    %c0_i32_0 = arith.constant 0 : i32
    %c0_i32_1 = arith.constant 0 : i32
    return %arg0, %c0_i32, %c0_i32_0 : i32, i32, i32
  }
  func.func @transform_2(%arg0: i32) -> (i32, i32, i32) {
    %c0_i32 = arith.constant 0 : i32
    %c0_i32_0 = arith.constant 0 : i32
    %c0_i32_1 = arith.constant 0 : i32
    return %arg0, %c0_i32, %c0_i32_0 : i32, i32, i32
  }
  func.func @transform_3(%arg0: i32) -> (i32, i32, i32) {
    %c0_i32 = arith.constant 0 : i32
    %c0_i32_0 = arith.constant 0 : i32
    %c0_i32_1 = arith.constant 0 : i32
    return %arg0, %c0_i32, %c0_i32_0 : i32, i32, i32
  }
  func.func @transform_4(%arg0: i32) -> (i32, i32, i32) {
    %c0_i32 = arith.constant 0 : i32
    %c0_i32_0 = arith.constant 0 : i32
    %c0_i32_1 = arith.constant 0 : i32
    return %arg0, %c0_i32, %c0_i32_0 : i32, i32, i32
  }
}

module attributes {stable_mosaic.version = 11 : i64} {
  func.func @_highway_gruproj_kernel(%arg0: i32, %arg1: memref<1x16x16xf32, #tpu.memory_space<vmem>>, %arg2: memref<1x4x16x32xf32, #tpu.memory_space<vmem>>, %arg3: memref<1x4x1x32xf32, #tpu.memory_space<vmem>>, %arg4: memref<1x16x96xf32, #tpu.memory_space<vmem>>, %arg5: memref<1x1x96xf32, #tpu.memory_space<vmem>>, %arg6: memref<1x16x96xf32, #tpu.memory_space<vmem>>) attributes {dimension_semantics = [#tpu.dimension_semantics<parallel>], iteration_bounds = array<i64: 4>, scalar_prefetch = 0 : i64, scratch_operands = 0 : i64, tpu.core_type = #tpu.core_type<tc>, window_params = [{transform_indices = @transform_0, window_bounds = array<i64: 1, 16, 16>}, {transform_indices = @transform_1, window_bounds = array<i64: 1, 4, 16, 32>}, {transform_indices = @transform_2, window_bounds = array<i64: 1, 4, 1, 32>}, {transform_indices = @transform_3, window_bounds = array<i64: 1, 16, 96>}, {transform_indices = @transform_4, window_bounds = array<i64: 1, 1, 96>}, {transform_indices = @transform_5, window_bounds = array<i64: 1, 16, 96>}]} {
    %c0 = arith.constant 0 : index
    %c0_0 = arith.constant 0 : index
    %c0_1 = arith.constant 0 : index
    %0 = vector.load %arg1[%c0, %c0_0, %c0_1] : memref<1x16x16xf32, #tpu.memory_space<vmem>>, vector<1x16x16xf32>
    %1 = vector.shape_cast %0 : vector<1x16x16xf32> to vector<16x16xf32>
    %c0_2 = arith.constant 0 : index
    %c0_3 = arith.constant 0 : index
    %c0_4 = arith.constant 0 : index
    %c0_5 = arith.constant 0 : index
    %2 = vector.load %arg2[%c0_2, %c0_3, %c0_4, %c0_5] : memref<1x4x16x32xf32, #tpu.memory_space<vmem>>, vector<1x1x16x32xf32>
    %3 = vector.shape_cast %2 : vector<1x1x16x32xf32> to vector<16x32xf32>
    %c0_6 = arith.constant 0 : index
    %c0_7 = arith.constant 0 : index
    %c0_8 = arith.constant 0 : index
    %c0_9 = arith.constant 0 : index
    %4 = vector.load %arg3[%c0_6, %c0_7, %c0_8, %c0_9] : memref<1x4x1x32xf32, #tpu.memory_space<vmem>>, vector<1x1x1x32xf32>
    %5 = vector.shape_cast %4 : vector<1x1x1x32xf32> to vector<1x32xf32>
    %cst = arith.constant dense<0.000000e+00> : vector<16x32xf32>
    %6 = tpu.matmul %1, %3, %cst {dimension_numbers = #tpu.dot_dimension_numbers<[1], [0], [0], [1], [0, 0, 1, 1], [], []>} : vector<16x16xf32>, vector<16x32xf32>, vector<16x32xf32> -> vector<16x32xf32>
    %7 = vector.broadcast %5 : vector<1x32xf32> to vector<16x32xf32>
    %8 = arith.addf %6, %7 : vector<16x32xf32>
    %9 = vector.extract_strided_slice %8 {offsets = [0, 0], sizes = [16, 16], strides = [1, 1]} : vector<16x32xf32> to vector<16x16xf32>
    %cst_10 = arith.constant 0.000000e+00 : f32
    %10 = vector.broadcast %cst_10 : f32 to vector<16x16xf32>
    %11 = arith.maximumf %9, %10 : vector<16x16xf32>
    %12 = vector.extract_strided_slice %8 {offsets = [0, 16], sizes = [16, 16], strides = [1, 1]} : vector<16x32xf32> to vector<16x16xf32>
    %cst_11 = arith.constant 0.000000e+00 : f32
    %13 = vector.broadcast %cst_11 : f32 to vector<16x16xf32>
    %14 = arith.subf %13, %12 : vector<16x16xf32>
    %15 = math.exp %14 : vector<16x16xf32>
    %cst_12 = arith.constant 1.000000e+00 : f32
    %16 = vector.broadcast %cst_12 : f32 to vector<16x16xf32>
    %17 = arith.addf %16, %15 : vector<16x16xf32>
    %cst_13 = arith.constant 1.000000e+00 : f32
    %18 = vector.broadcast %cst_13 : f32 to vector<16x16xf32>
    %19 = arith.divf %18, %17 : vector<16x16xf32>
    %20 = arith.mulf %11, %19 : vector<16x16xf32>
    %cst_14 = arith.constant 1.000000e+00 : f32
    %21 = vector.broadcast %cst_14 : f32 to vector<16x16xf32>
    %22 = arith.subf %21, %19 : vector<16x16xf32>
    %23 = arith.mulf %1, %22 : vector<16x16xf32>
    %24 = arith.addf %20, %23 : vector<16x16xf32>
    %c0_15 = arith.constant 0 : index
    %c1 = arith.constant 1 : index
    %c0_16 = arith.constant 0 : index
    %c0_17 = arith.constant 0 : index
    %25 = vector.load %arg2[%c0_15, %c1, %c0_16, %c0_17] : memref<1x4x16x32xf32, #tpu.memory_space<vmem>>, vector<1x1x16x32xf32>
    %26 = vector.shape_cast %25 : vector<1x1x16x32xf32> to vector<16x32xf32>
    %c0_18 = arith.constant 0 : index
    %c1_19 = arith.constant 1 : index
    %c0_20 = arith.constant 0 : index
    %c0_21 = arith.constant 0 : index
    %27 = vector.load %arg3[%c0_18, %c1_19, %c0_20, %c0_21] : memref<1x4x1x32xf32, #tpu.memory_space<vmem>>, vector<1x1x1x32xf32>
    %28 = vector.shape_cast %27 : vector<1x1x1x32xf32> to vector<1x32xf32>
    %cst_22 = arith.constant dense<0.000000e+00> : vector<16x32xf32>
    %29 = tpu.matmul %24, %26, %cst_22 {dimension_numbers = #tpu.dot_dimension_numbers<[1], [0], [0], [1], [0, 0, 1, 1], [], []>} : vector<16x16xf32>, vector<16x32xf32>, vector<16x32xf32> -> vector<16x32xf32>
    %30 = vector.broadcast %28 : vector<1x32xf32> to vector<16x32xf32>
    %31 = arith.addf %29, %30 : vector<16x32xf32>
    %32 = vector.extract_strided_slice %31 {offsets = [0, 0], sizes = [16, 16], strides = [1, 1]} : vector<16x32xf32> to vector<16x16xf32>
    %cst_23 = arith.constant 0.000000e+00 : f32
    %33 = vector.broadcast %cst_23 : f32 to vector<16x16xf32>
    %34 = arith.maximumf %32, %33 : vector<16x16xf32>
    %35 = vector.extract_strided_slice %31 {offsets = [0, 16], sizes = [16, 16], strides = [1, 1]} : vector<16x32xf32> to vector<16x16xf32>
    %cst_24 = arith.constant 0.000000e+00 : f32
    %36 = vector.broadcast %cst_24 : f32 to vector<16x16xf32>
    %37 = arith.subf %36, %35 : vector<16x16xf32>
    %38 = math.exp %37 : vector<16x16xf32>
    %cst_25 = arith.constant 1.000000e+00 : f32
    %39 = vector.broadcast %cst_25 : f32 to vector<16x16xf32>
    %40 = arith.addf %39, %38 : vector<16x16xf32>
    %cst_26 = arith.constant 1.000000e+00 : f32
    %41 = vector.broadcast %cst_26 : f32 to vector<16x16xf32>
    %42 = arith.divf %41, %40 : vector<16x16xf32>
    %43 = arith.mulf %34, %42 : vector<16x16xf32>
    %cst_27 = arith.constant 1.000000e+00 : f32
    %44 = vector.broadcast %cst_27 : f32 to vector<16x16xf32>
    %45 = arith.subf %44, %42 : vector<16x16xf32>
    %46 = arith.mulf %24, %45 : vector<16x16xf32>
    %47 = arith.addf %43, %46 : vector<16x16xf32>
    %c0_28 = arith.constant 0 : index
    %c2 = arith.constant 2 : index
    %c0_29 = arith.constant 0 : index
    %c0_30 = arith.constant 0 : index
    %48 = vector.load %arg2[%c0_28, %c2, %c0_29, %c0_30] : memref<1x4x16x32xf32, #tpu.memory_space<vmem>>, vector<1x1x16x32xf32>
    %49 = vector.shape_cast %48 : vector<1x1x16x32xf32> to vector<16x32xf32>
    %c0_31 = arith.constant 0 : index
    %c2_32 = arith.constant 2 : index
    %c0_33 = arith.constant 0 : index
    %c0_34 = arith.constant 0 : index
    %50 = vector.load %arg3[%c0_31, %c2_32, %c0_33, %c0_34] : memref<1x4x1x32xf32, #tpu.memory_space<vmem>>, vector<1x1x1x32xf32>
    %51 = vector.shape_cast %50 : vector<1x1x1x32xf32> to vector<1x32xf32>
    %cst_35 = arith.constant dense<0.000000e+00> : vector<16x32xf32>
    %52 = tpu.matmul %47, %49, %cst_35 {dimension_numbers = #tpu.dot_dimension_numbers<[1], [0], [0], [1], [0, 0, 1, 1], [], []>} : vector<16x16xf32>, vector<16x32xf32>, vector<16x32xf32> -> vector<16x32xf32>
    %53 = vector.broadcast %51 : vector<1x32xf32> to vector<16x32xf32>
    %54 = arith.addf %52, %53 : vector<16x32xf32>
    %55 = vector.extract_strided_slice %54 {offsets = [0, 0], sizes = [16, 16], strides = [1, 1]} : vector<16x32xf32> to vector<16x16xf32>
    %cst_36 = arith.constant 0.000000e+00 : f32
    %56 = vector.broadcast %cst_36 : f32 to vector<16x16xf32>
    %57 = arith.maximumf %55, %56 : vector<16x16xf32>
    %58 = vector.extract_strided_slice %54 {offsets = [0, 16], sizes = [16, 16], strides = [1, 1]} : vector<16x32xf32> to vector<16x16xf32>
    %cst_37 = arith.constant 0.000000e+00 : f32
    %59 = vector.broadcast %cst_37 : f32 to vector<16x16xf32>
    %60 = arith.subf %59, %58 : vector<16x16xf32>
    %61 = math.exp %60 : vector<16x16xf32>
    %cst_38 = arith.constant 1.000000e+00 : f32
    %62 = vector.broadcast %cst_38 : f32 to vector<16x16xf32>
    %63 = arith.addf %62, %61 : vector<16x16xf32>
    %cst_39 = arith.constant 1.000000e+00 : f32
    %64 = vector.broadcast %cst_39 : f32 to vector<16x16xf32>
    %65 = arith.divf %64, %63 : vector<16x16xf32>
    %66 = arith.mulf %57, %65 : vector<16x16xf32>
    %cst_40 = arith.constant 1.000000e+00 : f32
    %67 = vector.broadcast %cst_40 : f32 to vector<16x16xf32>
    %68 = arith.subf %67, %65 : vector<16x16xf32>
    %69 = arith.mulf %47, %68 : vector<16x16xf32>
    %70 = arith.addf %66, %69 : vector<16x16xf32>
    %c0_41 = arith.constant 0 : index
    %c3 = arith.constant 3 : index
    %c0_42 = arith.constant 0 : index
    %c0_43 = arith.constant 0 : index
    %71 = vector.load %arg2[%c0_41, %c3, %c0_42, %c0_43] : memref<1x4x16x32xf32, #tpu.memory_space<vmem>>, vector<1x1x16x32xf32>
    %72 = vector.shape_cast %71 : vector<1x1x16x32xf32> to vector<16x32xf32>
    %c0_44 = arith.constant 0 : index
    %c3_45 = arith.constant 3 : index
    %c0_46 = arith.constant 0 : index
    %c0_47 = arith.constant 0 : index
    %73 = vector.load %arg3[%c0_44, %c3_45, %c0_46, %c0_47] : memref<1x4x1x32xf32, #tpu.memory_space<vmem>>, vector<1x1x1x32xf32>
    %74 = vector.shape_cast %73 : vector<1x1x1x32xf32> to vector<1x32xf32>
    %cst_48 = arith.constant dense<0.000000e+00> : vector<16x32xf32>
    %75 = tpu.matmul %70, %72, %cst_48 {dimension_numbers = #tpu.dot_dimension_numbers<[1], [0], [0], [1], [0, 0, 1, 1], [], []>} : vector<16x16xf32>, vector<16x32xf32>, vector<16x32xf32> -> vector<16x32xf32>
    %76 = vector.broadcast %74 : vector<1x32xf32> to vector<16x32xf32>
    %77 = arith.addf %75, %76 : vector<16x32xf32>
    %78 = vector.extract_strided_slice %77 {offsets = [0, 0], sizes = [16, 16], strides = [1, 1]} : vector<16x32xf32> to vector<16x16xf32>
    %cst_49 = arith.constant 0.000000e+00 : f32
    %79 = vector.broadcast %cst_49 : f32 to vector<16x16xf32>
    %80 = arith.maximumf %78, %79 : vector<16x16xf32>
    %81 = vector.extract_strided_slice %77 {offsets = [0, 16], sizes = [16, 16], strides = [1, 1]} : vector<16x32xf32> to vector<16x16xf32>
    %cst_50 = arith.constant 0.000000e+00 : f32
    %82 = vector.broadcast %cst_50 : f32 to vector<16x16xf32>
    %83 = arith.subf %82, %81 : vector<16x16xf32>
    %84 = math.exp %83 : vector<16x16xf32>
    %cst_51 = arith.constant 1.000000e+00 : f32
    %85 = vector.broadcast %cst_51 : f32 to vector<16x16xf32>
    %86 = arith.addf %85, %84 : vector<16x16xf32>
    %cst_52 = arith.constant 1.000000e+00 : f32
    %87 = vector.broadcast %cst_52 : f32 to vector<16x16xf32>
    %88 = arith.divf %87, %86 : vector<16x16xf32>
    %89 = arith.mulf %80, %88 : vector<16x16xf32>
    %cst_53 = arith.constant 1.000000e+00 : f32
    %90 = vector.broadcast %cst_53 : f32 to vector<16x16xf32>
    %91 = arith.subf %90, %88 : vector<16x16xf32>
    %92 = arith.mulf %70, %91 : vector<16x16xf32>
    %93 = arith.addf %89, %92 : vector<16x16xf32>
    %c0_54 = arith.constant 0 : index
    %c0_55 = arith.constant 0 : index
    %c0_56 = arith.constant 0 : index
    %94 = vector.load %arg4[%c0_54, %c0_55, %c0_56] : memref<1x16x96xf32, #tpu.memory_space<vmem>>, vector<1x16x96xf32>
    %95 = vector.shape_cast %94 : vector<1x16x96xf32> to vector<16x96xf32>
    %cst_57 = arith.constant dense<0.000000e+00> : vector<16x96xf32>
    %96 = tpu.matmul %93, %95, %cst_57 {dimension_numbers = #tpu.dot_dimension_numbers<[1], [0], [0], [1], [0, 0, 1, 1], [], []>} : vector<16x16xf32>, vector<16x96xf32>, vector<16x96xf32> -> vector<16x96xf32>
    %c0_58 = arith.constant 0 : index
    %c0_59 = arith.constant 0 : index
    %c0_60 = arith.constant 0 : index
    %97 = vector.load %arg5[%c0_58, %c0_59, %c0_60] : memref<1x1x96xf32, #tpu.memory_space<vmem>>, vector<1x1x96xf32>
    %98 = vector.shape_cast %97 : vector<1x1x96xf32> to vector<1x96xf32>
    %99 = vector.broadcast %98 : vector<1x96xf32> to vector<16x96xf32>
    %100 = arith.addf %96, %99 : vector<16x96xf32>
    %c0_61 = arith.constant 0 : index
    %c0_62 = arith.constant 0 : index
    %c0_63 = arith.constant 0 : index
    %101 = vector.load %arg6[%c0_61, %c0_62, %c0_63] : memref<1x16x96xf32, #tpu.memory_space<vmem>>, vector<1x16x96xf32>
    %102 = vector.shape_cast %101 : vector<1x16x96xf32> to vector<16x96xf32>
    %103 = vector.shape_cast %100 : vector<16x96xf32> to vector<1x16x96xf32>
    tpu.vector_store %arg6[%c0_61, %c0_62, %c0_63], %103 {strides = array<i32>} : memref<1x16x96xf32, #tpu.memory_space<vmem>>, vector<1x16x96xf32>,
    return
  }
  func.func @transform_0(%arg0: i32) -> (i32, i32, i32) {
    %c0_i32 = arith.constant 0 : i32
    %c0_i32_0 = arith.constant 0 : i32
    %c0_i32_1 = arith.constant 0 : i32
    return %arg0, %c0_i32, %c0_i32_0 : i32, i32, i32
  }
  func.func @transform_1(%arg0: i32) -> (i32, i32, i32, i32) {
    %c0_i32 = arith.constant 0 : i32
    %c0_i32_0 = arith.constant 0 : i32
    %c0_i32_1 = arith.constant 0 : i32
    %c0_i32_2 = arith.constant 0 : i32
    return %arg0, %c0_i32, %c0_i32_0, %c0_i32_1 : i32, i32, i32, i32
  }
  func.func @transform_2(%arg0: i32) -> (i32, i32, i32, i32) {
    %c0_i32 = arith.constant 0 : i32
    %c0_i32_0 = arith.constant 0 : i32
    %c0_i32_1 = arith.constant 0 : i32
    %c0_i32_2 = arith.constant 0 : i32
    return %arg0, %c0_i32, %c0_i32_0, %c0_i32_1 : i32, i32, i32, i32
  }
  func.func @transform_3(%arg0: i32) -> (i32, i32, i32) {
    %c0_i32 = arith.constant 0 : i32
    %c0_i32_0 = arith.constant 0 : i32
    %c0_i32_1 = arith.constant 0 : i32
    return %arg0, %c0_i32, %c0_i32_0 : i32, i32, i32
  }
  func.func @transform_4(%arg0: i32) -> (i32, i32, i32) {
    %c0_i32 = arith.constant 0 : i32
    %c0_i32_0 = arith.constant 0 : i32
    %c0_i32_1 = arith.constant 0 : i32
    return %arg0, %c0_i32, %c0_i32_0 : i32, i32, i32
  }
  func.func @transform_5(%arg0: i32) -> (i32, i32, i32) {
    %c0_i32 = arith.constant 0 : i32
    %c0_i32_0 = arith.constant 0 : i32
    %c0_i32_1 = arith.constant 0 : i32
    return %arg0, %c0_i32, %c0_i32_0 : i32, i32, i32
  }
}

module attributes {stable_mosaic.version = 11 : i64} {
  func.func @_bigru_kernel(%arg0: i32, %arg1: memref<1x8x2x96xf32, #tpu.memory_space<vmem>>, %arg2: memref<1x32x96xf32, #tpu.memory_space<vmem>>, %arg3: memref<1x1x96xf32, #tpu.memory_space<vmem>>, %arg4: memref<1x8x2x32xf32, #tpu.memory_space<vmem>>) attributes {dimension_semantics = [#tpu.dimension_semantics<parallel>], iteration_bounds = array<i64: 4>, scalar_prefetch = 0 : i64, scratch_operands = 0 : i64, tpu.core_type = #tpu.core_type<tc>, window_params = [{transform_indices = @transform_0, window_bounds = array<i64: 1, 8, 2, 96>}, {transform_indices = @transform_1, window_bounds = array<i64: 1, 32, 96>}, {transform_indices = @transform_2, window_bounds = array<i64: 1, 1, 96>}, {transform_indices = @transform_3, window_bounds = array<i64: 1, 8, 2, 32>}]} {
    %c0 = arith.constant 0 : index
    %c0_0 = arith.constant 0 : index
    %c0_1 = arith.constant 0 : index
    %0 = vector.load %arg2[%c0, %c0_0, %c0_1] : memref<1x32x96xf32, #tpu.memory_space<vmem>>, vector<1x32x96xf32>
    %1 = vector.shape_cast %0 : vector<1x32x96xf32> to vector<32x96xf32>
    %c0_2 = arith.constant 0 : index
    %c0_3 = arith.constant 0 : index
    %c0_4 = arith.constant 0 : index
    %2 = vector.load %arg3[%c0_2, %c0_3, %c0_4] : memref<1x1x96xf32, #tpu.memory_space<vmem>>, vector<1x1x96xf32>
    %3 = vector.shape_cast %2 : vector<1x1x96xf32> to vector<1x96xf32>
    %cst = arith.constant 0.000000e+00 : f32
    %4 = vector.broadcast %cst : f32 to vector<2x32xf32>
    %c0_5 = arith.constant 0 : index
    %c0_6 = arith.constant 0 : index
    %c0_7 = arith.constant 0 : index
    %c0_8 = arith.constant 0 : index
    %5 = vector.load %arg1[%c0_5, %c0_6, %c0_7, %c0_8] : memref<1x8x2x96xf32, #tpu.memory_space<vmem>>, vector<1x1x2x48xf32>
    %6 = vector.shape_cast %5 : vector<1x1x2x48xf32> to vector<2x48xf32>
    %c0_9 = arith.constant 0 : index
    %c7 = arith.constant 7 : index
    %c0_10 = arith.constant 0 : index
    %c48 = arith.constant 48 : index
    %7 = vector.load %arg1[%c0_9, %c7, %c0_10, %c48] : memref<1x8x2x96xf32, #tpu.memory_space<vmem>>, vector<1x1x2x48xf32>
    %8 = vector.shape_cast %7 : vector<1x1x2x48xf32> to vector<2x48xf32>
    %cst_11 = arith.constant dense<0.000000e+00> : vector<2x96xf32>
    %9 = tpu.matmul %4, %1, %cst_11 {dimension_numbers = #tpu.dot_dimension_numbers<[1], [0], [0], [1], [0, 0, 1, 1], [], []>} : vector<2x32xf32>, vector<32x96xf32>, vector<2x96xf32> -> vector<2x96xf32>
    %10 = vector.broadcast %3 : vector<1x96xf32> to vector<2x96xf32>
    %11 = arith.addf %9, %10 : vector<2x96xf32>
    %12 = vector.extract_strided_slice %11 {offsets = [0, 0], sizes = [2, 48], strides = [1, 1]} : vector<2x96xf32> to vector<2x48xf32>
    %13 = vector.extract_strided_slice %4 {offsets = [0, 0], sizes = [2, 16], strides = [1, 1]} : vector<2x32xf32> to vector<2x16xf32>
    %14 = vector.extract_strided_slice %6 {offsets = [0, 0], sizes = [2, 16], strides = [1, 1]} : vector<2x48xf32> to vector<2x16xf32>
    %15 = vector.extract_strided_slice %12 {offsets = [0, 0], sizes = [2, 16], strides = [1, 1]} : vector<2x48xf32> to vector<2x16xf32>
    %16 = arith.addf %14, %15 : vector<2x16xf32>
    %cst_12 = arith.constant 0.000000e+00 : f32
    %17 = vector.broadcast %cst_12 : f32 to vector<2x16xf32>
    %18 = arith.subf %17, %16 : vector<2x16xf32>
    %19 = math.exp %18 : vector<2x16xf32>
    %cst_13 = arith.constant 1.000000e+00 : f32
    %20 = vector.broadcast %cst_13 : f32 to vector<2x16xf32>
    %21 = arith.addf %20, %19 : vector<2x16xf32>
    %cst_14 = arith.constant 1.000000e+00 : f32
    %22 = vector.broadcast %cst_14 : f32 to vector<2x16xf32>
    %23 = arith.divf %22, %21 : vector<2x16xf32>
    %24 = vector.extract_strided_slice %6 {offsets = [0, 16], sizes = [2, 16], strides = [1, 1]} : vector<2x48xf32> to vector<2x16xf32>
    %25 = vector.extract_strided_slice %12 {offsets = [0, 16], sizes = [2, 16], strides = [1, 1]} : vector<2x48xf32> to vector<2x16xf32>
    %26 = arith.addf %24, %25 : vector<2x16xf32>
    %cst_15 = arith.constant 0.000000e+00 : f32
    %27 = vector.broadcast %cst_15 : f32 to vector<2x16xf32>
    %28 = arith.subf %27, %26 : vector<2x16xf32>
    %29 = math.exp %28 : vector<2x16xf32>
    %cst_16 = arith.constant 1.000000e+00 : f32
    %30 = vector.broadcast %cst_16 : f32 to vector<2x16xf32>
    %31 = arith.addf %30, %29 : vector<2x16xf32>
    %cst_17 = arith.constant 1.000000e+00 : f32
    %32 = vector.broadcast %cst_17 : f32 to vector<2x16xf32>
    %33 = arith.divf %32, %31 : vector<2x16xf32>
    %34 = vector.extract_strided_slice %6 {offsets = [0, 32], sizes = [2, 16], strides = [1, 1]} : vector<2x48xf32> to vector<2x16xf32>
    %35 = vector.extract_strided_slice %12 {offsets = [0, 32], sizes = [2, 16], strides = [1, 1]} : vector<2x48xf32> to vector<2x16xf32>
    %36 = arith.mulf %23, %35 : vector<2x16xf32>
    %37 = arith.addf %34, %36 : vector<2x16xf32>
    %38 = math.tanh %37 : vector<2x16xf32>
    %cst_18 = arith.constant 1.000000e+00 : f32
    %39 = vector.broadcast %cst_18 : f32 to vector<2x16xf32>
    %40 = arith.subf %39, %33 : vector<2x16xf32>
    %41 = arith.mulf %40, %38 : vector<2x16xf32>
    %42 = arith.mulf %33, %13 : vector<2x16xf32>
    %43 = arith.addf %41, %42 : vector<2x16xf32>
    %44 = vector.extract_strided_slice %11 {offsets = [0, 48], sizes = [2, 48], strides = [1, 1]} : vector<2x96xf32> to vector<2x48xf32>
    %45 = vector.extract_strided_slice %4 {offsets = [0, 16], sizes = [2, 16], strides = [1, 1]} : vector<2x32xf32> to vector<2x16xf32>
    %46 = vector.extract_strided_slice %8 {offsets = [0, 0], sizes = [2, 16], strides = [1, 1]} : vector<2x48xf32> to vector<2x16xf32>
    %47 = vector.extract_strided_slice %44 {offsets = [0, 0], sizes = [2, 16], strides = [1, 1]} : vector<2x48xf32> to vector<2x16xf32>
    %48 = arith.addf %46, %47 : vector<2x16xf32>
    %cst_19 = arith.constant 0.000000e+00 : f32
    %49 = vector.broadcast %cst_19 : f32 to vector<2x16xf32>
    %50 = arith.subf %49, %48 : vector<2x16xf32>
    %51 = math.exp %50 : vector<2x16xf32>
    %cst_20 = arith.constant 1.000000e+00 : f32
    %52 = vector.broadcast %cst_20 : f32 to vector<2x16xf32>
    %53 = arith.addf %52, %51 : vector<2x16xf32>
    %cst_21 = arith.constant 1.000000e+00 : f32
    %54 = vector.broadcast %cst_21 : f32 to vector<2x16xf32>
    %55 = arith.divf %54, %53 : vector<2x16xf32>
    %56 = vector.extract_strided_slice %8 {offsets = [0, 16], sizes = [2, 16], strides = [1, 1]} : vector<2x48xf32> to vector<2x16xf32>
    %57 = vector.extract_strided_slice %44 {offsets = [0, 16], sizes = [2, 16], strides = [1, 1]} : vector<2x48xf32> to vector<2x16xf32>
    %58 = arith.addf %56, %57 : vector<2x16xf32>
    %cst_22 = arith.constant 0.000000e+00 : f32
    %59 = vector.broadcast %cst_22 : f32 to vector<2x16xf32>
    %60 = arith.subf %59, %58 : vector<2x16xf32>
    %61 = math.exp %60 : vector<2x16xf32>
    %cst_23 = arith.constant 1.000000e+00 : f32
    %62 = vector.broadcast %cst_23 : f32 to vector<2x16xf32>
    %63 = arith.addf %62, %61 : vector<2x16xf32>
    %cst_24 = arith.constant 1.000000e+00 : f32
    %64 = vector.broadcast %cst_24 : f32 to vector<2x16xf32>
    %65 = arith.divf %64, %63 : vector<2x16xf32>
    %66 = vector.extract_strided_slice %8 {offsets = [0, 32], sizes = [2, 16], strides = [1, 1]} : vector<2x48xf32> to vector<2x16xf32>
    %67 = vector.extract_strided_slice %44 {offsets = [0, 32], sizes = [2, 16], strides = [1, 1]} : vector<2x48xf32> to vector<2x16xf32>
    %68 = arith.mulf %55, %67 : vector<2x16xf32>
    %69 = arith.addf %66, %68 : vector<2x16xf32>
    %70 = math.tanh %69 : vector<2x16xf32>
    %cst_25 = arith.constant 1.000000e+00 : f32
    %71 = vector.broadcast %cst_25 : f32 to vector<2x16xf32>
    %72 = arith.subf %71, %65 : vector<2x16xf32>
    %73 = arith.mulf %72, %70 : vector<2x16xf32>
    %74 = arith.mulf %65, %45 : vector<2x16xf32>
    %75 = arith.addf %73, %74 : vector<2x16xf32>
    %76 = tpu.concatenate %43, %75 in 1 : vector<2x16xf32>, vector<2x16xf32> -> vector<2x32xf32>
    %c0_26 = arith.constant 0 : index
    %c0_27 = arith.constant 0 : index
    %c0_28 = arith.constant 0 : index
    %c0_29 = arith.constant 0 : index
    %77 = vector.load %arg4[%c0_26, %c0_27, %c0_28, %c0_29] : memref<1x8x2x32xf32, #tpu.memory_space<vmem>>, vector<1x1x2x16xf32>
    %78 = vector.shape_cast %77 : vector<1x1x2x16xf32> to vector<2x16xf32>
    %79 = vector.shape_cast %43 : vector<2x16xf32> to vector<1x1x2x16xf32>
    tpu.vector_store %arg4[%c0_26, %c0_27, %c0_28, %c0_29], %79 {strides = array<i32>} : memref<1x8x2x32xf32, #tpu.memory_space<vmem>>, vector<1x1x2x16xf32>,
    %c0_30 = arith.constant 0 : index
    %c7_31 = arith.constant 7 : index
    %c0_32 = arith.constant 0 : index
    %c16 = arith.constant 16 : index
    %80 = vector.load %arg4[%c0_30, %c7_31, %c0_32, %c16] : memref<1x8x2x32xf32, #tpu.memory_space<vmem>>, vector<1x1x2x16xf32>
    %81 = vector.shape_cast %80 : vector<1x1x2x16xf32> to vector<2x16xf32>
    %82 = vector.shape_cast %75 : vector<2x16xf32> to vector<1x1x2x16xf32>
    tpu.vector_store %arg4[%c0_30, %c7_31, %c0_32, %c16], %82 {strides = array<i32>} : memref<1x8x2x32xf32, #tpu.memory_space<vmem>>, vector<1x1x2x16xf32>,
    %c0_33 = arith.constant 0 : index
    %c1 = arith.constant 1 : index
    %c0_34 = arith.constant 0 : index
    %c0_35 = arith.constant 0 : index
    %83 = vector.load %arg1[%c0_33, %c1, %c0_34, %c0_35] : memref<1x8x2x96xf32, #tpu.memory_space<vmem>>, vector<1x1x2x48xf32>
    %84 = vector.shape_cast %83 : vector<1x1x2x48xf32> to vector<2x48xf32>
    %c0_36 = arith.constant 0 : index
    %c6 = arith.constant 6 : index
    %c0_37 = arith.constant 0 : index
    %c48_38 = arith.constant 48 : index
    %85 = vector.load %arg1[%c0_36, %c6, %c0_37, %c48_38] : memref<1x8x2x96xf32, #tpu.memory_space<vmem>>, vector<1x1x2x48xf32>
    %86 = vector.shape_cast %85 : vector<1x1x2x48xf32> to vector<2x48xf32>
    %cst_39 = arith.constant dense<0.000000e+00> : vector<2x96xf32>
    %87 = tpu.matmul %76, %1, %cst_39 {dimension_numbers = #tpu.dot_dimension_numbers<[1], [0], [0], [1], [0, 0, 1, 1], [], []>} : vector<2x32xf32>, vector<32x96xf32>, vector<2x96xf32> -> vector<2x96xf32>
    %88 = vector.broadcast %3 : vector<1x96xf32> to vector<2x96xf32>
    %89 = arith.addf %87, %88 : vector<2x96xf32>
    %90 = vector.extract_strided_slice %89 {offsets = [0, 0], sizes = [2, 48], strides = [1, 1]} : vector<2x96xf32> to vector<2x48xf32>
    %91 = vector.extract_strided_slice %76 {offsets = [0, 0], sizes = [2, 16], strides = [1, 1]} : vector<2x32xf32> to vector<2x16xf32>
    %92 = vector.extract_strided_slice %84 {offsets = [0, 0], sizes = [2, 16], strides = [1, 1]} : vector<2x48xf32> to vector<2x16xf32>
    %93 = vector.extract_strided_slice %90 {offsets = [0, 0], sizes = [2, 16], strides = [1, 1]} : vector<2x48xf32> to vector<2x16xf32>
    %94 = arith.addf %92, %93 : vector<2x16xf32>
    %cst_40 = arith.constant 0.000000e+00 : f32
    %95 = vector.broadcast %cst_40 : f32 to vector<2x16xf32>
    %96 = arith.subf %95, %94 : vector<2x16xf32>
    %97 = math.exp %96 : vector<2x16xf32>
    %cst_41 = arith.constant 1.000000e+00 : f32
    %98 = vector.broadcast %cst_41 : f32 to vector<2x16xf32>
    %99 = arith.addf %98, %97 : vector<2x16xf32>
    %cst_42 = arith.constant 1.000000e+00 : f32
    %100 = vector.broadcast %cst_42 : f32 to vector<2x16xf32>
    %101 = arith.divf %100, %99 : vector<2x16xf32>
    %102 = vector.extract_strided_slice %84 {offsets = [0, 16], sizes = [2, 16], strides = [1, 1]} : vector<2x48xf32> to vector<2x16xf32>
    %103 = vector.extract_strided_slice %90 {offsets = [0, 16], sizes = [2, 16], strides = [1, 1]} : vector<2x48xf32> to vector<2x16xf32>
    %104 = arith.addf %102, %103 : vector<2x16xf32>
    %cst_43 = arith.constant 0.000000e+00 : f32
    %105 = vector.broadcast %cst_43 : f32 to vector<2x16xf32>
    %106 = arith.subf %105, %104 : vector<2x16xf32>
    %107 = math.exp %106 : vector<2x16xf32>
    %cst_44 = arith.constant 1.000000e+00 : f32
    %108 = vector.broadcast %cst_44 : f32 to vector<2x16xf32>
    %109 = arith.addf %108, %107 : vector<2x16xf32>
    %cst_45 = arith.constant 1.000000e+00 : f32
    %110 = vector.broadcast %cst_45 : f32 to vector<2x16xf32>
    %111 = arith.divf %110, %109 : vector<2x16xf32>
    %112 = vector.extract_strided_slice %84 {offsets = [0, 32], sizes = [2, 16], strides = [1, 1]} : vector<2x48xf32> to vector<2x16xf32>
    %113 = vector.extract_strided_slice %90 {offsets = [0, 32], sizes = [2, 16], strides = [1, 1]} : vector<2x48xf32> to vector<2x16xf32>
    %114 = arith.mulf %101, %113 : vector<2x16xf32>
    %115 = arith.addf %112, %114 : vector<2x16xf32>
    %116 = math.tanh %115 : vector<2x16xf32>
    %cst_46 = arith.constant 1.000000e+00 : f32
    %117 = vector.broadcast %cst_46 : f32 to vector<2x16xf32>
    %118 = arith.subf %117, %111 : vector<2x16xf32>
    %119 = arith.mulf %118, %116 : vector<2x16xf32>
    %120 = arith.mulf %111, %91 : vector<2x16xf32>
    %121 = arith.addf %119, %120 : vector<2x16xf32>
    %122 = vector.extract_strided_slice %89 {offsets = [0, 48], sizes = [2, 48], strides = [1, 1]} : vector<2x96xf32> to vector<2x48xf32>
    %123 = vector.extract_strided_slice %76 {offsets = [0, 16], sizes = [2, 16], strides = [1, 1]} : vector<2x32xf32> to vector<2x16xf32>
    %124 = vector.extract_strided_slice %86 {offsets = [0, 0], sizes = [2, 16], strides = [1, 1]} : vector<2x48xf32> to vector<2x16xf32>
    %125 = vector.extract_strided_slice %122 {offsets = [0, 0], sizes = [2, 16], strides = [1, 1]} : vector<2x48xf32> to vector<2x16xf32>
    %126 = arith.addf %124, %125 : vector<2x16xf32>
    %cst_47 = arith.constant 0.000000e+00 : f32
    %127 = vector.broadcast %cst_47 : f32 to vector<2x16xf32>
    %128 = arith.subf %127, %126 : vector<2x16xf32>
    %129 = math.exp %128 : vector<2x16xf32>
    %cst_48 = arith.constant 1.000000e+00 : f32
    %130 = vector.broadcast %cst_48 : f32 to vector<2x16xf32>
    %131 = arith.addf %130, %129 : vector<2x16xf32>
    %cst_49 = arith.constant 1.000000e+00 : f32
    %132 = vector.broadcast %cst_49 : f32 to vector<2x16xf32>
    %133 = arith.divf %132, %131 : vector<2x16xf32>
    %134 = vector.extract_strided_slice %86 {offsets = [0, 16], sizes = [2, 16], strides = [1, 1]} : vector<2x48xf32> to vector<2x16xf32>
    %135 = vector.extract_strided_slice %122 {offsets = [0, 16], sizes = [2, 16], strides = [1, 1]} : vector<2x48xf32> to vector<2x16xf32>
    %136 = arith.addf %134, %135 : vector<2x16xf32>
    %cst_50 = arith.constant 0.000000e+00 : f32
    %137 = vector.broadcast %cst_50 : f32 to vector<2x16xf32>
    %138 = arith.subf %137, %136 : vector<2x16xf32>
    %139 = math.exp %138 : vector<2x16xf32>
    %cst_51 = arith.constant 1.000000e+00 : f32
    %140 = vector.broadcast %cst_51 : f32 to vector<2x16xf32>
    %141 = arith.addf %140, %139 : vector<2x16xf32>
    %cst_52 = arith.constant 1.000000e+00 : f32
    %142 = vector.broadcast %cst_52 : f32 to vector<2x16xf32>
    %143 = arith.divf %142, %141 : vector<2x16xf32>
    %144 = vector.extract_strided_slice %86 {offsets = [0, 32], sizes = [2, 16], strides = [1, 1]} : vector<2x48xf32> to vector<2x16xf32>
    %145 = vector.extract_strided_slice %122 {offsets = [0, 32], sizes = [2, 16], strides = [1, 1]} : vector<2x48xf32> to vector<2x16xf32>
    %146 = arith.mulf %133, %145 : vector<2x16xf32>
    %147 = arith.addf %144, %146 : vector<2x16xf32>
    %148 = math.tanh %147 : vector<2x16xf32>
    %cst_53 = arith.constant 1.000000e+00 : f32
    %149 = vector.broadcast %cst_53 : f32 to vector<2x16xf32>
    %150 = arith.subf %149, %143 : vector<2x16xf32>
    %151 = arith.mulf %150, %148 : vector<2x16xf32>
    %152 = arith.mulf %143, %123 : vector<2x16xf32>
    %153 = arith.addf %151, %152 : vector<2x16xf32>
    %154 = tpu.concatenate %121, %153 in 1 : vector<2x16xf32>, vector<2x16xf32> -> vector<2x32xf32>
    %c0_54 = arith.constant 0 : index
    %c1_55 = arith.constant 1 : index
    %c0_56 = arith.constant 0 : index
    %c0_57 = arith.constant 0 : index
    %155 = vector.load %arg4[%c0_54, %c1_55, %c0_56, %c0_57] : memref<1x8x2x32xf32, #tpu.memory_space<vmem>>, vector<1x1x2x16xf32>
    %156 = vector.shape_cast %155 : vector<1x1x2x16xf32> to vector<2x16xf32>
    %157 = vector.shape_cast %121 : vector<2x16xf32> to vector<1x1x2x16xf32>
    tpu.vector_store %arg4[%c0_54, %c1_55, %c0_56, %c0_57], %157 {strides = array<i32>} : memref<1x8x2x32xf32, #tpu.memory_space<vmem>>, vector<1x1x2x16xf32>,
    %c0_58 = arith.constant 0 : index
    %c6_59 = arith.constant 6 : index
    %c0_60 = arith.constant 0 : index
    %c16_61 = arith.constant 16 : index
    %158 = vector.load %arg4[%c0_58, %c6_59, %c0_60, %c16_61] : memref<1x8x2x32xf32, #tpu.memory_space<vmem>>, vector<1x1x2x16xf32>
    %159 = vector.shape_cast %158 : vector<1x1x2x16xf32> to vector<2x16xf32>
    %160 = vector.shape_cast %153 : vector<2x16xf32> to vector<1x1x2x16xf32>
    tpu.vector_store %arg4[%c0_58, %c6_59, %c0_60, %c16_61], %160 {strides = array<i32>} : memref<1x8x2x32xf32, #tpu.memory_space<vmem>>, vector<1x1x2x16xf32>,
    %c0_62 = arith.constant 0 : index
    %c2 = arith.constant 2 : index
    %c0_63 = arith.constant 0 : index
    %c0_64 = arith.constant 0 : index
    %161 = vector.load %arg1[%c0_62, %c2, %c0_63, %c0_64] : memref<1x8x2x96xf32, #tpu.memory_space<vmem>>, vector<1x1x2x48xf32>
    %162 = vector.shape_cast %161 : vector<1x1x2x48xf32> to vector<2x48xf32>
    %c0_65 = arith.constant 0 : index
    %c5 = arith.constant 5 : index
    %c0_66 = arith.constant 0 : index
    %c48_67 = arith.constant 48 : index
    %163 = vector.load %arg1[%c0_65, %c5, %c0_66, %c48_67] : memref<1x8x2x96xf32, #tpu.memory_space<vmem>>, vector<1x1x2x48xf32>
    %164 = vector.shape_cast %163 : vector<1x1x2x48xf32> to vector<2x48xf32>
    %cst_68 = arith.constant dense<0.000000e+00> : vector<2x96xf32>
    %165 = tpu.matmul %154, %1, %cst_68 {dimension_numbers = #tpu.dot_dimension_numbers<[1], [0], [0], [1], [0, 0, 1, 1], [], []>} : vector<2x32xf32>, vector<32x96xf32>, vector<2x96xf32> -> vector<2x96xf32>
    %166 = vector.broadcast %3 : vector<1x96xf32> to vector<2x96xf32>
    %167 = arith.addf %165, %166 : vector<2x96xf32>
    %168 = vector.extract_strided_slice %167 {offsets = [0, 0], sizes = [2, 48], strides = [1, 1]} : vector<2x96xf32> to vector<2x48xf32>
    %169 = vector.extract_strided_slice %154 {offsets = [0, 0], sizes = [2, 16], strides = [1, 1]} : vector<2x32xf32> to vector<2x16xf32>
    %170 = vector.extract_strided_slice %162 {offsets = [0, 0], sizes = [2, 16], strides = [1, 1]} : vector<2x48xf32> to vector<2x16xf32>
    %171 = vector.extract_strided_slice %168 {offsets = [0, 0], sizes = [2, 16], strides = [1, 1]} : vector<2x48xf32> to vector<2x16xf32>
    %172 = arith.addf %170, %171 : vector<2x16xf32>
    %cst_69 = arith.constant 0.000000e+00 : f32
    %173 = vector.broadcast %cst_69 : f32 to vector<2x16xf32>
    %174 = arith.subf %173, %172 : vector<2x16xf32>
    %175 = math.exp %174 : vector<2x16xf32>
    %cst_70 = arith.constant 1.000000e+00 : f32
    %176 = vector.broadcast %cst_70 : f32 to vector<2x16xf32>
    %177 = arith.addf %176, %175 : vector<2x16xf32>
    %cst_71 = arith.constant 1.000000e+00 : f32
    %178 = vector.broadcast %cst_71 : f32 to vector<2x16xf32>
    %179 = arith.divf %178, %177 : vector<2x16xf32>
    %180 = vector.extract_strided_slice %162 {offsets = [0, 16], sizes = [2, 16], strides = [1, 1]} : vector<2x48xf32> to vector<2x16xf32>
    %181 = vector.extract_strided_slice %168 {offsets = [0, 16], sizes = [2, 16], strides = [1, 1]} : vector<2x48xf32> to vector<2x16xf32>
    %182 = arith.addf %180, %181 : vector<2x16xf32>
    %cst_72 = arith.constant 0.000000e+00 : f32
    %183 = vector.broadcast %cst_72 : f32 to vector<2x16xf32>
    %184 = arith.subf %183, %182 : vector<2x16xf32>
    %185 = math.exp %184 : vector<2x16xf32>
    %cst_73 = arith.constant 1.000000e+00 : f32
    %186 = vector.broadcast %cst_73 : f32 to vector<2x16xf32>
    %187 = arith.addf %186, %185 : vector<2x16xf32>
    %cst_74 = arith.constant 1.000000e+00 : f32
    %188 = vector.broadcast %cst_74 : f32 to vector<2x16xf32>
    %189 = arith.divf %188, %187 : vector<2x16xf32>
    %190 = vector.extract_strided_slice %162 {offsets = [0, 32], sizes = [2, 16], strides = [1, 1]} : vector<2x48xf32> to vector<2x16xf32>
    %191 = vector.extract_strided_slice %168 {offsets = [0, 32], sizes = [2, 16], strides = [1, 1]} : vector<2x48xf32> to vector<2x16xf32>
    %192 = arith.mulf %179, %191 : vector<2x16xf32>
    %193 = arith.addf %190, %192 : vector<2x16xf32>
    %194 = math.tanh %193 : vector<2x16xf32>
    %cst_75 = arith.constant 1.000000e+00 : f32
    %195 = vector.broadcast %cst_75 : f32 to vector<2x16xf32>
    %196 = arith.subf %195, %189 : vector<2x16xf32>
    %197 = arith.mulf %196, %194 : vector<2x16xf32>
    %198 = arith.mulf %189, %169 : vector<2x16xf32>
    %199 = arith.addf %197, %198 : vector<2x16xf32>
    %200 = vector.extract_strided_slice %167 {offsets = [0, 48], sizes = [2, 48], strides = [1, 1]} : vector<2x96xf32> to vector<2x48xf32>
    %201 = vector.extract_strided_slice %154 {offsets = [0, 16], sizes = [2, 16], strides = [1, 1]} : vector<2x32xf32> to vector<2x16xf32>
    %202 = vector.extract_strided_slice %164 {offsets = [0, 0], sizes = [2, 16], strides = [1, 1]} : vector<2x48xf32> to vector<2x16xf32>
    %203 = vector.extract_strided_slice %200 {offsets = [0, 0], sizes = [2, 16], strides = [1, 1]} : vector<2x48xf32> to vector<2x16xf32>
    %204 = arith.addf %202, %203 : vector<2x16xf32>
    %cst_76 = arith.constant 0.000000e+00 : f32
    %205 = vector.broadcast %cst_76 : f32 to vector<2x16xf32>
    %206 = arith.subf %205, %204 : vector<2x16xf32>
    %207 = math.exp %206 : vector<2x16xf32>
    %cst_77 = arith.constant 1.000000e+00 : f32
    %208 = vector.broadcast %cst_77 : f32 to vector<2x16xf32>
    %209 = arith.addf %208, %207 : vector<2x16xf32>
    %cst_78 = arith.constant 1.000000e+00 : f32
    %210 = vector.broadcast %cst_78 : f32 to vector<2x16xf32>
    %211 = arith.divf %210, %209 : vector<2x16xf32>
    %212 = vector.extract_strided_slice %164 {offsets = [0, 16], sizes = [2, 16], strides = [1, 1]} : vector<2x48xf32> to vector<2x16xf32>
    %213 = vector.extract_strided_slice %200 {offsets = [0, 16], sizes = [2, 16], strides = [1, 1]} : vector<2x48xf32> to vector<2x16xf32>
    %214 = arith.addf %212, %213 : vector<2x16xf32>
    %cst_79 = arith.constant 0.000000e+00 : f32
    %215 = vector.broadcast %cst_79 : f32 to vector<2x16xf32>
    %216 = arith.subf %215, %214 : vector<2x16xf32>
    %217 = math.exp %216 : vector<2x16xf32>
    %cst_80 = arith.constant 1.000000e+00 : f32
    %218 = vector.broadcast %cst_80 : f32 to vector<2x16xf32>
    %219 = arith.addf %218, %217 : vector<2x16xf32>
    %cst_81 = arith.constant 1.000000e+00 : f32
    %220 = vector.broadcast %cst_81 : f32 to vector<2x16xf32>
    %221 = arith.divf %220, %219 : vector<2x16xf32>
    %222 = vector.extract_strided_slice %164 {offsets = [0, 32], sizes = [2, 16], strides = [1, 1]} : vector<2x48xf32> to vector<2x16xf32>
    %223 = vector.extract_strided_slice %200 {offsets = [0, 32], sizes = [2, 16], strides = [1, 1]} : vector<2x48xf32> to vector<2x16xf32>
    %224 = arith.mulf %211, %223 : vector<2x16xf32>
    %225 = arith.addf %222, %224 : vector<2x16xf32>
    %226 = math.tanh %225 : vector<2x16xf32>
    %cst_82 = arith.constant 1.000000e+00 : f32
    %227 = vector.broadcast %cst_82 : f32 to vector<2x16xf32>
    %228 = arith.subf %227, %221 : vector<2x16xf32>
    %229 = arith.mulf %228, %226 : vector<2x16xf32>
    %230 = arith.mulf %221, %201 : vector<2x16xf32>
    %231 = arith.addf %229, %230 : vector<2x16xf32>
    %232 = tpu.concatenate %199, %231 in 1 : vector<2x16xf32>, vector<2x16xf32> -> vector<2x32xf32>
    %c0_83 = arith.constant 0 : index
    %c2_84 = arith.constant 2 : index
    %c0_85 = arith.constant 0 : index
    %c0_86 = arith.constant 0 : index
    %233 = vector.load %arg4[%c0_83, %c2_84, %c0_85, %c0_86] : memref<1x8x2x32xf32, #tpu.memory_space<vmem>>, vector<1x1x2x16xf32>
    %234 = vector.shape_cast %233 : vector<1x1x2x16xf32> to vector<2x16xf32>
    %235 = vector.shape_cast %199 : vector<2x16xf32> to vector<1x1x2x16xf32>
    tpu.vector_store %arg4[%c0_83, %c2_84, %c0_85, %c0_86], %235 {strides = array<i32>} : memref<1x8x2x32xf32, #tpu.memory_space<vmem>>, vector<1x1x2x16xf32>,
    %c0_87 = arith.constant 0 : index
    %c5_88 = arith.constant 5 : index
    %c0_89 = arith.constant 0 : index
    %c16_90 = arith.constant 16 : index
    %236 = vector.load %arg4[%c0_87, %c5_88, %c0_89, %c16_90] : memref<1x8x2x32xf32, #tpu.memory_space<vmem>>, vector<1x1x2x16xf32>
    %237 = vector.shape_cast %236 : vector<1x1x2x16xf32> to vector<2x16xf32>
    %238 = vector.shape_cast %231 : vector<2x16xf32> to vector<1x1x2x16xf32>
    tpu.vector_store %arg4[%c0_87, %c5_88, %c0_89, %c16_90], %238 {strides = array<i32>} : memref<1x8x2x32xf32, #tpu.memory_space<vmem>>, vector<1x1x2x16xf32>,
    %c0_91 = arith.constant 0 : index
    %c3 = arith.constant 3 : index
    %c0_92 = arith.constant 0 : index
    %c0_93 = arith.constant 0 : index
    %239 = vector.load %arg1[%c0_91, %c3, %c0_92, %c0_93] : memref<1x8x2x96xf32, #tpu.memory_space<vmem>>, vector<1x1x2x48xf32>
    %240 = vector.shape_cast %239 : vector<1x1x2x48xf32> to vector<2x48xf32>
    %c0_94 = arith.constant 0 : index
    %c4 = arith.constant 4 : index
    %c0_95 = arith.constant 0 : index
    %c48_96 = arith.constant 48 : index
    %241 = vector.load %arg1[%c0_94, %c4, %c0_95, %c48_96] : memref<1x8x2x96xf32, #tpu.memory_space<vmem>>, vector<1x1x2x48xf32>
    %242 = vector.shape_cast %241 : vector<1x1x2x48xf32> to vector<2x48xf32>
    %cst_97 = arith.constant dense<0.000000e+00> : vector<2x96xf32>
    %243 = tpu.matmul %232, %1, %cst_97 {dimension_numbers = #tpu.dot_dimension_numbers<[1], [0], [0], [1], [0, 0, 1, 1], [], []>} : vector<2x32xf32>, vector<32x96xf32>, vector<2x96xf32> -> vector<2x96xf32>
    %244 = vector.broadcast %3 : vector<1x96xf32> to vector<2x96xf32>
    %245 = arith.addf %243, %244 : vector<2x96xf32>
    %246 = vector.extract_strided_slice %245 {offsets = [0, 0], sizes = [2, 48], strides = [1, 1]} : vector<2x96xf32> to vector<2x48xf32>
    %247 = vector.extract_strided_slice %232 {offsets = [0, 0], sizes = [2, 16], strides = [1, 1]} : vector<2x32xf32> to vector<2x16xf32>
    %248 = vector.extract_strided_slice %240 {offsets = [0, 0], sizes = [2, 16], strides = [1, 1]} : vector<2x48xf32> to vector<2x16xf32>
    %249 = vector.extract_strided_slice %246 {offsets = [0, 0], sizes = [2, 16], strides = [1, 1]} : vector<2x48xf32> to vector<2x16xf32>
    %250 = arith.addf %248, %249 : vector<2x16xf32>
    %cst_98 = arith.constant 0.000000e+00 : f32
    %251 = vector.broadcast %cst_98 : f32 to vector<2x16xf32>
    %252 = arith.subf %251, %250 : vector<2x16xf32>
    %253 = math.exp %252 : vector<2x16xf32>
    %cst_99 = arith.constant 1.000000e+00 : f32
    %254 = vector.broadcast %cst_99 : f32 to vector<2x16xf32>
    %255 = arith.addf %254, %253 : vector<2x16xf32>
    %cst_100 = arith.constant 1.000000e+00 : f32
    %256 = vector.broadcast %cst_100 : f32 to vector<2x16xf32>
    %257 = arith.divf %256, %255 : vector<2x16xf32>
    %258 = vector.extract_strided_slice %240 {offsets = [0, 16], sizes = [2, 16], strides = [1, 1]} : vector<2x48xf32> to vector<2x16xf32>
    %259 = vector.extract_strided_slice %246 {offsets = [0, 16], sizes = [2, 16], strides = [1, 1]} : vector<2x48xf32> to vector<2x16xf32>
    %260 = arith.addf %258, %259 : vector<2x16xf32>
    %cst_101 = arith.constant 0.000000e+00 : f32
    %261 = vector.broadcast %cst_101 : f32 to vector<2x16xf32>
    %262 = arith.subf %261, %260 : vector<2x16xf32>
    %263 = math.exp %262 : vector<2x16xf32>
    %cst_102 = arith.constant 1.000000e+00 : f32
    %264 = vector.broadcast %cst_102 : f32 to vector<2x16xf32>
    %265 = arith.addf %264, %263 : vector<2x16xf32>
    %cst_103 = arith.constant 1.000000e+00 : f32
    %266 = vector.broadcast %cst_103 : f32 to vector<2x16xf32>
    %267 = arith.divf %266, %265 : vector<2x16xf32>
    %268 = vector.extract_strided_slice %240 {offsets = [0, 32], sizes = [2, 16], strides = [1, 1]} : vector<2x48xf32> to vector<2x16xf32>
    %269 = vector.extract_strided_slice %246 {offsets = [0, 32], sizes = [2, 16], strides = [1, 1]} : vector<2x48xf32> to vector<2x16xf32>
    %270 = arith.mulf %257, %269 : vector<2x16xf32>
    %271 = arith.addf %268, %270 : vector<2x16xf32>
    %272 = math.tanh %271 : vector<2x16xf32>
    %cst_104 = arith.constant 1.000000e+00 : f32
    %273 = vector.broadcast %cst_104 : f32 to vector<2x16xf32>
    %274 = arith.subf %273, %267 : vector<2x16xf32>
    %275 = arith.mulf %274, %272 : vector<2x16xf32>
    %276 = arith.mulf %267, %247 : vector<2x16xf32>
    %277 = arith.addf %275, %276 : vector<2x16xf32>
    %278 = vector.extract_strided_slice %245 {offsets = [0, 48], sizes = [2, 48], strides = [1, 1]} : vector<2x96xf32> to vector<2x48xf32>
    %279 = vector.extract_strided_slice %232 {offsets = [0, 16], sizes = [2, 16], strides = [1, 1]} : vector<2x32xf32> to vector<2x16xf32>
    %280 = vector.extract_strided_slice %242 {offsets = [0, 0], sizes = [2, 16], strides = [1, 1]} : vector<2x48xf32> to vector<2x16xf32>
    %281 = vector.extract_strided_slice %278 {offsets = [0, 0], sizes = [2, 16], strides = [1, 1]} : vector<2x48xf32> to vector<2x16xf32>
    %282 = arith.addf %280, %281 : vector<2x16xf32>
    %cst_105 = arith.constant 0.000000e+00 : f32
    %283 = vector.broadcast %cst_105 : f32 to vector<2x16xf32>
    %284 = arith.subf %283, %282 : vector<2x16xf32>
    %285 = math.exp %284 : vector<2x16xf32>
    %cst_106 = arith.constant 1.000000e+00 : f32
    %286 = vector.broadcast %cst_106 : f32 to vector<2x16xf32>
    %287 = arith.addf %286, %285 : vector<2x16xf32>
    %cst_107 = arith.constant 1.000000e+00 : f32
    %288 = vector.broadcast %cst_107 : f32 to vector<2x16xf32>
    %289 = arith.divf %288, %287 : vector<2x16xf32>
    %290 = vector.extract_strided_slice %242 {offsets = [0, 16], sizes = [2, 16], strides = [1, 1]} : vector<2x48xf32> to vector<2x16xf32>
    %291 = vector.extract_strided_slice %278 {offsets = [0, 16], sizes = [2, 16], strides = [1, 1]} : vector<2x48xf32> to vector<2x16xf32>
    %292 = arith.addf %290, %291 : vector<2x16xf32>
    %cst_108 = arith.constant 0.000000e+00 : f32
    %293 = vector.broadcast %cst_108 : f32 to vector<2x16xf32>
    %294 = arith.subf %293, %292 : vector<2x16xf32>
    %295 = math.exp %294 : vector<2x16xf32>
    %cst_109 = arith.constant 1.000000e+00 : f32
    %296 = vector.broadcast %cst_109 : f32 to vector<2x16xf32>
    %297 = arith.addf %296, %295 : vector<2x16xf32>
    %cst_110 = arith.constant 1.000000e+00 : f32
    %298 = vector.broadcast %cst_110 : f32 to vector<2x16xf32>
    %299 = arith.divf %298, %297 : vector<2x16xf32>
    %300 = vector.extract_strided_slice %242 {offsets = [0, 32], sizes = [2, 16], strides = [1, 1]} : vector<2x48xf32> to vector<2x16xf32>
    %301 = vector.extract_strided_slice %278 {offsets = [0, 32], sizes = [2, 16], strides = [1, 1]} : vector<2x48xf32> to vector<2x16xf32>
    %302 = arith.mulf %289, %301 : vector<2x16xf32>
    %303 = arith.addf %300, %302 : vector<2x16xf32>
    %304 = math.tanh %303 : vector<2x16xf32>
    %cst_111 = arith.constant 1.000000e+00 : f32
    %305 = vector.broadcast %cst_111 : f32 to vector<2x16xf32>
    %306 = arith.subf %305, %299 : vector<2x16xf32>
    %307 = arith.mulf %306, %304 : vector<2x16xf32>
    %308 = arith.mulf %299, %279 : vector<2x16xf32>
    %309 = arith.addf %307, %308 : vector<2x16xf32>
    %310 = tpu.concatenate %277, %309 in 1 : vector<2x16xf32>, vector<2x16xf32> -> vector<2x32xf32>
    %c0_112 = arith.constant 0 : index
    %c3_113 = arith.constant 3 : index
    %c0_114 = arith.constant 0 : index
    %c0_115 = arith.constant 0 : index
    %311 = vector.load %arg4[%c0_112, %c3_113, %c0_114, %c0_115] : memref<1x8x2x32xf32, #tpu.memory_space<vmem>>, vector<1x1x2x16xf32>
    %312 = vector.shape_cast %311 : vector<1x1x2x16xf32> to vector<2x16xf32>
    %313 = vector.shape_cast %277 : vector<2x16xf32> to vector<1x1x2x16xf32>
    tpu.vector_store %arg4[%c0_112, %c3_113, %c0_114, %c0_115], %313 {strides = array<i32>} : memref<1x8x2x32xf32, #tpu.memory_space<vmem>>, vector<1x1x2x16xf32>,
    %c0_116 = arith.constant 0 : index
    %c4_117 = arith.constant 4 : index
    %c0_118 = arith.constant 0 : index
    %c16_119 = arith.constant 16 : index
    %314 = vector.load %arg4[%c0_116, %c4_117, %c0_118, %c16_119] : memref<1x8x2x32xf32, #tpu.memory_space<vmem>>, vector<1x1x2x16xf32>
    %315 = vector.shape_cast %314 : vector<1x1x2x16xf32> to vector<2x16xf32>
    %316 = vector.shape_cast %309 : vector<2x16xf32> to vector<1x1x2x16xf32>
    tpu.vector_store %arg4[%c0_116, %c4_117, %c0_118, %c16_119], %316 {strides = array<i32>} : memref<1x8x2x32xf32, #tpu.memory_space<vmem>>, vector<1x1x2x16xf32>,
    %c0_120 = arith.constant 0 : index
    %c4_121 = arith.constant 4 : index
    %c0_122 = arith.constant 0 : index
    %c0_123 = arith.constant 0 : index
    %317 = vector.load %arg1[%c0_120, %c4_121, %c0_122, %c0_123] : memref<1x8x2x96xf32, #tpu.memory_space<vmem>>, vector<1x1x2x48xf32>
    %318 = vector.shape_cast %317 : vector<1x1x2x48xf32> to vector<2x48xf32>
    %c0_124 = arith.constant 0 : index
    %c3_125 = arith.constant 3 : index
    %c0_126 = arith.constant 0 : index
    %c48_127 = arith.constant 48 : index
    %319 = vector.load %arg1[%c0_124, %c3_125, %c0_126, %c48_127] : memref<1x8x2x96xf32, #tpu.memory_space<vmem>>, vector<1x1x2x48xf32>
    %320 = vector.shape_cast %319 : vector<1x1x2x48xf32> to vector<2x48xf32>
    %cst_128 = arith.constant dense<0.000000e+00> : vector<2x96xf32>
    %321 = tpu.matmul %310, %1, %cst_128 {dimension_numbers = #tpu.dot_dimension_numbers<[1], [0], [0], [1], [0, 0, 1, 1], [], []>} : vector<2x32xf32>, vector<32x96xf32>, vector<2x96xf32> -> vector<2x96xf32>
    %322 = vector.broadcast %3 : vector<1x96xf32> to vector<2x96xf32>
    %323 = arith.addf %321, %322 : vector<2x96xf32>
    %324 = vector.extract_strided_slice %323 {offsets = [0, 0], sizes = [2, 48], strides = [1, 1]} : vector<2x96xf32> to vector<2x48xf32>
    %325 = vector.extract_strided_slice %310 {offsets = [0, 0], sizes = [2, 16], strides = [1, 1]} : vector<2x32xf32> to vector<2x16xf32>
    %326 = vector.extract_strided_slice %318 {offsets = [0, 0], sizes = [2, 16], strides = [1, 1]} : vector<2x48xf32> to vector<2x16xf32>
    %327 = vector.extract_strided_slice %324 {offsets = [0, 0], sizes = [2, 16], strides = [1, 1]} : vector<2x48xf32> to vector<2x16xf32>
    %328 = arith.addf %326, %327 : vector<2x16xf32>
    %cst_129 = arith.constant 0.000000e+00 : f32
    %329 = vector.broadcast %cst_129 : f32 to vector<2x16xf32>
    %330 = arith.subf %329, %328 : vector<2x16xf32>
    %331 = math.exp %330 : vector<2x16xf32>
    %cst_130 = arith.constant 1.000000e+00 : f32
    %332 = vector.broadcast %cst_130 : f32 to vector<2x16xf32>
    %333 = arith.addf %332, %331 : vector<2x16xf32>
    %cst_131 = arith.constant 1.000000e+00 : f32
    %334 = vector.broadcast %cst_131 : f32 to vector<2x16xf32>
    %335 = arith.divf %334, %333 : vector<2x16xf32>
    %336 = vector.extract_strided_slice %318 {offsets = [0, 16], sizes = [2, 16], strides = [1, 1]} : vector<2x48xf32> to vector<2x16xf32>
    %337 = vector.extract_strided_slice %324 {offsets = [0, 16], sizes = [2, 16], strides = [1, 1]} : vector<2x48xf32> to vector<2x16xf32>
    %338 = arith.addf %336, %337 : vector<2x16xf32>
    %cst_132 = arith.constant 0.000000e+00 : f32
    %339 = vector.broadcast %cst_132 : f32 to vector<2x16xf32>
    %340 = arith.subf %339, %338 : vector<2x16xf32>
    %341 = math.exp %340 : vector<2x16xf32>
    %cst_133 = arith.constant 1.000000e+00 : f32
    %342 = vector.broadcast %cst_133 : f32 to vector<2x16xf32>
    %343 = arith.addf %342, %341 : vector<2x16xf32>
    %cst_134 = arith.constant 1.000000e+00 : f32
    %344 = vector.broadcast %cst_134 : f32 to vector<2x16xf32>
    %345 = arith.divf %344, %343 : vector<2x16xf32>
    %346 = vector.extract_strided_slice %318 {offsets = [0, 32], sizes = [2, 16], strides = [1, 1]} : vector<2x48xf32> to vector<2x16xf32>
    %347 = vector.extract_strided_slice %324 {offsets = [0, 32], sizes = [2, 16], strides = [1, 1]} : vector<2x48xf32> to vector<2x16xf32>
    %348 = arith.mulf %335, %347 : vector<2x16xf32>
    %349 = arith.addf %346, %348 : vector<2x16xf32>
    %350 = math.tanh %349 : vector<2x16xf32>
    %cst_135 = arith.constant 1.000000e+00 : f32
    %351 = vector.broadcast %cst_135 : f32 to vector<2x16xf32>
    %352 = arith.subf %351, %345 : vector<2x16xf32>
    %353 = arith.mulf %352, %350 : vector<2x16xf32>
    %354 = arith.mulf %345, %325 : vector<2x16xf32>
    %355 = arith.addf %353, %354 : vector<2x16xf32>
    %356 = vector.extract_strided_slice %323 {offsets = [0, 48], sizes = [2, 48], strides = [1, 1]} : vector<2x96xf32> to vector<2x48xf32>
    %357 = vector.extract_strided_slice %310 {offsets = [0, 16], sizes = [2, 16], strides = [1, 1]} : vector<2x32xf32> to vector<2x16xf32>
    %358 = vector.extract_strided_slice %320 {offsets = [0, 0], sizes = [2, 16], strides = [1, 1]} : vector<2x48xf32> to vector<2x16xf32>
    %359 = vector.extract_strided_slice %356 {offsets = [0, 0], sizes = [2, 16], strides = [1, 1]} : vector<2x48xf32> to vector<2x16xf32>
    %360 = arith.addf %358, %359 : vector<2x16xf32>
    %cst_136 = arith.constant 0.000000e+00 : f32
    %361 = vector.broadcast %cst_136 : f32 to vector<2x16xf32>
    %362 = arith.subf %361, %360 : vector<2x16xf32>
    %363 = math.exp %362 : vector<2x16xf32>
    %cst_137 = arith.constant 1.000000e+00 : f32
    %364 = vector.broadcast %cst_137 : f32 to vector<2x16xf32>
    %365 = arith.addf %364, %363 : vector<2x16xf32>
    %cst_138 = arith.constant 1.000000e+00 : f32
    %366 = vector.broadcast %cst_138 : f32 to vector<2x16xf32>
    %367 = arith.divf %366, %365 : vector<2x16xf32>
    %368 = vector.extract_strided_slice %320 {offsets = [0, 16], sizes = [2, 16], strides = [1, 1]} : vector<2x48xf32> to vector<2x16xf32>
    %369 = vector.extract_strided_slice %356 {offsets = [0, 16], sizes = [2, 16], strides = [1, 1]} : vector<2x48xf32> to vector<2x16xf32>
    %370 = arith.addf %368, %369 : vector<2x16xf32>
    %cst_139 = arith.constant 0.000000e+00 : f32
    %371 = vector.broadcast %cst_139 : f32 to vector<2x16xf32>
    %372 = arith.subf %371, %370 : vector<2x16xf32>
    %373 = math.exp %372 : vector<2x16xf32>
    %cst_140 = arith.constant 1.000000e+00 : f32
    %374 = vector.broadcast %cst_140 : f32 to vector<2x16xf32>
    %375 = arith.addf %374, %373 : vector<2x16xf32>
    %cst_141 = arith.constant 1.000000e+00 : f32
    %376 = vector.broadcast %cst_141 : f32 to vector<2x16xf32>
    %377 = arith.divf %376, %375 : vector<2x16xf32>
    %378 = vector.extract_strided_slice %320 {offsets = [0, 32], sizes = [2, 16], strides = [1, 1]} : vector<2x48xf32> to vector<2x16xf32>
    %379 = vector.extract_strided_slice %356 {offsets = [0, 32], sizes = [2, 16], strides = [1, 1]} : vector<2x48xf32> to vector<2x16xf32>
    %380 = arith.mulf %367, %379 : vector<2x16xf32>
    %381 = arith.addf %378, %380 : vector<2x16xf32>
    %382 = math.tanh %381 : vector<2x16xf32>
    %cst_142 = arith.constant 1.000000e+00 : f32
    %383 = vector.broadcast %cst_142 : f32 to vector<2x16xf32>
    %384 = arith.subf %383, %377 : vector<2x16xf32>
    %385 = arith.mulf %384, %382 : vector<2x16xf32>
    %386 = arith.mulf %377, %357 : vector<2x16xf32>
    %387 = arith.addf %385, %386 : vector<2x16xf32>
    %388 = tpu.concatenate %355, %387 in 1 : vector<2x16xf32>, vector<2x16xf32> -> vector<2x32xf32>
    %c0_143 = arith.constant 0 : index
    %c4_144 = arith.constant 4 : index
    %c0_145 = arith.constant 0 : index
    %c0_146 = arith.constant 0 : index
    %389 = vector.load %arg4[%c0_143, %c4_144, %c0_145, %c0_146] : memref<1x8x2x32xf32, #tpu.memory_space<vmem>>, vector<1x1x2x16xf32>
    %390 = vector.shape_cast %389 : vector<1x1x2x16xf32> to vector<2x16xf32>
    %391 = vector.shape_cast %355 : vector<2x16xf32> to vector<1x1x2x16xf32>
    tpu.vector_store %arg4[%c0_143, %c4_144, %c0_145, %c0_146], %391 {strides = array<i32>} : memref<1x8x2x32xf32, #tpu.memory_space<vmem>>, vector<1x1x2x16xf32>,
    %c0_147 = arith.constant 0 : index
    %c3_148 = arith.constant 3 : index
    %c0_149 = arith.constant 0 : index
    %c16_150 = arith.constant 16 : index
    %392 = vector.load %arg4[%c0_147, %c3_148, %c0_149, %c16_150] : memref<1x8x2x32xf32, #tpu.memory_space<vmem>>, vector<1x1x2x16xf32>
    %393 = vector.shape_cast %392 : vector<1x1x2x16xf32> to vector<2x16xf32>
    %394 = vector.shape_cast %387 : vector<2x16xf32> to vector<1x1x2x16xf32>
    tpu.vector_store %arg4[%c0_147, %c3_148, %c0_149, %c16_150], %394 {strides = array<i32>} : memref<1x8x2x32xf32, #tpu.memory_space<vmem>>, vector<1x1x2x16xf32>,
    %c0_151 = arith.constant 0 : index
    %c5_152 = arith.constant 5 : index
    %c0_153 = arith.constant 0 : index
    %c0_154 = arith.constant 0 : index
    %395 = vector.load %arg1[%c0_151, %c5_152, %c0_153, %c0_154] : memref<1x8x2x96xf32, #tpu.memory_space<vmem>>, vector<1x1x2x48xf32>
    %396 = vector.shape_cast %395 : vector<1x1x2x48xf32> to vector<2x48xf32>
    %c0_155 = arith.constant 0 : index
    %c2_156 = arith.constant 2 : index
    %c0_157 = arith.constant 0 : index
    %c48_158 = arith.constant 48 : index
    %397 = vector.load %arg1[%c0_155, %c2_156, %c0_157, %c48_158] : memref<1x8x2x96xf32, #tpu.memory_space<vmem>>, vector<1x1x2x48xf32>
    %398 = vector.shape_cast %397 : vector<1x1x2x48xf32> to vector<2x48xf32>
    %cst_159 = arith.constant dense<0.000000e+00> : vector<2x96xf32>
    %399 = tpu.matmul %388, %1, %cst_159 {dimension_numbers = #tpu.dot_dimension_numbers<[1], [0], [0], [1], [0, 0, 1, 1], [], []>} : vector<2x32xf32>, vector<32x96xf32>, vector<2x96xf32> -> vector<2x96xf32>
    %400 = vector.broadcast %3 : vector<1x96xf32> to vector<2x96xf32>
    %401 = arith.addf %399, %400 : vector<2x96xf32>
    %402 = vector.extract_strided_slice %401 {offsets = [0, 0], sizes = [2, 48], strides = [1, 1]} : vector<2x96xf32> to vector<2x48xf32>
    %403 = vector.extract_strided_slice %388 {offsets = [0, 0], sizes = [2, 16], strides = [1, 1]} : vector<2x32xf32> to vector<2x16xf32>
    %404 = vector.extract_strided_slice %396 {offsets = [0, 0], sizes = [2, 16], strides = [1, 1]} : vector<2x48xf32> to vector<2x16xf32>
    %405 = vector.extract_strided_slice %402 {offsets = [0, 0], sizes = [2, 16], strides = [1, 1]} : vector<2x48xf32> to vector<2x16xf32>
    %406 = arith.addf %404, %405 : vector<2x16xf32>
    %cst_160 = arith.constant 0.000000e+00 : f32
    %407 = vector.broadcast %cst_160 : f32 to vector<2x16xf32>
    %408 = arith.subf %407, %406 : vector<2x16xf32>
    %409 = math.exp %408 : vector<2x16xf32>
    %cst_161 = arith.constant 1.000000e+00 : f32
    %410 = vector.broadcast %cst_161 : f32 to vector<2x16xf32>
    %411 = arith.addf %410, %409 : vector<2x16xf32>
    %cst_162 = arith.constant 1.000000e+00 : f32
    %412 = vector.broadcast %cst_162 : f32 to vector<2x16xf32>
    %413 = arith.divf %412, %411 : vector<2x16xf32>
    %414 = vector.extract_strided_slice %396 {offsets = [0, 16], sizes = [2, 16], strides = [1, 1]} : vector<2x48xf32> to vector<2x16xf32>
    %415 = vector.extract_strided_slice %402 {offsets = [0, 16], sizes = [2, 16], strides = [1, 1]} : vector<2x48xf32> to vector<2x16xf32>
    %416 = arith.addf %414, %415 : vector<2x16xf32>
    %cst_163 = arith.constant 0.000000e+00 : f32
    %417 = vector.broadcast %cst_163 : f32 to vector<2x16xf32>
    %418 = arith.subf %417, %416 : vector<2x16xf32>
    %419 = math.exp %418 : vector<2x16xf32>
    %cst_164 = arith.constant 1.000000e+00 : f32
    %420 = vector.broadcast %cst_164 : f32 to vector<2x16xf32>
    %421 = arith.addf %420, %419 : vector<2x16xf32>
    %cst_165 = arith.constant 1.000000e+00 : f32
    %422 = vector.broadcast %cst_165 : f32 to vector<2x16xf32>
    %423 = arith.divf %422, %421 : vector<2x16xf32>
    %424 = vector.extract_strided_slice %396 {offsets = [0, 32], sizes = [2, 16], strides = [1, 1]} : vector<2x48xf32> to vector<2x16xf32>
    %425 = vector.extract_strided_slice %402 {offsets = [0, 32], sizes = [2, 16], strides = [1, 1]} : vector<2x48xf32> to vector<2x16xf32>
    %426 = arith.mulf %413, %425 : vector<2x16xf32>
    %427 = arith.addf %424, %426 : vector<2x16xf32>
    %428 = math.tanh %427 : vector<2x16xf32>
    %cst_166 = arith.constant 1.000000e+00 : f32
    %429 = vector.broadcast %cst_166 : f32 to vector<2x16xf32>
    %430 = arith.subf %429, %423 : vector<2x16xf32>
    %431 = arith.mulf %430, %428 : vector<2x16xf32>
    %432 = arith.mulf %423, %403 : vector<2x16xf32>
    %433 = arith.addf %431, %432 : vector<2x16xf32>
    %434 = vector.extract_strided_slice %401 {offsets = [0, 48], sizes = [2, 48], strides = [1, 1]} : vector<2x96xf32> to vector<2x48xf32>
    %435 = vector.extract_strided_slice %388 {offsets = [0, 16], sizes = [2, 16], strides = [1, 1]} : vector<2x32xf32> to vector<2x16xf32>
    %436 = vector.extract_strided_slice %398 {offsets = [0, 0], sizes = [2, 16], strides = [1, 1]} : vector<2x48xf32> to vector<2x16xf32>
    %437 = vector.extract_strided_slice %434 {offsets = [0, 0], sizes = [2, 16], strides = [1, 1]} : vector<2x48xf32> to vector<2x16xf32>
    %438 = arith.addf %436, %437 : vector<2x16xf32>
    %cst_167 = arith.constant 0.000000e+00 : f32
    %439 = vector.broadcast %cst_167 : f32 to vector<2x16xf32>
    %440 = arith.subf %439, %438 : vector<2x16xf32>
    %441 = math.exp %440 : vector<2x16xf32>
    %cst_168 = arith.constant 1.000000e+00 : f32
    %442 = vector.broadcast %cst_168 : f32 to vector<2x16xf32>
    %443 = arith.addf %442, %441 : vector<2x16xf32>
    %cst_169 = arith.constant 1.000000e+00 : f32
    %444 = vector.broadcast %cst_169 : f32 to vector<2x16xf32>
    %445 = arith.divf %444, %443 : vector<2x16xf32>
    %446 = vector.extract_strided_slice %398 {offsets = [0, 16], sizes = [2, 16], strides = [1, 1]} : vector<2x48xf32> to vector<2x16xf32>
    %447 = vector.extract_strided_slice %434 {offsets = [0, 16], sizes = [2, 16], strides = [1, 1]} : vector<2x48xf32> to vector<2x16xf32>
    %448 = arith.addf %446, %447 : vector<2x16xf32>
    %cst_170 = arith.constant 0.000000e+00 : f32
    %449 = vector.broadcast %cst_170 : f32 to vector<2x16xf32>
    %450 = arith.subf %449, %448 : vector<2x16xf32>
    %451 = math.exp %450 : vector<2x16xf32>
    %cst_171 = arith.constant 1.000000e+00 : f32
    %452 = vector.broadcast %cst_171 : f32 to vector<2x16xf32>
    %453 = arith.addf %452, %451 : vector<2x16xf32>
    %cst_172 = arith.constant 1.000000e+00 : f32
    %454 = vector.broadcast %cst_172 : f32 to vector<2x16xf32>
    %455 = arith.divf %454, %453 : vector<2x16xf32>
    %456 = vector.extract_strided_slice %398 {offsets = [0, 32], sizes = [2, 16], strides = [1, 1]} : vector<2x48xf32> to vector<2x16xf32>
    %457 = vector.extract_strided_slice %434 {offsets = [0, 32], sizes = [2, 16], strides = [1, 1]} : vector<2x48xf32> to vector<2x16xf32>
    %458 = arith.mulf %445, %457 : vector<2x16xf32>
    %459 = arith.addf %456, %458 : vector<2x16xf32>
    %460 = math.tanh %459 : vector<2x16xf32>
    %cst_173 = arith.constant 1.000000e+00 : f32
    %461 = vector.broadcast %cst_173 : f32 to vector<2x16xf32>
    %462 = arith.subf %461, %455 : vector<2x16xf32>
    %463 = arith.mulf %462, %460 : vector<2x16xf32>
    %464 = arith.mulf %455, %435 : vector<2x16xf32>
    %465 = arith.addf %463, %464 : vector<2x16xf32>
    %466 = tpu.concatenate %433, %465 in 1 : vector<2x16xf32>, vector<2x16xf32> -> vector<2x32xf32>
    %c0_174 = arith.constant 0 : index
    %c5_175 = arith.constant 5 : index
    %c0_176 = arith.constant 0 : index
    %c0_177 = arith.constant 0 : index
    %467 = vector.load %arg4[%c0_174, %c5_175, %c0_176, %c0_177] : memref<1x8x2x32xf32, #tpu.memory_space<vmem>>, vector<1x1x2x16xf32>
    %468 = vector.shape_cast %467 : vector<1x1x2x16xf32> to vector<2x16xf32>
    %469 = vector.shape_cast %433 : vector<2x16xf32> to vector<1x1x2x16xf32>
    tpu.vector_store %arg4[%c0_174, %c5_175, %c0_176, %c0_177], %469 {strides = array<i32>} : memref<1x8x2x32xf32, #tpu.memory_space<vmem>>, vector<1x1x2x16xf32>,
    %c0_178 = arith.constant 0 : index
    %c2_179 = arith.constant 2 : index
    %c0_180 = arith.constant 0 : index
    %c16_181 = arith.constant 16 : index
    %470 = vector.load %arg4[%c0_178, %c2_179, %c0_180, %c16_181] : memref<1x8x2x32xf32, #tpu.memory_space<vmem>>, vector<1x1x2x16xf32>
    %471 = vector.shape_cast %470 : vector<1x1x2x16xf32> to vector<2x16xf32>
    %472 = vector.shape_cast %465 : vector<2x16xf32> to vector<1x1x2x16xf32>
    tpu.vector_store %arg4[%c0_178, %c2_179, %c0_180, %c16_181], %472 {strides = array<i32>} : memref<1x8x2x32xf32, #tpu.memory_space<vmem>>, vector<1x1x2x16xf32>,
    %c0_182 = arith.constant 0 : index
    %c6_183 = arith.constant 6 : index
    %c0_184 = arith.constant 0 : index
    %c0_185 = arith.constant 0 : index
    %473 = vector.load %arg1[%c0_182, %c6_183, %c0_184, %c0_185] : memref<1x8x2x96xf32, #tpu.memory_space<vmem>>, vector<1x1x2x48xf32>
    %474 = vector.shape_cast %473 : vector<1x1x2x48xf32> to vector<2x48xf32>
    %c0_186 = arith.constant 0 : index
    %c1_187 = arith.constant 1 : index
    %c0_188 = arith.constant 0 : index
    %c48_189 = arith.constant 48 : index
    %475 = vector.load %arg1[%c0_186, %c1_187, %c0_188, %c48_189] : memref<1x8x2x96xf32, #tpu.memory_space<vmem>>, vector<1x1x2x48xf32>
    %476 = vector.shape_cast %475 : vector<1x1x2x48xf32> to vector<2x48xf32>
    %cst_190 = arith.constant dense<0.000000e+00> : vector<2x96xf32>
    %477 = tpu.matmul %466, %1, %cst_190 {dimension_numbers = #tpu.dot_dimension_numbers<[1], [0], [0], [1], [0, 0, 1, 1], [], []>} : vector<2x32xf32>, vector<32x96xf32>, vector<2x96xf32> -> vector<2x96xf32>
    %478 = vector.broadcast %3 : vector<1x96xf32> to vector<2x96xf32>
    %479 = arith.addf %477, %478 : vector<2x96xf32>
    %480 = vector.extract_strided_slice %479 {offsets = [0, 0], sizes = [2, 48], strides = [1, 1]} : vector<2x96xf32> to vector<2x48xf32>
    %481 = vector.extract_strided_slice %466 {offsets = [0, 0], sizes = [2, 16], strides = [1, 1]} : vector<2x32xf32> to vector<2x16xf32>
    %482 = vector.extract_strided_slice %474 {offsets = [0, 0], sizes = [2, 16], strides = [1, 1]} : vector<2x48xf32> to vector<2x16xf32>
    %483 = vector.extract_strided_slice %480 {offsets = [0, 0], sizes = [2, 16], strides = [1, 1]} : vector<2x48xf32> to vector<2x16xf32>
    %484 = arith.addf %482, %483 : vector<2x16xf32>
    %cst_191 = arith.constant 0.000000e+00 : f32
    %485 = vector.broadcast %cst_191 : f32 to vector<2x16xf32>
    %486 = arith.subf %485, %484 : vector<2x16xf32>
    %487 = math.exp %486 : vector<2x16xf32>
    %cst_192 = arith.constant 1.000000e+00 : f32
    %488 = vector.broadcast %cst_192 : f32 to vector<2x16xf32>
    %489 = arith.addf %488, %487 : vector<2x16xf32>
    %cst_193 = arith.constant 1.000000e+00 : f32
    %490 = vector.broadcast %cst_193 : f32 to vector<2x16xf32>
    %491 = arith.divf %490, %489 : vector<2x16xf32>
    %492 = vector.extract_strided_slice %474 {offsets = [0, 16], sizes = [2, 16], strides = [1, 1]} : vector<2x48xf32> to vector<2x16xf32>
    %493 = vector.extract_strided_slice %480 {offsets = [0, 16], sizes = [2, 16], strides = [1, 1]} : vector<2x48xf32> to vector<2x16xf32>
    %494 = arith.addf %492, %493 : vector<2x16xf32>
    %cst_194 = arith.constant 0.000000e+00 : f32
    %495 = vector.broadcast %cst_194 : f32 to vector<2x16xf32>
    %496 = arith.subf %495, %494 : vector<2x16xf32>
    %497 = math.exp %496 : vector<2x16xf32>
    %cst_195 = arith.constant 1.000000e+00 : f32
    %498 = vector.broadcast %cst_195 : f32 to vector<2x16xf32>
    %499 = arith.addf %498, %497 : vector<2x16xf32>
    %cst_196 = arith.constant 1.000000e+00 : f32
    %500 = vector.broadcast %cst_196 : f32 to vector<2x16xf32>
    %501 = arith.divf %500, %499 : vector<2x16xf32>
    %502 = vector.extract_strided_slice %474 {offsets = [0, 32], sizes = [2, 16], strides = [1, 1]} : vector<2x48xf32> to vector<2x16xf32>
    %503 = vector.extract_strided_slice %480 {offsets = [0, 32], sizes = [2, 16], strides = [1, 1]} : vector<2x48xf32> to vector<2x16xf32>
    %504 = arith.mulf %491, %503 : vector<2x16xf32>
    %505 = arith.addf %502, %504 : vector<2x16xf32>
    %506 = math.tanh %505 : vector<2x16xf32>
    %cst_197 = arith.constant 1.000000e+00 : f32
    %507 = vector.broadcast %cst_197 : f32 to vector<2x16xf32>
    %508 = arith.subf %507, %501 : vector<2x16xf32>
    %509 = arith.mulf %508, %506 : vector<2x16xf32>
    %510 = arith.mulf %501, %481 : vector<2x16xf32>
    %511 = arith.addf %509, %510 : vector<2x16xf32>
    %512 = vector.extract_strided_slice %479 {offsets = [0, 48], sizes = [2, 48], strides = [1, 1]} : vector<2x96xf32> to vector<2x48xf32>
    %513 = vector.extract_strided_slice %466 {offsets = [0, 16], sizes = [2, 16], strides = [1, 1]} : vector<2x32xf32> to vector<2x16xf32>
    %514 = vector.extract_strided_slice %476 {offsets = [0, 0], sizes = [2, 16], strides = [1, 1]} : vector<2x48xf32> to vector<2x16xf32>
    %515 = vector.extract_strided_slice %512 {offsets = [0, 0], sizes = [2, 16], strides = [1, 1]} : vector<2x48xf32> to vector<2x16xf32>
    %516 = arith.addf %514, %515 : vector<2x16xf32>
    %cst_198 = arith.constant 0.000000e+00 : f32
    %517 = vector.broadcast %cst_198 : f32 to vector<2x16xf32>
    %518 = arith.subf %517, %516 : vector<2x16xf32>
    %519 = math.exp %518 : vector<2x16xf32>
    %cst_199 = arith.constant 1.000000e+00 : f32
    %520 = vector.broadcast %cst_199 : f32 to vector<2x16xf32>
    %521 = arith.addf %520, %519 : vector<2x16xf32>
    %cst_200 = arith.constant 1.000000e+00 : f32
    %522 = vector.broadcast %cst_200 : f32 to vector<2x16xf32>
    %523 = arith.divf %522, %521 : vector<2x16xf32>
    %524 = vector.extract_strided_slice %476 {offsets = [0, 16], sizes = [2, 16], strides = [1, 1]} : vector<2x48xf32> to vector<2x16xf32>
    %525 = vector.extract_strided_slice %512 {offsets = [0, 16], sizes = [2, 16], strides = [1, 1]} : vector<2x48xf32> to vector<2x16xf32>
    %526 = arith.addf %524, %525 : vector<2x16xf32>
    %cst_201 = arith.constant 0.000000e+00 : f32
    %527 = vector.broadcast %cst_201 : f32 to vector<2x16xf32>
    %528 = arith.subf %527, %526 : vector<2x16xf32>
    %529 = math.exp %528 : vector<2x16xf32>
    %cst_202 = arith.constant 1.000000e+00 : f32
    %530 = vector.broadcast %cst_202 : f32 to vector<2x16xf32>
    %531 = arith.addf %530, %529 : vector<2x16xf32>
    %cst_203 = arith.constant 1.000000e+00 : f32
    %532 = vector.broadcast %cst_203 : f32 to vector<2x16xf32>
    %533 = arith.divf %532, %531 : vector<2x16xf32>
    %534 = vector.extract_strided_slice %476 {offsets = [0, 32], sizes = [2, 16], strides = [1, 1]} : vector<2x48xf32> to vector<2x16xf32>
    %535 = vector.extract_strided_slice %512 {offsets = [0, 32], sizes = [2, 16], strides = [1, 1]} : vector<2x48xf32> to vector<2x16xf32>
    %536 = arith.mulf %523, %535 : vector<2x16xf32>
    %537 = arith.addf %534, %536 : vector<2x16xf32>
    %538 = math.tanh %537 : vector<2x16xf32>
    %cst_204 = arith.constant 1.000000e+00 : f32
    %539 = vector.broadcast %cst_204 : f32 to vector<2x16xf32>
    %540 = arith.subf %539, %533 : vector<2x16xf32>
    %541 = arith.mulf %540, %538 : vector<2x16xf32>
    %542 = arith.mulf %533, %513 : vector<2x16xf32>
    %543 = arith.addf %541, %542 : vector<2x16xf32>
    %544 = tpu.concatenate %511, %543 in 1 : vector<2x16xf32>, vector<2x16xf32> -> vector<2x32xf32>
    %c0_205 = arith.constant 0 : index
    %c6_206 = arith.constant 6 : index
    %c0_207 = arith.constant 0 : index
    %c0_208 = arith.constant 0 : index
    %545 = vector.load %arg4[%c0_205, %c6_206, %c0_207, %c0_208] : memref<1x8x2x32xf32, #tpu.memory_space<vmem>>, vector<1x1x2x16xf32>
    %546 = vector.shape_cast %545 : vector<1x1x2x16xf32> to vector<2x16xf32>
    %547 = vector.shape_cast %511 : vector<2x16xf32> to vector<1x1x2x16xf32>
    tpu.vector_store %arg4[%c0_205, %c6_206, %c0_207, %c0_208], %547 {strides = array<i32>} : memref<1x8x2x32xf32, #tpu.memory_space<vmem>>, vector<1x1x2x16xf32>,
    %c0_209 = arith.constant 0 : index
    %c1_210 = arith.constant 1 : index
    %c0_211 = arith.constant 0 : index
    %c16_212 = arith.constant 16 : index
    %548 = vector.load %arg4[%c0_209, %c1_210, %c0_211, %c16_212] : memref<1x8x2x32xf32, #tpu.memory_space<vmem>>, vector<1x1x2x16xf32>
    %549 = vector.shape_cast %548 : vector<1x1x2x16xf32> to vector<2x16xf32>
    %550 = vector.shape_cast %543 : vector<2x16xf32> to vector<1x1x2x16xf32>
    tpu.vector_store %arg4[%c0_209, %c1_210, %c0_211, %c16_212], %550 {strides = array<i32>} : memref<1x8x2x32xf32, #tpu.memory_space<vmem>>, vector<1x1x2x16xf32>,
    %c0_213 = arith.constant 0 : index
    %c7_214 = arith.constant 7 : index
    %c0_215 = arith.constant 0 : index
    %c0_216 = arith.constant 0 : index
    %551 = vector.load %arg1[%c0_213, %c7_214, %c0_215, %c0_216] : memref<1x8x2x96xf32, #tpu.memory_space<vmem>>, vector<1x1x2x48xf32>
    %552 = vector.shape_cast %551 : vector<1x1x2x48xf32> to vector<2x48xf32>
    %c0_217 = arith.constant 0 : index
    %c0_218 = arith.constant 0 : index
    %c0_219 = arith.constant 0 : index
    %c48_220 = arith.constant 48 : index
    %553 = vector.load %arg1[%c0_217, %c0_218, %c0_219, %c48_220] : memref<1x8x2x96xf32, #tpu.memory_space<vmem>>, vector<1x1x2x48xf32>
    %554 = vector.shape_cast %553 : vector<1x1x2x48xf32> to vector<2x48xf32>
    %cst_221 = arith.constant dense<0.000000e+00> : vector<2x96xf32>
    %555 = tpu.matmul %544, %1, %cst_221 {dimension_numbers = #tpu.dot_dimension_numbers<[1], [0], [0], [1], [0, 0, 1, 1], [], []>} : vector<2x32xf32>, vector<32x96xf32>, vector<2x96xf32> -> vector<2x96xf32>
    %556 = vector.broadcast %3 : vector<1x96xf32> to vector<2x96xf32>
    %557 = arith.addf %555, %556 : vector<2x96xf32>
    %558 = vector.extract_strided_slice %557 {offsets = [0, 0], sizes = [2, 48], strides = [1, 1]} : vector<2x96xf32> to vector<2x48xf32>
    %559 = vector.extract_strided_slice %544 {offsets = [0, 0], sizes = [2, 16], strides = [1, 1]} : vector<2x32xf32> to vector<2x16xf32>
    %560 = vector.extract_strided_slice %552 {offsets = [0, 0], sizes = [2, 16], strides = [1, 1]} : vector<2x48xf32> to vector<2x16xf32>
    %561 = vector.extract_strided_slice %558 {offsets = [0, 0], sizes = [2, 16], strides = [1, 1]} : vector<2x48xf32> to vector<2x16xf32>
    %562 = arith.addf %560, %561 : vector<2x16xf32>
    %cst_222 = arith.constant 0.000000e+00 : f32
    %563 = vector.broadcast %cst_222 : f32 to vector<2x16xf32>
    %564 = arith.subf %563, %562 : vector<2x16xf32>
    %565 = math.exp %564 : vector<2x16xf32>
    %cst_223 = arith.constant 1.000000e+00 : f32
    %566 = vector.broadcast %cst_223 : f32 to vector<2x16xf32>
    %567 = arith.addf %566, %565 : vector<2x16xf32>
    %cst_224 = arith.constant 1.000000e+00 : f32
    %568 = vector.broadcast %cst_224 : f32 to vector<2x16xf32>
    %569 = arith.divf %568, %567 : vector<2x16xf32>
    %570 = vector.extract_strided_slice %552 {offsets = [0, 16], sizes = [2, 16], strides = [1, 1]} : vector<2x48xf32> to vector<2x16xf32>
    %571 = vector.extract_strided_slice %558 {offsets = [0, 16], sizes = [2, 16], strides = [1, 1]} : vector<2x48xf32> to vector<2x16xf32>
    %572 = arith.addf %570, %571 : vector<2x16xf32>
    %cst_225 = arith.constant 0.000000e+00 : f32
    %573 = vector.broadcast %cst_225 : f32 to vector<2x16xf32>
    %574 = arith.subf %573, %572 : vector<2x16xf32>
    %575 = math.exp %574 : vector<2x16xf32>
    %cst_226 = arith.constant 1.000000e+00 : f32
    %576 = vector.broadcast %cst_226 : f32 to vector<2x16xf32>
    %577 = arith.addf %576, %575 : vector<2x16xf32>
    %cst_227 = arith.constant 1.000000e+00 : f32
    %578 = vector.broadcast %cst_227 : f32 to vector<2x16xf32>
    %579 = arith.divf %578, %577 : vector<2x16xf32>
    %580 = vector.extract_strided_slice %552 {offsets = [0, 32], sizes = [2, 16], strides = [1, 1]} : vector<2x48xf32> to vector<2x16xf32>
    %581 = vector.extract_strided_slice %558 {offsets = [0, 32], sizes = [2, 16], strides = [1, 1]} : vector<2x48xf32> to vector<2x16xf32>
    %582 = arith.mulf %569, %581 : vector<2x16xf32>
    %583 = arith.addf %580, %582 : vector<2x16xf32>
    %584 = math.tanh %583 : vector<2x16xf32>
    %cst_228 = arith.constant 1.000000e+00 : f32
    %585 = vector.broadcast %cst_228 : f32 to vector<2x16xf32>
    %586 = arith.subf %585, %579 : vector<2x16xf32>
    %587 = arith.mulf %586, %584 : vector<2x16xf32>
    %588 = arith.mulf %579, %559 : vector<2x16xf32>
    %589 = arith.addf %587, %588 : vector<2x16xf32>
    %590 = vector.extract_strided_slice %557 {offsets = [0, 48], sizes = [2, 48], strides = [1, 1]} : vector<2x96xf32> to vector<2x48xf32>
    %591 = vector.extract_strided_slice %544 {offsets = [0, 16], sizes = [2, 16], strides = [1, 1]} : vector<2x32xf32> to vector<2x16xf32>
    %592 = vector.extract_strided_slice %554 {offsets = [0, 0], sizes = [2, 16], strides = [1, 1]} : vector<2x48xf32> to vector<2x16xf32>
    %593 = vector.extract_strided_slice %590 {offsets = [0, 0], sizes = [2, 16], strides = [1, 1]} : vector<2x48xf32> to vector<2x16xf32>
    %594 = arith.addf %592, %593 : vector<2x16xf32>
    %cst_229 = arith.constant 0.000000e+00 : f32
    %595 = vector.broadcast %cst_229 : f32 to vector<2x16xf32>
    %596 = arith.subf %595, %594 : vector<2x16xf32>
    %597 = math.exp %596 : vector<2x16xf32>
    %cst_230 = arith.constant 1.000000e+00 : f32
    %598 = vector.broadcast %cst_230 : f32 to vector<2x16xf32>
    %599 = arith.addf %598, %597 : vector<2x16xf32>
    %cst_231 = arith.constant 1.000000e+00 : f32
    %600 = vector.broadcast %cst_231 : f32 to vector<2x16xf32>
    %601 = arith.divf %600, %599 : vector<2x16xf32>
    %602 = vector.extract_strided_slice %554 {offsets = [0, 16], sizes = [2, 16], strides = [1, 1]} : vector<2x48xf32> to vector<2x16xf32>
    %603 = vector.extract_strided_slice %590 {offsets = [0, 16], sizes = [2, 16], strides = [1, 1]} : vector<2x48xf32> to vector<2x16xf32>
    %604 = arith.addf %602, %603 : vector<2x16xf32>
    %cst_232 = arith.constant 0.000000e+00 : f32
    %605 = vector.broadcast %cst_232 : f32 to vector<2x16xf32>
    %606 = arith.subf %605, %604 : vector<2x16xf32>
    %607 = math.exp %606 : vector<2x16xf32>
    %cst_233 = arith.constant 1.000000e+00 : f32
    %608 = vector.broadcast %cst_233 : f32 to vector<2x16xf32>
    %609 = arith.addf %608, %607 : vector<2x16xf32>
    %cst_234 = arith.constant 1.000000e+00 : f32
    %610 = vector.broadcast %cst_234 : f32 to vector<2x16xf32>
    %611 = arith.divf %610, %609 : vector<2x16xf32>
    %612 = vector.extract_strided_slice %554 {offsets = [0, 32], sizes = [2, 16], strides = [1, 1]} : vector<2x48xf32> to vector<2x16xf32>
    %613 = vector.extract_strided_slice %590 {offsets = [0, 32], sizes = [2, 16], strides = [1, 1]} : vector<2x48xf32> to vector<2x16xf32>
    %614 = arith.mulf %601, %613 : vector<2x16xf32>
    %615 = arith.addf %612, %614 : vector<2x16xf32>
    %616 = math.tanh %615 : vector<2x16xf32>
    %cst_235 = arith.constant 1.000000e+00 : f32
    %617 = vector.broadcast %cst_235 : f32 to vector<2x16xf32>
    %618 = arith.subf %617, %611 : vector<2x16xf32>
    %619 = arith.mulf %618, %616 : vector<2x16xf32>
    %620 = arith.mulf %611, %591 : vector<2x16xf32>
    %621 = arith.addf %619, %620 : vector<2x16xf32>
    %c0_236 = arith.constant 0 : index
    %c7_237 = arith.constant 7 : index
    %c0_238 = arith.constant 0 : index
    %c0_239 = arith.constant 0 : index
    %622 = vector.load %arg4[%c0_236, %c7_237, %c0_238, %c0_239] : memref<1x8x2x32xf32, #tpu.memory_space<vmem>>, vector<1x1x2x16xf32>
    %623 = vector.shape_cast %622 : vector<1x1x2x16xf32> to vector<2x16xf32>
    %624 = vector.shape_cast %589 : vector<2x16xf32> to vector<1x1x2x16xf32>
    tpu.vector_store %arg4[%c0_236, %c7_237, %c0_238, %c0_239], %624 {strides = array<i32>} : memref<1x8x2x32xf32, #tpu.memory_space<vmem>>, vector<1x1x2x16xf32>,
    %c0_240 = arith.constant 0 : index
    %c0_241 = arith.constant 0 : index
    %c0_242 = arith.constant 0 : index
    %c16_243 = arith.constant 16 : index
    %625 = vector.load %arg4[%c0_240, %c0_241, %c0_242, %c16_243] : memref<1x8x2x32xf32, #tpu.memory_space<vmem>>, vector<1x1x2x16xf32>
    %626 = vector.shape_cast %625 : vector<1x1x2x16xf32> to vector<2x16xf32>
    %627 = vector.shape_cast %621 : vector<2x16xf32> to vector<1x1x2x16xf32>
    tpu.vector_store %arg4[%c0_240, %c0_241, %c0_242, %c16_243], %627 {strides = array<i32>} : memref<1x8x2x32xf32, #tpu.memory_space<vmem>>, vector<1x1x2x16xf32>,
    return
  }
  func.func @transform_0(%arg0: i32) -> (i32, i32, i32, i32) {
    %c0_i32 = arith.constant 0 : i32
    %c0_i32_0 = arith.constant 0 : i32
    %c0_i32_1 = arith.constant 0 : i32
    %c0_i32_2 = arith.constant 0 : i32
    return %arg0, %c0_i32, %c0_i32_0, %c0_i32_1 : i32, i32, i32, i32
  }
  func.func @transform_1(%arg0: i32) -> (i32, i32, i32) {
    %c0_i32 = arith.constant 0 : i32
    %c0_i32_0 = arith.constant 0 : i32
    %c0_i32_1 = arith.constant 0 : i32
    return %arg0, %c0_i32, %c0_i32_0 : i32, i32, i32
  }
  func.func @transform_2(%arg0: i32) -> (i32, i32, i32) {
    %c0_i32 = arith.constant 0 : i32
    %c0_i32_0 = arith.constant 0 : i32
    %c0_i32_1 = arith.constant 0 : i32
    return %arg0, %c0_i32, %c0_i32_0 : i32, i32, i32
  }
  func.func @transform_3(%arg0: i32) -> (i32, i32, i32, i32) {
    %c0_i32 = arith.constant 0 : i32
    %c0_i32_0 = arith.constant 0 : i32
    %c0_i32_1 = arith.constant 0 : i32
    %c0_i32_2 = arith.constant 0 : i32
    return %arg0, %c0_i32, %c0_i32_0, %c0_i32_1 : i32, i32, i32, i32
  }
}

module attributes {stable_mosaic.version = 11 : i64} {
  func.func @_attention_lst_kernel(%arg0: i32, %arg1: memref<1x9x32xf32, #tpu.memory_space<vmem>>, %arg2: memref<1x9x32xf32, #tpu.memory_space<vmem>>, %arg3: memref<1x9x32xf32, #tpu.memory_space<vmem>>, %arg4: memref<1x9x32xf32, #tpu.memory_space<vmem>>, %arg5: memref<1x9x1xf32, #tpu.memory_space<vmem>>, %arg6: memref<1x1x9xf32, #tpu.memory_space<vmem>>, %arg7: memref<32x16xf32, #tpu.memory_space<vmem>>, %arg8: memref<32x16xf32, #tpu.memory_space<vmem>>, %arg9: memref<32x1xf32, #tpu.memory_space<vmem>>, %arg10: memref<32x1xf32, #tpu.memory_space<vmem>>, %arg11: memref<1x1xf32, #tpu.memory_space<vmem>>, %arg12: memref<32x1xf32, #tpu.memory_space<vmem>>, %arg13: memref<32x1xf32, #tpu.memory_space<vmem>>, %arg14: memref<1x1xf32, #tpu.memory_space<vmem>>, %arg15: memref<1x9x1xf32, #tpu.memory_space<vmem>>, %arg16: memref<1x9x1xf32, #tpu.memory_space<vmem>>) attributes {dimension_semantics = [#tpu.dimension_semantics<parallel>], iteration_bounds = array<i64: 2>, scalar_prefetch = 0 : i64, scratch_operands = 0 : i64, tpu.core_type = #tpu.core_type<tc>, window_params = [{transform_indices = @transform_0, window_bounds = array<i64: 1, 9, 32>}, {transform_indices = @transform_1, window_bounds = array<i64: 1, 9, 32>}, {transform_indices = @transform_2, window_bounds = array<i64: 1, 9, 32>}, {transform_indices = @transform_3, window_bounds = array<i64: 1, 9, 32>}, {transform_indices = @transform_4, window_bounds = array<i64: 1, 9, 1>}, {transform_indices = @transform_5, window_bounds = array<i64: 1, 1, 9>}, {pipeline_mode = #tpu.pipeline_mode<synchronous>, transform_indices = @transform_6, window_bounds = array<i64: 32, 16>}, {pipeline_mode = #tpu.pipeline_mode<synchronous>, transform_indices = @transform_7, window_bounds = array<i64: 32, 16>}, {pipeline_mode = #tpu.pipeline_mode<synchronous>, transform_indices = @transform_8, window_bounds = array<i64: 32, 1>}, {pipeline_mode = #tpu.pipeline_mode<synchronous>, transform_indices = @transform_9, window_bounds = array<i64: 32, 1>}, {pipeline_mode = #tpu.pipeline_mode<synchronous>, transform_indices = @transform_10, window_bounds = array<i64: 1, 1>}, {pipeline_mode = #tpu.pipeline_mode<synchronous>, transform_indices = @transform_11, window_bounds = array<i64: 32, 1>}, {pipeline_mode = #tpu.pipeline_mode<synchronous>, transform_indices = @transform_12, window_bounds = array<i64: 32, 1>}, {pipeline_mode = #tpu.pipeline_mode<synchronous>, transform_indices = @transform_13, window_bounds = array<i64: 1, 1>}, {transform_indices = @transform_14, window_bounds = array<i64: 1, 9, 1>}, {transform_indices = @transform_15, window_bounds = array<i64: 1, 9, 1>}]} {
    %c0 = arith.constant 0 : index
    %c0_0 = arith.constant 0 : index
    %c0_1 = arith.constant 0 : index
    %0 = vector.load %arg1[%c0, %c0_0, %c0_1] : memref<1x9x32xf32, #tpu.memory_space<vmem>>, vector<1x9x32xf32>
    %1 = vector.shape_cast %0 : vector<1x9x32xf32> to vector<9x32xf32>
    %c0_2 = arith.constant 0 : index
    %c0_3 = arith.constant 0 : index
    %c0_4 = arith.constant 0 : index
    %2 = vector.load %arg2[%c0_2, %c0_3, %c0_4] : memref<1x9x32xf32, #tpu.memory_space<vmem>>, vector<1x9x32xf32>
    %3 = vector.shape_cast %2 : vector<1x9x32xf32> to vector<9x32xf32>
    %c0_5 = arith.constant 0 : index
    %c0_6 = arith.constant 0 : index
    %c0_7 = arith.constant 0 : index
    %4 = vector.load %arg3[%c0_5, %c0_6, %c0_7] : memref<1x9x32xf32, #tpu.memory_space<vmem>>, vector<1x9x32xf32>
    %5 = vector.shape_cast %4 : vector<1x9x32xf32> to vector<9x32xf32>
    %c0_8 = arith.constant 0 : index
    %c0_9 = arith.constant 0 : index
    %c0_10 = arith.constant 0 : index
    %6 = vector.load %arg4[%c0_8, %c0_9, %c0_10] : memref<1x9x32xf32, #tpu.memory_space<vmem>>, vector<1x9x32xf32>
    %7 = vector.shape_cast %6 : vector<1x9x32xf32> to vector<9x32xf32>
    %c0_11 = arith.constant 0 : index
    %c0_12 = arith.constant 0 : index
    %8 = vector.load %arg7[%c0_11, %c0_12] : memref<32x16xf32, #tpu.memory_space<vmem>>, vector<32x16xf32>
    %cst = arith.constant dense<0.000000e+00> : vector<9x16xf32>
    %9 = tpu.matmul %1, %8, %cst {dimension_numbers = #tpu.dot_dimension_numbers<[1], [0], [0], [1], [0, 0, 1, 1], [], []>} : vector<9x32xf32>, vector<32x16xf32>, vector<9x16xf32> -> vector<9x16xf32>
    %c0_13 = arith.constant 0 : index
    %c0_14 = arith.constant 0 : index
    %10 = vector.load %arg8[%c0_13, %c0_14] : memref<32x16xf32, #tpu.memory_space<vmem>>, vector<32x16xf32>
    %cst_15 = arith.constant dense<0.000000e+00> : vector<9x16xf32>
    %11 = tpu.matmul %3, %10, %cst_15 {dimension_numbers = #tpu.dot_dimension_numbers<[1], [0], [0], [1], [0, 0, 1, 1], [], []>} : vector<9x32xf32>, vector<32x16xf32>, vector<9x16xf32> -> vector<9x16xf32>
    %cst_16 = arith.constant dense<0.000000e+00> : vector<9x9xf32>
    %12 = tpu.matmul %9, %11, %cst_16 {dimension_numbers = #tpu.dot_dimension_numbers<[1], [1], [0], [0], [0, 0, 1, 0], [], []>} : vector<9x16xf32>, vector<9x16xf32>, vector<9x9xf32> -> vector<9x9xf32>
    %c0_17 = arith.constant 0 : index
    %c0_18 = arith.constant 0 : index
    %c0_19 = arith.constant 0 : index
    %13 = vector.load %arg6[%c0_17, %c0_18, %c0_19] : memref<1x1x9xf32, #tpu.memory_space<vmem>>, vector<1x1x9xf32>
    %14 = vector.shape_cast %13 : vector<1x1x9xf32> to vector<1x9xf32>
    %15 = vector.broadcast %14 : vector<1x9xf32> to vector<9x9xf32>
    %16 = arith.addf %12, %15 : vector<9x9xf32>
    %cst_20 = arith.constant dense<0xFF800000> : vector<9xf32>
    %17 = vector.multi_reduction <maximumf>, %16, %cst_20 [1] : vector<9x9xf32> to vector<9xf32>
    %18 = vector.shape_cast %17 : vector<9xf32> to vector<9x1xf32>
    %19 = vector.broadcast %18 : vector<9x1xf32> to vector<9x9xf32>
    %20 = arith.subf %16, %19 : vector<9x9xf32>
    %21 = math.exp %20 : vector<9x9xf32>
    %cst_21 = arith.constant dense<0.000000e+00> : vector<9xf32>
    %22 = vector.multi_reduction <add>, %21, %cst_21 [1] : vector<9x9xf32> to vector<9xf32>
    %23 = vector.shape_cast %22 : vector<9xf32> to vector<9x1xf32>
    %24 = vector.broadcast %23 : vector<9x1xf32> to vector<9x9xf32>
    %25 = arith.divf %21, %24 : vector<9x9xf32>
    %cst_22 = arith.constant dense<0.000000e+00> : vector<9x32xf32>
    %26 = tpu.matmul %25, %7, %cst_22 {dimension_numbers = #tpu.dot_dimension_numbers<[1], [0], [0], [1], [0, 0, 1, 1], [], []>} : vector<9x9xf32>, vector<9x32xf32>, vector<9x32xf32> -> vector<9x32xf32>
    %c0_23 = arith.constant 0 : index
    %c0_24 = arith.constant 0 : index
    %c0_25 = arith.constant 0 : index
    %27 = vector.load %arg5[%c0_23, %c0_24, %c0_25] : memref<1x9x1xf32, #tpu.memory_space<vmem>>, vector<1x9x1xf32>
    %28 = vector.shape_cast %27 : vector<1x9x1xf32> to vector<9x1xf32>
    %29 = vector.broadcast %28 : vector<9x1xf32> to vector<9x9xf32>
    %30 = arith.addf %12, %29 : vector<9x9xf32>
    %cst_26 = arith.constant dense<0xFF800000> : vector<9xf32>
    %31 = vector.multi_reduction <maximumf>, %30, %cst_26 [0] : vector<9x9xf32> to vector<9xf32>
    %32 = vector.shape_cast %31 : vector<9xf32> to vector<1x9xf32>
    %33 = vector.broadcast %32 : vector<1x9xf32> to vector<9x9xf32>
    %34 = arith.subf %30, %33 : vector<9x9xf32>
    %35 = math.exp %34 : vector<9x9xf32>
    %cst_27 = arith.constant dense<0.000000e+00> : vector<9xf32>
    %36 = vector.multi_reduction <add>, %35, %cst_27 [0] : vector<9x9xf32> to vector<9xf32>
    %37 = vector.shape_cast %36 : vector<9xf32> to vector<1x9xf32>
    %38 = vector.broadcast %37 : vector<1x9xf32> to vector<9x9xf32>
    %39 = arith.divf %35, %38 : vector<9x9xf32>
    %cst_28 = arith.constant dense<0.000000e+00> : vector<9x32xf32>
    %40 = tpu.matmul %39, %5, %cst_28 {dimension_numbers = #tpu.dot_dimension_numbers<[0], [0], [1], [1], [0, 1, 1, 1], [], []>} : vector<9x9xf32>, vector<9x32xf32>, vector<9x32xf32> -> vector<9x32xf32>
    %c0_29 = arith.constant 0 : index
    %c0_30 = arith.constant 0 : index
    %41 = vector.load %arg9[%c0_29, %c0_30] : memref<32x1xf32, #tpu.memory_space<vmem>>, vector<32x1xf32>
    %cst_31 = arith.constant dense<0.000000e+00> : vector<9x1xf32>
    %42 = tpu.matmul %26, %41, %cst_31 {dimension_numbers = #tpu.dot_dimension_numbers<[1], [0], [0], [1], [0, 0, 1, 1], [], []>} : vector<9x32xf32>, vector<32x1xf32>, vector<9x1xf32> -> vector<9x1xf32>
    %c0_32 = arith.constant 0 : index
    %c0_33 = arith.constant 0 : index
    %43 = vector.load %arg10[%c0_32, %c0_33] : memref<32x1xf32, #tpu.memory_space<vmem>>, vector<32x1xf32>
    %cst_34 = arith.constant dense<0.000000e+00> : vector<9x1xf32>
    %44 = tpu.matmul %1, %43, %cst_34 {dimension_numbers = #tpu.dot_dimension_numbers<[1], [0], [0], [1], [0, 0, 1, 1], [], []>} : vector<9x32xf32>, vector<32x1xf32>, vector<9x1xf32> -> vector<9x1xf32>
    %45 = arith.addf %42, %44 : vector<9x1xf32>
    %c0_35 = arith.constant 0 : index
    %c0_36 = arith.constant 0 : index
    %46 = vector.load %arg11[%c0_35, %c0_36] : memref<1x1xf32, #tpu.memory_space<vmem>>, vector<1x1xf32>
    %47 = vector.broadcast %46 : vector<1x1xf32> to vector<9x1xf32>
    %48 = arith.addf %45, %47 : vector<9x1xf32>
    %c0_37 = arith.constant 0 : index
    %c0_38 = arith.constant 0 : index
    %c0_39 = arith.constant 0 : index
    %49 = vector.load %arg15[%c0_37, %c0_38, %c0_39] : memref<1x9x1xf32, #tpu.memory_space<vmem>>, vector<1x9x1xf32>
    %50 = vector.shape_cast %49 : vector<1x9x1xf32> to vector<9x1xf32>
    %51 = vector.shape_cast %48 : vector<9x1xf32> to vector<1x9x1xf32>
    tpu.vector_store %arg15[%c0_37, %c0_38, %c0_39], %51 {strides = array<i32>} : memref<1x9x1xf32, #tpu.memory_space<vmem>>, vector<1x9x1xf32>,
    %c0_40 = arith.constant 0 : index
    %c0_41 = arith.constant 0 : index
    %52 = vector.load %arg12[%c0_40, %c0_41] : memref<32x1xf32, #tpu.memory_space<vmem>>, vector<32x1xf32>
    %cst_42 = arith.constant dense<0.000000e+00> : vector<9x1xf32>
    %53 = tpu.matmul %40, %52, %cst_42 {dimension_numbers = #tpu.dot_dimension_numbers<[1], [0], [0], [1], [0, 0, 1, 1], [], []>} : vector<9x32xf32>, vector<32x1xf32>, vector<9x1xf32> -> vector<9x1xf32>
    %c0_43 = arith.constant 0 : index
    %c0_44 = arith.constant 0 : index
    %54 = vector.load %arg13[%c0_43, %c0_44] : memref<32x1xf32, #tpu.memory_space<vmem>>, vector<32x1xf32>
    %cst_45 = arith.constant dense<0.000000e+00> : vector<9x1xf32>
    %55 = tpu.matmul %3, %54, %cst_45 {dimension_numbers = #tpu.dot_dimension_numbers<[1], [0], [0], [1], [0, 0, 1, 1], [], []>} : vector<9x32xf32>, vector<32x1xf32>, vector<9x1xf32> -> vector<9x1xf32>
    %56 = arith.addf %53, %55 : vector<9x1xf32>
    %c0_46 = arith.constant 0 : index
    %c0_47 = arith.constant 0 : index
    %57 = vector.load %arg14[%c0_46, %c0_47] : memref<1x1xf32, #tpu.memory_space<vmem>>, vector<1x1xf32>
    %58 = vector.broadcast %57 : vector<1x1xf32> to vector<9x1xf32>
    %59 = arith.addf %56, %58 : vector<9x1xf32>
    %c0_48 = arith.constant 0 : index
    %c0_49 = arith.constant 0 : index
    %c0_50 = arith.constant 0 : index
    %60 = vector.load %arg16[%c0_48, %c0_49, %c0_50] : memref<1x9x1xf32, #tpu.memory_space<vmem>>, vector<1x9x1xf32>
    %61 = vector.shape_cast %60 : vector<1x9x1xf32> to vector<9x1xf32>
    %62 = vector.shape_cast %59 : vector<9x1xf32> to vector<1x9x1xf32>
    tpu.vector_store %arg16[%c0_48, %c0_49, %c0_50], %62 {strides = array<i32>} : memref<1x9x1xf32, #tpu.memory_space<vmem>>, vector<1x9x1xf32>,
    return
  }
  func.func @transform_0(%arg0: i32) -> (i32, i32, i32) {
    %c0_i32 = arith.constant 0 : i32
    %c0_i32_0 = arith.constant 0 : i32
    %c0_i32_1 = arith.constant 0 : i32
    return %arg0, %c0_i32, %c0_i32_0 : i32, i32, i32
  }
  func.func @transform_1(%arg0: i32) -> (i32, i32, i32) {
    %c0_i32 = arith.constant 0 : i32
    %c0_i32_0 = arith.constant 0 : i32
    %c0_i32_1 = arith.constant 0 : i32
    return %arg0, %c0_i32, %c0_i32_0 : i32, i32, i32
  }
  func.func @transform_2(%arg0: i32) -> (i32, i32, i32) {
    %c0_i32 = arith.constant 0 : i32
    %c0_i32_0 = arith.constant 0 : i32
    %c0_i32_1 = arith.constant 0 : i32
    return %arg0, %c0_i32, %c0_i32_0 : i32, i32, i32
  }
  func.func @transform_3(%arg0: i32) -> (i32, i32, i32) {
    %c0_i32 = arith.constant 0 : i32
    %c0_i32_0 = arith.constant 0 : i32
    %c0_i32_1 = arith.constant 0 : i32
    return %arg0, %c0_i32, %c0_i32_0 : i32, i32, i32
  }
  func.func @transform_4(%arg0: i32) -> (i32, i32, i32) {
    %c0_i32 = arith.constant 0 : i32
    %c0_i32_0 = arith.constant 0 : i32
    %c0_i32_1 = arith.constant 0 : i32
    return %arg0, %c0_i32, %c0_i32_0 : i32, i32, i32
  }
  func.func @transform_5(%arg0: i32) -> (i32, i32, i32) {
    %c0_i32 = arith.constant 0 : i32
    %c0_i32_0 = arith.constant 0 : i32
    %c0_i32_1 = arith.constant 0 : i32
    return %arg0, %c0_i32, %c0_i32_0 : i32, i32, i32
  }
  func.func @transform_6(%arg0: i32) -> (i32, i32) {
    %c0_i32 = arith.constant 0 : i32
    %c0_i32_0 = arith.constant 0 : i32
    %c0_i32_1 = arith.constant 0 : i32
    return %c0_i32, %c0_i32_0 : i32, i32
  }
  func.func @transform_7(%arg0: i32) -> (i32, i32) {
    %c0_i32 = arith.constant 0 : i32
    %c0_i32_0 = arith.constant 0 : i32
    %c0_i32_1 = arith.constant 0 : i32
    return %c0_i32, %c0_i32_0 : i32, i32
  }
  func.func @transform_8(%arg0: i32) -> (i32, i32) {
    %c0_i32 = arith.constant 0 : i32
    %c0_i32_0 = arith.constant 0 : i32
    %c0_i32_1 = arith.constant 0 : i32
    return %c0_i32, %c0_i32_0 : i32, i32
  }
  func.func @transform_9(%arg0: i32) -> (i32, i32) {
    %c0_i32 = arith.constant 0 : i32
    %c0_i32_0 = arith.constant 0 : i32
    %c0_i32_1 = arith.constant 0 : i32
    return %c0_i32, %c0_i32_0 : i32, i32
  }
  func.func @transform_10(%arg0: i32) -> (i32, i32) {
    %c0_i32 = arith.constant 0 : i32
    %c0_i32_0 = arith.constant 0 : i32
    %c0_i32_1 = arith.constant 0 : i32
    return %c0_i32, %c0_i32_0 : i32, i32
  }
  func.func @transform_11(%arg0: i32) -> (i32, i32) {
    %c0_i32 = arith.constant 0 : i32
    %c0_i32_0 = arith.constant 0 : i32
    %c0_i32_1 = arith.constant 0 : i32
    return %c0_i32, %c0_i32_0 : i32, i32
  }
  func.func @transform_12(%arg0: i32) -> (i32, i32) {
    %c0_i32 = arith.constant 0 : i32
    %c0_i32_0 = arith.constant 0 : i32
    %c0_i32_1 = arith.constant 0 : i32
    return %c0_i32, %c0_i32_0 : i32, i32
  }
  func.func @transform_13(%arg0: i32) -> (i32, i32) {
    %c0_i32 = arith.constant 0 : i32
    %c0_i32_0 = arith.constant 0 : i32
    %c0_i32_1 = arith.constant 0 : i32
    return %c0_i32, %c0_i32_0 : i32, i32
  }
  func.func @transform_14(%arg0: i32) -> (i32, i32, i32) {
    %c0_i32 = arith.constant 0 : i32
    %c0_i32_0 = arith.constant 0 : i32
    %c0_i32_1 = arith.constant 0 : i32
    return %arg0, %c0_i32, %c0_i32_0 : i32, i32, i32
  }
  func.func @transform_15(%arg0: i32) -> (i32, i32, i32) {
    %c0_i32 = arith.constant 0 : i32
    %c0_i32_0 = arith.constant 0 : i32
    %c0_i32_1 = arith.constant 0 : i32
    return %arg0, %c0_i32, %c0_i32_0 : i32, i32, i32
  }
}

</mosaic_0001>

<bundles_post_ra>
// kernel: baseline_forward.7
= control target key start
LH: loop header
LB: loop body
LE: loop exit
PB: predicated region body
PF: predicated region fallthrough
CT: control target
= control target key end

     0   :  { %s698_s18 = smov 0   ;;  %s740_s0 = inlined_call_operand.vmem [shape: f32[4,16,33], index: 0, kind: input, shape index: {}]   ;;  %s741_s1 = inlined_call_operand.vmem [shape: f32[4,33,32], index: 1, kind: input, shape index: {}]   ;;  %s742_s2 = inlined_call_operand.vmem [shape: f32[4,1,32], index: 2, kind: input, shape index: {}]   ;;  %s743_s3 = inlined_call_operand.vmem [shape: f32[4,32,16], index: 3, kind: input, shape index: {}]   ;;  %s744_s4 = inlined_call_operand.vmem [shape: f32[4,1,16], index: 4, kind: input, shape index: {}]   ;;  %s745_s5 = inlined_call_operand.vmem [shape: f32[4,16,16], index: 5, kind: output, shape index: {}]  }
   0x1 LB: > { %s590_s19 = sadd.s32 4294967295, %s666_s18   ;;  %p594_p0 = scmp.ge.s32.totalorder %s666_s18, 1  ;;  %s666_s18 = sphi %s698_s18, %s15_s18  }
   0x2   : > { %p223_p1 = scmp.lt.s32.totalorder %s666_s18, 5 }
   0x4   : > { %p224_p2 = pnand %p594_p0, %p223_p1 }
   0x5   : > { %p267_p3 = scmp.lt.s32.totalorder (!%p224_p2), %s590_s19, 3 }
   0x6   : > { %227 = sbr.rel (%p224_p2) target bundleno = 426 (0x1aa), region = 40 }
   0xb   : > { %s747_s19 = smov (!%p267_p3, %s590_s19), 3  ;;  %vm307_vm0 = vcmask 269312   ;;  %vm314_vm1 = vcmask 1040384   ;;  %vm406_vm2 = vcmask 261120   ;;  %vm490_vm3 = vcmask 130048  }
   0xc   : > { %s651_s20 = smul.u32 40, %s747_s19  ;;  %s611_s21 = sshll.u32 %s747_s19, 4 }
   0xd   : > { %s271_s24 = scalar_lea.vmem %s740_s0, %s611_s21  ;;  %s612_s28 = sshll.u32 %s747_s19, 5 }
   0xe   : > { %s276_s27 = scalar_lea.vmem %s741_s1, %s651_s20  ;;  %v293_v0 = vld [vmem:[%s271_s24] sm:$0xff]  ;;  %v294_v6 = vld [vmem:[%s271_s24 + $0x8] sm:$0xff]  ;;  %s284_s6 = scalar_lea.vmem %s743_s3, %s612_s28 }
   0xf   : > { %v299_v1 = vld [vmem:[%s276_s27 + $0x20] sm:$0x1]  ;;  %v298_v2 = vld [vmem:[%s276_s27 + $0x18] sm:$0xff]  ;;  %637 = vmatprep.mubr.msk.f32.mxu0 %vm307_vm0, %v293_v0  ;;  %v297_v3 = vld [vmem:[%s276_s27 + $0x10] sm:$0xff]  ;;  %s279_s9 = scalar_lea.vmem %s742_s2, %s747_s19  ;;  %s287_s12 = scalar_lea.vmem %s744_s4, %s747_s19 }
  0x10   : > { %627 = vmatprep.subr.msk.mxu0 %vm314_vm1, %v299_v1  ;;  %v296_v4 = vld [vmem:[%s276_s27 + $0x8] sm:$0xff]  ;;  %v295_v5 = vld [vmem:[%s276_s27] sm:$0xff]  ;;  %v398_v7 = vld [vmem:[%s284_s6 + $0x18] sm:$0xff]  ;;  %s292_s15 = scalar_lea.vmem %s745_s5, %s611_s21 }
  0x11   : > { %628 = vmatpush3.msk.msra.mxu0 %vm314_vm1, %v299_v1  ;;  %640 = vmatprep.subr.mxu1 %v398_v7  ;;  %v397_v8 = vld [vmem:[%s284_s6 + $0x10] sm:$0xff]  ;;  %v396_v9 = vld [vmem:[%s284_s6 + $0x8] sm:$0xff]  ;;  %v395_v10 = vld [vmem:[%s284_s6] sm:$0xff] }
  0x12   : > { %629 = vmatprep.subr.mxu0 %v298_v2  ;;  %641 = vmatpush3.msra.mxu1 %v398_v7  ;;  %v602_v11 = vld [vmem:[%s279_s9] ss:$0 sm:$0xff] }
  0x13   : > { %630 = vmatpush3.msra.mxu0 %v298_v2  ;;  %642 = vmatprep.subr.mxu1 %v397_v8  ;;  %v606_v18 = vld [vmem:[%s287_s12] ss:$0 sm:$0xff] }
  0x14   : > { %631 = vmatprep.subr.mxu0 %v297_v3  ;;  %643 = vmatpush3.msra.mxu1 %v397_v8 }
  0x15   : > { %632 = vmatpush3.msra.mxu0 %v297_v3  ;;  %644 = vmatprep.subr.mxu1 %v396_v9 }
  0x16   : > { %633 = vmatprep.subr.mxu0 %v296_v4  ;;  %645 = vmatpush3.msra.mxu1 %v396_v9 }
  0x17   : > { %634 = vmatpush3.msra.mxu0 %v296_v4  ;;  %646 = vmatprep.subr.mxu1 %v395_v10 }
  0x18   : > { %635 = vmatprep.subr.mxu0 %v295_v5  ;;  %647 = vmatpush3.msra.mxu1 %v395_v10 }
  0x19   : > { %636 = vmatpush3.msra.mxu0 %v295_v5 }
  0x1a   : > { %638 = vmatmul.mubr.msk.f32.vlgmr.msra.gmra.mxu0 %vm307_vm0, %v294_v6 }
  0xda   : > { %v639_v12 = vpop.f32.mrf.mxu0 }
  0xdb   : > { %v390_v13 = vadd.f32 %v639_v12, %v602_v11 }
  0xdc   : > { %v384_v14 = vpop.f32.mrf.mxu0 }
  0xdd   : > { %v385_v15 = vadd.f32 %v602_v11, %v384_v14  ;;  %v394_v17 = vmax.f32 %v390_v13, 0.0 }
  0xdf   : > { %v393_v16 = vmax.f32 %v385_v15, 0.0 }
  0xe1   : > { %648 = vmatprep.mubr.msk.f32.mxu1 %vm406_vm2, %v393_v16 }
  0xe2   : > { %649 = vmatmul.mubr.msk.f32.vlgmr.msra.gmra.mxu1 %vm406_vm2, %v394_v17 }
 0x1a2   : > { %v650_v19 = vpop.f32.mrf.mxu1 }
 0x1a3   : > { %v485_v20 = vadd.f32 %v650_v19, %v606_v18 }
 0x1a4   : > { %v479_v21 = vpop.f32.mrf.mxu1 }
 0x1a5   : > { %v489_v22 = vmax.f32 %v485_v20, 0.0  ;;  %v480_v23 = vadd.f32 %v606_v18, %v479_v21 }
 0x1a7   : > { %492 = vst.msk [vmem:[%s292_s15 + $0x8] sm:$0xff] %vm490_vm3, %v489_v22  ;;  %v488_v24 = vmax.f32 %v480_v23, 0.0 }
 0x1a9   : > { %491 = vst.msk [vmem:[%s292_s15] sm:$0xff] %vm490_vm3, %v488_v24 }
 0x1aa PF: > { %s15_s18 = sadd.s32 1, %s666_s18  }
 0x1ab   : > { %p12_p4 = scmp.ge.s32.totalorder %s15_s18, 6  }
 0x1ad   :  { %14 = sbr.rel (!%p12_p4) target bundleno = 1 (0x1), region = 82 }

// kernel: baseline_forward.8
= control target key start
LH: loop header
LB: loop body
LE: loop exit
PB: predicated region body
PF: predicated region fallthrough
CT: control target
= control target key end

     0   :  { %s468_s12 = smov 0   ;;  %s504_s0 = inlined_call_operand.vmem [shape: f32[4,16,64], index: 0, kind: input, shape index: {}]   ;;  %s505_s1 = inlined_call_operand.vmem [shape: f32[4,64,64], index: 1, kind: input, shape index: {}]   ;;  %s506_s2 = inlined_call_operand.vmem [shape: f32[4,1,64], index: 2, kind: input, shape index: {}]   ;;  %s507_s3 = inlined_call_operand.vmem [shape: f32[4,16,64], index: 3, kind: output, shape index: {}]  }
   0x1 LB: > { %s384_s13 = sadd.s32 4294967295, %s446_s12   ;;  %p388_p0 = scmp.ge.s32.totalorder %s446_s12, 1  ;;  %s446_s12 = sphi %s468_s12, %s13_s12  }
   0x2   : > { %p155_p1 = scmp.lt.s32.totalorder %s446_s12, 5 }
   0x4   : > { %p156_p2 = pnand %p388_p0, %p155_p1 }
   0x5   : > { %p187_p3 = scmp.lt.s32.totalorder (!%p156_p2), %s384_s13, 3 }
   0x6   : > { %159 = sbr.rel (%p156_p2) target bundleno = 231 (0xe7), region = 32 }
   0xb   : > { %s509_s13 = smov (!%p187_p3, %s384_s13), 3  ;;  %vm222_vm0 = vcmask 523264  }
   0xc   : > { %s401_s14 = sshll.u32 %s509_s13, 6  ;;  %s400_s15 = sshll.u32 %s509_s13, 4 }
   0xd   : > { %s196_s18 = scalar_lea.vmem %s505_s1, %s401_s14  ;;  %s191_s21 = scalar_lea.vmem %s504_s0, %s400_s15 }
   0xe   : > { %v214_v0 = vld [vmem:[%s196_s18 + $0x38] sm:$0xff]  ;;  %v213_v1 = vld [vmem:[%s196_s18 + $0x30] sm:$0xff]  ;;  %v212_v2 = vld [vmem:[%s196_s18 + $0x28] sm:$0xff]  ;;  %s199_s24 = scalar_lea.vmem %s506_s2, %s509_s13  ;;  %s204_s27 = scalar_lea.vmem %s507_s3, %s400_s15 }
   0xf   : > { %413 = vmatprep.subr.mxu0 %v214_v0  ;;  %v205_v3 = vld [vmem:[%s191_s21] sm:$0xff]  ;;  %v210_v5 = vld [vmem:[%s196_s18 + $0x18] sm:$0xff]  ;;  %v209_v6 = vld [vmem:[%s196_s18 + $0x10] sm:$0xff] }
  0x10   : > { %414 = vmatpush3.msra.mxu0 %v214_v0  ;;  %429 = vmatprep.mubr.msk.f32.mxu0 %vm222_vm0, %v205_v3  ;;  %v211_v4 = vld [vmem:[%s196_s18 + $0x20] sm:$0xff]  ;;  %v208_v7 = vld [vmem:[%s196_s18 + $0x8] sm:$0xff] }
  0x11   : > { %415 = vmatprep.subr.mxu0 %v213_v1  ;;  %v207_v8 = vld [vmem:[%s196_s18] sm:$0xff]  ;;  %v206_v9 = vld [vmem:[%s191_s21 + $0x8] sm:$0xff] }
  0x12   : > { %416 = vmatpush3.msra.mxu0 %v213_v1  ;;  %v395_v10 = vld [vmem:[%s199_s24] ss:$0 sm:$0xff] }
  0x13   : > { %417 = vmatprep.subr.mxu0 %v212_v2 }
  0x14   : > { %418 = vmatpush3.msra.mxu0 %v212_v2 }
  0x15   : > { %419 = vmatprep.subr.mxu0 %v211_v4 }
  0x16   : > { %420 = vmatpush3.msra.mxu0 %v211_v4 }
  0x17   : > { %421 = vmatprep.subr.mxu0 %v210_v5 }
  0x18   : > { %422 = vmatpush3.msra.mxu0 %v210_v5 }
  0x19   : > { %423 = vmatprep.subr.mxu0 %v209_v6 }
  0x1a   : > { %424 = vmatpush3.msra.mxu0 %v209_v6 }
  0x1b   : > { %425 = vmatprep.subr.mxu0 %v208_v7 }
  0x1c   : > { %426 = vmatpush3.msra.mxu0 %v208_v7 }
  0x1d   : > { %427 = vmatprep.subr.mxu0 %v207_v8 }
  0x1e   : > { %428 = vmatpush3.msra.mxu0 %v207_v8 }
  0x1f   : > { %430 = vmatmul.mubr.msk.f32.vlgmr.msra.gmra.mxu0 %vm222_vm0, %v206_v9 }
  0xdf   : > { %v431_v11 = vpop.f32.mrf.mxu0 }
  0xe0   : > { %v301_v12 = vadd.f32 %v431_v11, %v395_v10 }
  0xe1   : > { %v295_v13 = vpop.f32.mrf.mxu0 }
  0xe2   : > { %v305_v14 = vmax.f32 %v301_v12, 0.0  ;;  %v296_v15 = vadd.f32 %v395_v10, %v295_v13 }
  0xe4   : > { %307 = vst.msk [vmem:[%s204_s27 + $0x8] sm:$0xff] %vm222_vm0, %v305_v14  ;;  %v304_v16 = vmax.f32 %v296_v15, 0.0 }
  0xe6   : > { %306 = vst.msk [vmem:[%s204_s27] sm:$0xff] %vm222_vm0, %v304_v16 }
  0xe7 PF: > { %s13_s12 = sadd.s32 1, %s446_s12  }
  0xe8   : > { %p10_p4 = scmp.ge.s32.totalorder %s13_s12, 6  }
  0xea   :  { %12 = sbr.rel (!%p10_p4) target bundleno = 1 (0x1), region = 68 }

// kernel: baseline_forward.9
= control target key start
LH: loop header
LB: loop body
LE: loop exit
PB: predicated region body
PF: predicated region fallthrough
CT: control target
= control target key end

     0   :  { %s507_s12 = smov 0   ;;  %s616_s0 = inlined_call_operand.vmem [shape: f32[4,16,192], index: 0, kind: input, shape index: {}]   ;;  %s617_s1 = inlined_call_operand.vmem [shape: f32[4,192,32], index: 1, kind: input, shape index: {}]   ;;  %s618_s2 = inlined_call_operand.vmem [shape: f32[4,1,32], index: 2, kind: input, shape index: {}]   ;;  %s619_s3 = inlined_call_operand.vmem [shape: f32[4,16,32], index: 3, kind: output, shape index: {}]  }
   0x1 LB: > { %s403_s13 = sadd.s32 4294967295, %s484_s12   ;;  %p407_p0 = scmp.ge.s32.totalorder %s484_s12, 1  ;;  %s484_s12 = sphi %s507_s12, %s13_s12  }
   0x2   : > { %p155_p1 = scmp.lt.s32.totalorder %s484_s12, 5 }
   0x4   : > { %p156_p2 = pnand %p407_p0, %p155_p1 }
   0x5   : > { %p187_p3 = scmp.lt.s32.totalorder (!%p156_p2), %s403_s13, 3 }
   0x6   : > { %159 = sbr.rel (%p156_p2) target bundleno = 261 (0x105), region = 32 }
   0xb   : > { %v486_v0 = vmov 0.0   ;;  %s621_s13 = smov (!%p187_p3, %s403_s13), 3  ;;  %vm240_vm0 = vcmask 523264   ;;  %vm324_vm1 = vcmask 261120  }
   0xc   : > { %247 = vmatprep.subr.mxu0 %v486_v0  ;;  %420 = vmatprep.subr.mxu1 %v486_v0  ;;  %s468_s14 = smul.u32 192, %s621_s13  ;;  %s418_s15 = sshll.u32 %s621_s13, 5 }
   0xd   : > { %s524_s18 = scalar_lea.vmem %s616_s0, %s418_s15  ;;  %s199_s24 = scalar_lea.vmem %s618_s2, %s621_s13 }
   0xe   : > { %s529_s21 = scalar_lea.vmem %s617_s1, %s468_s14  ;;  %v206_v1 = vld [vmem:[%s524_s18 + $0x8] sm:$0xff]  ;;  %v208_v2 = vld [vmem:[%s524_s18 + $0x18] sm:$0xff]  ;;  %v205_v27 = vld [vmem:[%s524_s18] sm:$0xff]  ;;  %s419_s25 = sshll.u32 %s621_s13, 4 }
   0xf   : > { %v224_v3 = vld [vmem:[%s529_s21 + $0x78] sm:$0xff]  ;;  %v223_v4 = vld [vmem:[%s529_s21 + $0x70] sm:$0xff]  ;;  %414 = vmatprep.mubr.msk.f32.mxu0 %vm240_vm0, %v206_v1  ;;  %415 = vmatprep.mubr.msk.f32.mxu1 %vm240_vm0, %v208_v2  ;;  %v222_v5 = vld [vmem:[%s529_s21 + $0x68] sm:$0xff]  ;;  %s204_s28 = scalar_lea.vmem %s619_s3, %s419_s25 }
  0x10   : > { %248 = vmatpush1.msra.mxu0 %v224_v3  ;;  %444 = vmatpush1.msra.mxu1 %v224_v3  ;;  %v221_v6 = vld [vmem:[%s529_s21 + $0x60] sm:$0xff]  ;;  %v220_v7 = vld [vmem:[%s529_s21 + $0x58] sm:$0xff]  ;;  %v219_v8 = vld [vmem:[%s529_s21 + $0x50] sm:$0xff] }
  0x11   : > { %249 = vmatprep.subr.mxu0 %v486_v0  ;;  %421 = vmatprep.subr.mxu1 %v486_v0  ;;  %v218_v9 = vld [vmem:[%s529_s21 + $0x48] sm:$0xff]  ;;  %v217_v10 = vld [vmem:[%s529_s21 + $0x40] sm:$0xff]  ;;  %v216_v11 = vld [vmem:[%s529_s21 + $0x38] sm:$0xff] }
  0x12   : > { %250 = vmatpush1.msra.mxu0 %v223_v4  ;;  %445 = vmatpush1.msra.mxu1 %v223_v4  ;;  %v215_v12 = vld [vmem:[%s529_s21 + $0x30] sm:$0xff]  ;;  %v214_v13 = vld [vmem:[%s529_s21 + $0x28] sm:$0xff]  ;;  %v213_v14 = vld [vmem:[%s529_s21 + $0x20] sm:$0xff] }
  0x13   : > { %251 = vmatprep.subr.mxu0 %v486_v0  ;;  %422 = vmatprep.subr.mxu1 %v486_v0  ;;  %v212_v15 = vld [vmem:[%s529_s21 + $0x18] sm:$0xff]  ;;  %v211_v16 = vld [vmem:[%s529_s21 + $0x10] sm:$0xff]  ;;  %v210_v17 = vld [vmem:[%s529_s21 + $0x8] sm:$0xff] }
  0x14   : > { %252 = vmatpush1.msra.mxu0 %v222_v5  ;;  %446 = vmatpush1.msra.mxu1 %v222_v5  ;;  %v209_v18 = vld [vmem:[%s529_s21] sm:$0xff]  ;;  %v232_v19 = vld [vmem:[%s529_s21 + $0xb8] sm:$0xff]  ;;  %v231_v20 = vld [vmem:[%s529_s21 + $0xb0] sm:$0xff] }
  0x15   : > { %253 = vmatprep.subr.mxu0 %v486_v0  ;;  %423 = vmatprep.subr.mxu1 %v486_v0  ;;  %v230_v21 = vld [vmem:[%s529_s21 + $0xa8] sm:$0xff]  ;;  %v229_v22 = vld [vmem:[%s529_s21 + $0xa0] sm:$0xff]  ;;  %v228_v23 = vld [vmem:[%s529_s21 + $0x98] sm:$0xff] }
  0x16   : > { %254 = vmatpush1.msra.mxu0 %v221_v6  ;;  %447 = vmatpush1.msra.mxu1 %v221_v6  ;;  %v227_v24 = vld [vmem:[%s529_s21 + $0x90] sm:$0xff]  ;;  %v226_v25 = vld [vmem:[%s529_s21 + $0x88] sm:$0xff]  ;;  %v225_v26 = vld [vmem:[%s529_s21 + $0x80] sm:$0xff] }
  0x17   : > { %255 = vmatprep.subr.mxu0 %v486_v0  ;;  %424 = vmatprep.subr.mxu1 %v486_v0  ;;  %v207_v28 = vld [vmem:[%s524_s18 + $0x10] sm:$0xff]  ;;  %v413_v29 = vld [vmem:[%s199_s24] ss:$0 sm:$0xff] }
  0x18   : > { %256 = vmatpush1.msra.mxu0 %v220_v7  ;;  %448 = vmatpush1.msra.mxu1 %v220_v7 }
  0x19   : > { %257 = vmatprep.subr.mxu0 %v486_v0  ;;  %425 = vmatprep.subr.mxu1 %v486_v0 }
  0x1a   : > { %258 = vmatpush1.msra.mxu0 %v219_v8  ;;  %449 = vmatpush1.msra.mxu1 %v219_v8 }
  0x1b   : > { %259 = vmatprep.subr.mxu0 %v486_v0  ;;  %426 = vmatprep.subr.mxu1 %v486_v0 }
  0x1c   : > { %260 = vmatpush1.msra.mxu0 %v218_v9  ;;  %450 = vmatpush1.msra.mxu1 %v218_v9 }
  0x1d   : > { %261 = vmatprep.subr.mxu0 %v486_v0  ;;  %427 = vmatprep.subr.mxu1 %v486_v0 }
  0x1e   : > { %262 = vmatpush1.msra.mxu0 %v217_v10  ;;  %451 = vmatpush1.msra.mxu1 %v217_v10 }
  0x1f   : > { %263 = vmatprep.subr.mxu0 %v486_v0  ;;  %428 = vmatprep.subr.mxu1 %v486_v0 }
  0x20   : > { %264 = vmatpush1.msra.mxu0 %v216_v11  ;;  %452 = vmatpush1.msra.mxu1 %v216_v11 }
  0x21   : > { %265 = vmatprep.subr.mxu0 %v486_v0  ;;  %429 = vmatprep.subr.mxu1 %v486_v0 }
  0x22   : > { %266 = vmatpush1.msra.mxu0 %v215_v12  ;;  %453 = vmatpush1.msra.mxu1 %v215_v12 }
  0x23   : > { %267 = vmatprep.subr.mxu0 %v486_v0  ;;  %430 = vmatprep.subr.mxu1 %v486_v0 }
  0x24   : > { %268 = vmatpush1.msra.mxu0 %v214_v13  ;;  %454 = vmatpush1.msra.mxu1 %v214_v13 }
  0x25   : > { %269 = vmatprep.subr.mxu0 %v486_v0  ;;  %431 = vmatprep.subr.mxu1 %v486_v0 }
  0x26   : > { %270 = vmatpush1.msra.mxu0 %v213_v14  ;;  %455 = vmatpush1.msra.mxu1 %v213_v14 }
  0x27   : > { %271 = vmatprep.subr.mxu0 %v486_v0  ;;  %432 = vmatprep.subr.mxu1 %v486_v0 }
  0x28   : > { %272 = vmatpush1.msra.mxu0 %v212_v15  ;;  %456 = vmatpush1.msra.mxu1 %v212_v15 }
  0x29   : > { %273 = vmatprep.subr.mxu0 %v486_v0  ;;  %433 = vmatprep.subr.mxu1 %v486_v0 }
  0x2a   : > { %274 = vmatpush1.msra.mxu0 %v211_v16  ;;  %457 = vmatpush1.msra.mxu1 %v211_v16 }
  0x2b   : > { %275 = vmatprep.subr.mxu0 %v486_v0  ;;  %434 = vmatprep.subr.mxu1 %v486_v0 }
  0x2c   : > { %276 = vmatpush1.msra.mxu0 %v210_v17  ;;  %458 = vmatpush1.msra.mxu1 %v210_v17 }
  0x2d   : > { %277 = vmatprep.subr.mxu0 %v486_v0  ;;  %435 = vmatprep.subr.mxu1 %v486_v0 }
  0x2e   : > { %278 = vmatpush1.msra.mxu0 %v209_v18  ;;  %459 = vmatpush1.msra.mxu1 %v209_v18 }
  0x2f   : > { %295 = vmatprep.subr.mxu0 %v486_v0  ;;  %436 = vmatprep.subr.mxu1 %v486_v0 }
  0x30   : > { %296 = vmatpush2.msra.mxu0 %v232_v19  ;;  %460 = vmatpush2.msra.mxu1 %v232_v19 }
  0x31   : > { %297 = vmatprep.subr.mxu0 %v486_v0  ;;  %437 = vmatprep.subr.mxu1 %v486_v0 }
  0x32   : > { %298 = vmatpush2.msra.mxu0 %v231_v20  ;;  %461 = vmatpush2.msra.mxu1 %v231_v20 }
  0x33   : > { %299 = vmatprep.subr.mxu0 %v486_v0  ;;  %438 = vmatprep.subr.mxu1 %v486_v0 }
  0x34   : > { %300 = vmatpush2.msra.mxu0 %v230_v21  ;;  %462 = vmatpush2.msra.mxu1 %v230_v21 }
  0x35   : > { %301 = vmatprep.subr.mxu0 %v486_v0  ;;  %439 = vmatprep.subr.mxu1 %v486_v0 }
  0x36   : > { %302 = vmatpush2.msra.mxu0 %v229_v22  ;;  %463 = vmatpush2.msra.mxu1 %v229_v22 }
  0x37   : > { %303 = vmatprep.subr.mxu0 %v486_v0  ;;  %440 = vmatprep.subr.mxu1 %v486_v0 }
  0x38   : > { %304 = vmatpush2.msra.mxu0 %v228_v23  ;;  %464 = vmatpush2.msra.mxu1 %v228_v23 }
  0x39   : > { %305 = vmatprep.subr.mxu0 %v486_v0  ;;  %441 = vmatprep.subr.mxu1 %v486_v0 }
  0x3a   : > { %306 = vmatpush2.msra.mxu0 %v227_v24  ;;  %465 = vmatpush2.msra.mxu1 %v227_v24 }
  0x3b   : > { %307 = vmatprep.subr.mxu0 %v486_v0  ;;  %442 = vmatprep.subr.mxu1 %v486_v0 }
  0x3c   : > { %308 = vmatpush2.msra.mxu0 %v226_v25  ;;  %466 = vmatpush2.msra.mxu1 %v226_v25 }
  0x3d   : > { %309 = vmatprep.subr.mxu0 %v486_v0  ;;  %443 = vmatprep.subr.mxu1 %v486_v0 }
  0x3e   : > { %310 = vmatpush2.msra.mxu0 %v225_v26  ;;  %467 = vmatpush2.msra.mxu1 %v225_v26 }
  0x3f   : > { %312 = vmatmul.mubr.f32.vlgmr.msra.gmra.mxu0 %v205_v27  ;;  %317 = vmatmul.mubr.f32.vlgmr.msra.gmra.mxu1 %v207_v28 }
  0xff   : > { %v313_v30 = vpop.f32.mrf.mxu0  ;;  %v318_v31 = vpop.f32.mrf.mxu1 }
 0x100   : > { %v314_v32 = vadd.f32 %v413_v29, %v313_v30  ;;  %v319_v33 = vadd.f32 %v413_v29, %v318_v31 }
 0x101   : > { %v315_v34 = vpop.f32.mrf.mxu0  ;;  %v320_v35 = vpop.f32.mrf.mxu1 }
 0x102   : > { %v322_v36 = vmax.f32 %v314_v32, 0.0  ;;  %v323_v37 = vmax.f32 %v319_v33, 0.0 }
 0x104   : > { %325 = vst.msk [vmem:[%s204_s28] sm:$0xff] %vm324_vm1, %v322_v36  ;;  %326 = vst.msk [vmem:[%s204_s28 + $0x8] sm:$0xff] %vm324_vm1, %v323_v37 }
 0x105 PF: > { %s13_s12 = sadd.s32 1, %s484_s12  }
 0x106   : > { %p10_p4 = scmp.ge.s32.totalorder %s13_s12, 6  }
 0x108   :  { %12 = sbr.rel (!%p10_p4) target bundleno = 1 (0x1), region = 68 }

// kernel: baseline_forward.10
= control target key start
LH: loop header
LB: loop body
LE: loop exit
PB: predicated region body
PF: predicated region fallthrough
CT: control target
= control target key end

     0   :  { %s553_s15 = smov 0   ;;  %s609_s0 = inlined_call_operand.vmem [shape: f32[4,16,96], index: 0, kind: input, shape index: {}]   ;;  %s610_s1 = inlined_call_operand.vmem [shape: f32[4,96,16], index: 1, kind: input, shape index: {}]   ;;  %s611_s2 = inlined_call_operand.vmem [shape: f32[4,1,16], index: 2, kind: input, shape index: {}]   ;;  %s612_s3 = inlined_call_operand.vmem [shape: f32[4,16,16], index: 3, kind: input, shape index: {}]   ;;  %s613_s4 = inlined_call_operand.vmem [shape: f32[4,16,16], index: 4, kind: output, shape index: {}]  }
   0x1 LB: > { %s450_s16 = sadd.s32 4294967295, %s526_s15   ;;  %p454_p0 = scmp.ge.s32.totalorder %s526_s15, 1  ;;  %s526_s15 = sphi %s553_s15, %s14_s15  }
   0x2   : > { %p190_p1 = scmp.lt.s32.totalorder %s526_s15, 5 }
   0x4   : > { %p191_p2 = pnand %p454_p0, %p190_p1 }
   0x5   : > { %p229_p3 = scmp.lt.s32.totalorder (!%p191_p2), %s450_s16, 3 }
   0x6   : > { %194 = sbr.rel (%p191_p2) target bundleno = 240 (0xf0), region = 36 }
   0xb   : > { %s615_s16 = smov (!%p229_p3, %s450_s16), 3  ;;  %vm273_vm0 = vcmask 785408   ;;  %vm359_vm1 = vcmask 130048  }
   0xc   : > { %s511_s17 = smul.u32 96, %s615_s16  ;;  %s565_s18 = sshll.u32 %s615_s16, 4 }
   0xd   : > { %s571_s21 = scalar_lea.vmem %s609_s0, %s565_s18  ;;  %s241_s27 = scalar_lea.vmem %s611_s2, %s615_s16 }
   0xe   : > { %s576_s24 = scalar_lea.vmem %s610_s1, %s511_s17  ;;  %v252_v0 = vld [vmem:[%s571_s21] sm:$0xff]  ;;  %v253_v13 = vld [vmem:[%s571_s21 + $0x8] sm:$0xff]  ;;  %s246_s30 = scalar_lea.vmem %s612_s3, %s565_s18 }
   0xf   : > { %v265_v1 = vld [vmem:[%s576_s24 + $0x58] sm:$0xff]  ;;  %v264_v2 = vld [vmem:[%s576_s24 + $0x50] sm:$0xff]  ;;  %508 = vmatprep.mubr.msk.f32.mxu0 %vm273_vm0, %v252_v0  ;;  %v263_v3 = vld [vmem:[%s576_s24 + $0x48] sm:$0xff]  ;;  %s251_s7 = scalar_lea.vmem %s613_s4, %s565_s18 }
  0x10   : > { %484 = vmatprep.subr.mxu0 %v265_v1  ;;  %v262_v4 = vld [vmem:[%s576_s24 + $0x40] sm:$0xff]  ;;  %v261_v5 = vld [vmem:[%s576_s24 + $0x38] sm:$0xff]  ;;  %v260_v6 = vld [vmem:[%s576_s24 + $0x30] sm:$0xff] }
  0x11   : > { %485 = vmatpush3.msra.mxu0 %v265_v1  ;;  %v259_v7 = vld [vmem:[%s576_s24 + $0x28] sm:$0xff]  ;;  %v258_v8 = vld [vmem:[%s576_s24 + $0x20] sm:$0xff]  ;;  %v257_v9 = vld [vmem:[%s576_s24 + $0x18] sm:$0xff] }
  0x12   : > { %486 = vmatprep.subr.mxu0 %v264_v2  ;;  %v256_v10 = vld [vmem:[%s576_s24 + $0x10] sm:$0xff]  ;;  %v255_v11 = vld [vmem:[%s576_s24 + $0x8] sm:$0xff]  ;;  %v254_v12 = vld [vmem:[%s576_s24] sm:$0xff] }
  0x13   : > { %487 = vmatpush3.msra.mxu0 %v264_v2  ;;  %v462_v14 = vld [vmem:[%s241_s27] ss:$0 sm:$0xff]  ;;  %v356_v16 = vld [vmem:[%s246_s30 + $0x8] sm:$0xff] }
  0x14   : > { %488 = vmatprep.subr.mxu0 %v263_v3  ;;  %v355_v19 = vld [vmem:[%s246_s30] sm:$0xff] }
  0x15   : > { %489 = vmatpush3.msra.mxu0 %v263_v3 }
  0x16   : > { %490 = vmatprep.subr.mxu0 %v262_v4 }
  0x17   : > { %491 = vmatpush3.msra.mxu0 %v262_v4 }
  0x18   : > { %492 = vmatprep.subr.mxu0 %v261_v5 }
  0x19   : > { %493 = vmatpush3.msra.mxu0 %v261_v5 }
  0x1a   : > { %494 = vmatprep.subr.mxu0 %v260_v6 }
  0x1b   : > { %495 = vmatpush3.msra.mxu0 %v260_v6 }
  0x1c   : > { %496 = vmatprep.subr.mxu0 %v259_v7 }
  0x1d   : > { %497 = vmatpush3.msra.mxu0 %v259_v7 }
  0x1e   : > { %498 = vmatprep.subr.mxu0 %v258_v8 }
  0x1f   : > { %499 = vmatpush3.msra.mxu0 %v258_v8 }
  0x20   : > { %500 = vmatprep.subr.mxu0 %v257_v9 }
  0x21   : > { %501 = vmatpush3.msra.mxu0 %v257_v9 }
  0x22   : > { %502 = vmatprep.subr.mxu0 %v256_v10 }
  0x23   : > { %503 = vmatpush3.msra.mxu0 %v256_v10 }
  0x24   : > { %504 = vmatprep.subr.mxu0 %v255_v11 }
  0x25   : > { %505 = vmatpush3.msra.mxu0 %v255_v11 }
  0x26   : > { %506 = vmatprep.subr.mxu0 %v254_v12 }
  0x27   : > { %507 = vmatpush3.msra.mxu0 %v254_v12 }
  0x28   : > { %509 = vmatmul.mubr.msk.f32.vlgmr.msra.gmra.mxu0 %vm273_vm0, %v253_v13 }
  0xe8   : > { %v510_v15 = vpop.f32.mrf.mxu0 }
  0xe9   : > { %v352_v17 = vadd.f32 %v510_v15, %v462_v14 }
  0xea   : > { %v346_v18 = vpop.f32.mrf.mxu0 }
  0xeb   : > { %v358_v20 = vadd.f32 %v356_v16, %v352_v17  ;;  %v347_v21 = vadd.f32 %v462_v14, %v346_v18 }
  0xed   : > { %361 = vst.msk [vmem:[%s251_s7 + $0x8] sm:$0xff] %vm359_vm1, %v358_v20  ;;  %v357_v22 = vadd.f32 %v355_v19, %v347_v21 }
  0xef   : > { %360 = vst.msk [vmem:[%s251_s7] sm:$0xff] %vm359_vm1, %v357_v22 }
  0xf0 PF: > { %s14_s15 = sadd.s32 1, %s526_s15  }
  0xf1   : > { %p11_p4 = scmp.ge.s32.totalorder %s14_s15, 6  }
  0xf3   :  { %13 = sbr.rel (!%p11_p4) target bundleno = 1 (0x1), region = 75 }

// kernel: baseline_forward.11
= control target key start
LH: loop header
LB: loop body
LE: loop exit
PB: predicated region body
PF: predicated region fallthrough
CT: control target
= control target key end

     0   :  { %s1189_s18 = smov 0   ;;  %s1271_s0 = inlined_call_operand.vmem [shape: f32[4,16,16], index: 0, kind: input, shape index: {}]   ;;  %s1272_s1 = inlined_call_operand.vmem [shape: f32[4,4,16,32], index: 1, kind: input, shape index: {}]   ;;  %s1273_s2 = inlined_call_operand.vmem [shape: f32[4,4,1,32], index: 2, kind: input, shape index: {}]   ;;  %s1274_s3 = inlined_call_operand.vmem [shape: f32[4,16,96], index: 3, kind: input, shape index: {}]   ;;  %s1275_s4 = inlined_call_operand.vmem [shape: f32[4,1,96], index: 4, kind: input, shape index: {}]   ;;  %s1276_s5 = inlined_call_operand.vmem [shape: f32[4,16,96], index: 5, kind: output, shape index: {}]  }
   0x1 LB: > { %s1010_s19 = sadd.s32 4294967295, %s1156_s18   ;;  %p1014_p0 = scmp.ge.s32.totalorder %s1156_s18, 1  ;;  %s1156_s18 = sphi %s1189_s18, %s15_s18  }
   0x2   : > { %p224_p1 = scmp.lt.s32.totalorder %s1156_s18, 5 }
   0x4   : > { %p225_p2 = pnand %p1014_p0, %p224_p1 }
   0x5   : > { %p269_p3 = scmp.lt.s32.totalorder (!%p225_p2), %s1010_s19, 3  ;;  %s1158_s7 = smov (!%p225_p2), 112  }
   0x6   : > { %228 = sbr.rel (%p225_p2) target bundleno = 1640 (0x668), region = 40 }
   0xb   : > { %s1278_s19 = smov (!%p269_p3, %s1010_s19), 3  ;;  %vm307_vm0 = vcmask 130048   ;;  %vm907_vm1 = vcmask 785408  }
   0xc   : > { %s1051_s20 = sshll.u32 %s1278_s19, 6  ;;  %s1201_s21 = sshll.u32 %s1278_s19, 4 }
   0xd   : > { %s1206_s24 = scalar_lea.vmem %s1272_s1, %s1051_s20  ;;  %s273_s27 = scalar_lea.vmem %s1271_s0, %s1201_s21 }
   0xe   : > { %v299_v0 = vld [vmem:[%s1206_s24 + $0x8] sm:$0xff]  ;;  %v298_v1 = vld [vmem:[%s1206_s24] sm:$0xff]  ;;  %s1019_s28 = sshll.u32 %s1278_s19, 2  ;;  %v1028_v17 = vld [vmem:[%s1206_s24 + $0x18] sm:$0xff]  ;;  %s287_s10 = scalar_lea.vmem %s1274_s3, %s1201_s21 }
   0xf   : > { %v296_v2 = vld [vmem:[%s273_s27] sm:$0xff]  ;;  %1074 = vmatprep.subr.mxu0 %v299_v0  ;;  %v297_v3 = vld [vmem:[%s273_s27 + $0x8] sm:$0xff]  ;;  %s1220_s6 = scalar_lea.vmem %s1273_s2, %s1019_s28  ;;  %v1027_v18 = vld [vmem:[%s1206_s24 + $0x10] sm:$0xff]  ;;  %1081 = vmatprep.subr.mxu1 %v1028_v17  ;;  %s290_s13 = scalar_lea.vmem %s1275_s4, %s1278_s19 }
  0x10   : > { %1078 = vmatprep.mubr.msk.f32.mxu0 %vm307_vm0, %v296_v2  ;;  %1075 = vmatpush3.msra.mxu0 %v299_v0  ;;  %v1024_v4 = vld [vmem:[%s1220_s6] ss:$0 sm:$0xff]  ;;  %v1030_v35 = vld [vmem:[%s1220_s6 + $0x1] ss:$0 sm:$0xff]  ;;  %v1034_v48 = vld [vmem:[%s1206_s24 + $0x28] sm:$0xff]  ;;  %s295_s16 = scalar_lea.vmem %s1276_s5, %s1201_s21 }
  0x11   : > { %1076 = vmatprep.subr.mxu0 %v298_v1  ;;  %1082 = vmatpush3.msra.mxu1 %v1028_v17  ;;  %v1033_v49 = vld [vmem:[%s1206_s24 + $0x20] sm:$0xff] }
  0x12   : > { %1077 = vmatpush3.msra.mxu0 %v298_v1  ;;  %1083 = vmatprep.subr.mxu1 %v1027_v18 }
  0x13   : > { %1079 = vmatmul.mubr.msk.f32.vlgmr.msra.gmra.mxu0 %vm307_vm0, %v297_v3  ;;  %1084 = vmatpush3.msra.mxu1 %v1027_v18 }
  0x14   : > { %1088 = vmatprep.subr.mxu0 %v1034_v48 }
  0x15   : > { %1089 = vmatpush3.msra.mxu0 %v1034_v48 }
  0x16   : > { %1090 = vmatprep.subr.mxu0 %v1033_v49 }
  0x17   : > { %1091 = vmatpush3.msra.mxu0 %v1033_v49 }
  0xd3   : > { %v1080_v5 = vpop.f32.mrf.mxu0 }
  0xd4   : > { %v386_v6 = vadd.f32 %v1080_v5, %v1024_v4 }
  0xd5   : > { %v380_v7 = vpop.f32.mrf.mxu0 }
  0xd6   : > { %v392_v8 = vsub.f32 0.0, %v386_v6  ;;  %v381_v9 = vadd.f32 %v1024_v4, %v380_v7  ;;  %v390_v27 = vmax.f32 %v386_v6, 0.0 }
  0xd8   : > { %v395_v10 = vmul.f32 1.442695, %v392_v8  ;;  %v391_v11 = vsub.f32 0.0, %v381_v9  ;;  %v389_v26 = vmax.f32 %v381_v9, 0.0 }
  0xda   : > { %1118 = vpow2.f32 %v395_v10  ;;  %v393_v12 = vmul.f32 1.442695, %v391_v11 }
  0xdc   : > { %1120 = vpow2.f32 %v393_v12 }
  0xe7   : > { %v1119_v13 = vpop.eup %1118 }
  0xe8   : > { %v398_v14 = vadd.f32 1.0, %v1119_v13 }
  0xe9   : > { %v1121_v15 = vpop.eup %1120 }
  0xea   : > { %1122 = vrcp.f32 %v398_v14  ;;  %v397_v16 = vadd.f32 1.0, %v1121_v15  ;;  %v1040_v15 = vld [vmem:[%s1206_s24 + $0x38] sm:$0xff] }
  0xeb   : > { %1095 = vmatprep.subr.mxu1 %v1040_v15 }
  0xec   : > { %1124 = vrcp.f32 %v397_v16  ;;  %v1039_v16 = vld [vmem:[%s1206_s24 + $0x30] sm:$0xff] }
  0xf7   : > { %v1123_v19 = vpop.eup %1122 }
  0xf8   : > { %407 = vrot.lane.b32.xlu1 %v1123_v19, %s1158_s7  ;;  %v414_v21 = vsub.f32 1.0, %v1123_v19 }
  0xf9   : > { %v1125_v20 = vpop.eup %1124 }
  0xfa   : > { %405 = vrot.lane.b32.xlu0 %v1125_v20, %s1158_s7  ;;  %v413_v22 = vsub.f32 1.0, %v1125_v20 }
  0xfc   : > { %419 = vrot.lane.b32.xlu1 %v414_v21, %s1158_s7 }
  0xfe   : > { %417 = vrot.lane.b32.xlu0 %v413_v22, %s1158_s7 }
 0x16a   : > { %v408_v23 = vpop.permute.xlu1 %407 }
 0x16b   : > { %v412_v32 = vmul.f32 %v408_v23, %v390_v27 }
 0x16c   : > { %v406_v24 = vpop.permute.xlu0 %405 }
 0x16d   : > { %v411_v30 = vmul.f32 %v406_v24, %v389_v26 }
 0x16e   : > { %v420_v25 = vpop.permute.xlu1 %419 }
 0x16f   : > { %v424_v28 = vmul.f32 %v420_v25, %v297_v3 }
 0x170   : > { %v418_v29 = vpop.permute.xlu0 %417 }
 0x171   : > { %v423_v31 = vmul.f32 %v418_v29, %v296_v2  ;;  %v426_v34 = vadd.f32 %v424_v28, %v412_v32  ;;  %v1036_v2 = vld [vmem:[%s1220_s6 + $0x2] ss:$0 sm:$0xff] }
 0x173   : > { %v425_v33 = vadd.f32 %v423_v31, %v411_v30 }
 0x175   : > { %1085 = vmatprep.mubr.msk.f32.mxu1 %vm307_vm0, %v425_v33 }
 0x176   : > { %1086 = vmatmul.mubr.msk.f32.vlgmr.msra.gmra.mxu1 %vm307_vm0, %v426_v34 }
 0x177   : > { %1096 = vmatpush3.msra.mxu1 %v1040_v15 }
 0x178   : > { %1097 = vmatprep.subr.mxu1 %v1039_v16 }
 0x179   : > { %1098 = vmatpush3.msra.mxu1 %v1039_v16 }
 0x236   : > { %v1087_v36 = vpop.f32.mrf.mxu1 }
 0x237   : > { %v516_v37 = vadd.f32 %v1087_v36, %v1030_v35 }
 0x238   : > { %v510_v38 = vpop.f32.mrf.mxu1 }
 0x239   : > { %v522_v39 = vsub.f32 0.0, %v516_v37  ;;  %v511_v40 = vadd.f32 %v1030_v35, %v510_v38  ;;  %v520_v61 = vmax.f32 %v516_v37, 0.0 }
 0x23b   : > { %v525_v41 = vmul.f32 1.442695, %v522_v39  ;;  %v521_v42 = vsub.f32 0.0, %v511_v40  ;;  %v519_v55 = vmax.f32 %v511_v40, 0.0 }
 0x23d   : > { %1126 = vpow2.f32 %v525_v41  ;;  %v523_v43 = vmul.f32 1.442695, %v521_v42 }
 0x23f   : > { %1128 = vpow2.f32 %v523_v43 }
 0x24a   : > { %v1127_v44 = vpop.eup %1126 }
 0x24b   : > { %v528_v46 = vadd.f32 1.0, %v1127_v44 }
 0x24c   : > { %v1129_v45 = vpop.eup %1128 }
 0x24d   : > { %v527_v47 = vadd.f32 1.0, %v1129_v45 }
 0x24f   : > { %1130 = vrcp.f32 %v527_v47  ;;  %v817_v47 = vld [vmem:[%s287_s10] sm:$0xff] }
 0x250   : > { %1132 = vrcp.f32 %v528_v46  ;;  %v818_v46 = vld [vmem:[%s287_s10 + $0x8] sm:$0xff] }
 0x251   : > { %1102 = vmatprep.subr.mxu0 %v818_v46 }
 0x25c   : > { %v1131_v50 = vpop.eup %1130 }
 0x25d   : > { %535 = vrot.lane.b32.xlu0 %v1131_v50, %s1158_s7  ;;  %v543_v51 = vsub.f32 1.0, %v1131_v50  ;;  %v1133_v52 = vpop.eup %1132 }
 0x25e   : > { %v544_v53 = vsub.f32 1.0, %v1133_v52 }
 0x25f   : > { %547 = vrot.lane.b32.xlu1 %v543_v51, %s1158_s7 }
 0x261   : > { %537 = vrot.lane.b32.xlu0 %v1133_v52, %s1158_s7 }
 0x263   : > { %549 = vrot.lane.b32.xlu1 %v544_v53, %s1158_s7 }
 0x2cf   : > { %v536_v54 = vpop.permute.xlu0 %535 }
 0x2d0   : > { %v541_v57 = vmul.f32 %v536_v54, %v519_v55 }
 0x2d1   : > { %v548_v56 = vpop.permute.xlu1 %547 }
 0x2d2   : > { %v553_v58 = vmul.f32 %v548_v56, %v425_v33  ;;  %v1042_v33 = vld [vmem:[%s1220_s6 + $0x3] ss:$0 sm:$0xff] }
 0x2d3   : > { %v538_v59 = vpop.permute.xlu0 %537 }
 0x2d4   : > { %v555_v60 = vadd.f32 %v553_v58, %v541_v57  ;;  %v542_v63 = vmul.f32 %v538_v59, %v520_v61 }
 0x2d5   : > { %v550_v62 = vpop.permute.xlu1 %549 }
 0x2d6   : > { %v554_v0 = vmul.f32 %v550_v62, %v426_v34  ;;  %1092 = vmatprep.mubr.msk.f32.mxu0 %vm307_vm0, %v555_v60 }
 0x2d8   : > { %v556_v1 = vadd.f32 %v554_v0, %v542_v63  ;;  %v1045_v0 = vld [vmem:[%s290_s13] ss:$0 sm:$0xff] }
 0x2da   : > { %1093 = vmatmul.mubr.msk.f32.vlgmr.msra.gmra.mxu0 %vm307_vm0, %v556_v1 }
 0x2db   : > { %1103 = vmatpush3.msra.mxu0 %v818_v46 }
 0x2dc   : > { %1104 = vmatprep.subr.mxu0 %v817_v47 }
 0x2dd   : > { %1105 = vmatpush3.msra.mxu0 %v817_v47 }
 0x39a   : > { %v1094_v3 = vpop.f32.mrf.mxu0 }
 0x39b   : > { %v646_v4 = vadd.f32 %v1094_v3, %v1036_v2 }
 0x39c   : > { %v640_v5 = vpop.f32.mrf.mxu0 }
 0x39d   : > { %v652_v6 = vsub.f32 0.0, %v646_v4  ;;  %v641_v7 = vadd.f32 %v1036_v2, %v640_v5  ;;  %v650_v28 = vmax.f32 %v646_v4, 0.0 }
 0x39f   : > { %v655_v8 = vmul.f32 1.442695, %v652_v6  ;;  %v651_v9 = vsub.f32 0.0, %v641_v7  ;;  %v649_v22 = vmax.f32 %v641_v7, 0.0 }
 0x3a1   : > { %1134 = vpow2.f32 %v655_v8  ;;  %v653_v10 = vmul.f32 1.442695, %v651_v9 }
 0x3a3   : > { %1136 = vpow2.f32 %v653_v10 }
 0x3ae   : > { %v1135_v11 = vpop.eup %1134 }
 0x3af   : > { %v658_v13 = vadd.f32 1.0, %v1135_v11 }
 0x3b0   : > { %v1137_v12 = vpop.eup %1136 }
 0x3b1   : > { %v657_v14 = vadd.f32 1.0, %v1137_v12 }
 0x3b3   : > { %1138 = vrcp.f32 %v657_v14 }
 0x3b4   : > { %1140 = vrcp.f32 %v658_v13 }
 0x3c0   : > { %v1139_v17 = vpop.eup %1138 }
 0x3c1   : > { %665 = vrot.lane.b32.xlu0 %v1139_v17, %s1158_s7  ;;  %v673_v18 = vsub.f32 1.0, %v1139_v17  ;;  %v1141_v19 = vpop.eup %1140 }
 0x3c2   : > { %v674_v20 = vsub.f32 1.0, %v1141_v19 }
 0x3c3   : > { %677 = vrot.lane.b32.xlu1 %v673_v18, %s1158_s7 }
 0x3c5   : > { %667 = vrot.lane.b32.xlu0 %v1141_v19, %s1158_s7 }
 0x3c7   : > { %679 = vrot.lane.b32.xlu1 %v674_v20, %s1158_s7 }
 0x433   : > { %v666_v21 = vpop.permute.xlu0 %665 }
 0x434   : > { %v671_v24 = vmul.f32 %v666_v21, %v649_v22 }
 0x435   : > { %v678_v23 = vpop.permute.xlu1 %677 }
 0x436   : > { %v683_v25 = vmul.f32 %v678_v23, %v555_v60 }
 0x437   : > { %v668_v26 = vpop.permute.xlu0 %667 }
 0x438   : > { %v685_v27 = vadd.f32 %v683_v25, %v671_v24  ;;  %v672_v30 = vmul.f32 %v668_v26, %v650_v28 }
 0x439   : > { %v680_v29 = vpop.permute.xlu1 %679 }
 0x43a   : > { %v684_v31 = vmul.f32 %v680_v29, %v556_v1  ;;  %1099 = vmatprep.mubr.msk.f32.mxu1 %vm307_vm0, %v685_v27 }
 0x43c   : > { %v686_v32 = vadd.f32 %v684_v31, %v672_v30 }
 0x43e   : > { %1100 = vmatmul.mubr.msk.f32.vlgmr.msra.gmra.mxu1 %vm307_vm0, %v686_v32 }
 0x4fe   : > { %v1101_v34 = vpop.f32.mrf.mxu1 }
 0x4ff   : > { %v776_v35 = vadd.f32 %v1101_v34, %v1042_v33 }
 0x500   : > { %v770_v36 = vpop.f32.mrf.mxu1 }
 0x501   : > { %v782_v37 = vsub.f32 0.0, %v776_v35  ;;  %v771_v38 = vadd.f32 %v1042_v33, %v770_v36  ;;  %v780_v59 = vmax.f32 %v776_v35, 0.0 }
 0x503   : > { %v785_v39 = vmul.f32 1.442695, %v782_v37  ;;  %v781_v40 = vsub.f32 0.0, %v771_v38  ;;  %v779_v53 = vmax.f32 %v771_v38, 0.0 }
 0x505   : > { %1142 = vpow2.f32 %v785_v39  ;;  %v783_v41 = vmul.f32 1.442695, %v781_v40 }
 0x507   : > { %1144 = vpow2.f32 %v783_v41 }
 0x512   : > { %v1143_v42 = vpop.eup %1142 }
 0x513   : > { %v788_v44 = vadd.f32 1.0, %v1143_v42 }
 0x514   : > { %v1145_v43 = vpop.eup %1144 }
 0x515   : > { %v787_v45 = vadd.f32 1.0, %v1145_v43 }
 0x517   : > { %1146 = vrcp.f32 %v787_v45 }
 0x518   : > { %1148 = vrcp.f32 %v788_v44 }
 0x524   : > { %v1147_v48 = vpop.eup %1146 }
 0x525   : > { %795 = vrot.lane.b32.xlu0 %v1147_v48, %s1158_s7  ;;  %v803_v49 = vsub.f32 1.0, %v1147_v48  ;;  %v1149_v50 = vpop.eup %1148 }
 0x526   : > { %v804_v51 = vsub.f32 1.0, %v1149_v50 }
 0x527   : > { %807 = vrot.lane.b32.xlu1 %v803_v49, %s1158_s7 }
 0x529   : > { %797 = vrot.lane.b32.xlu0 %v1149_v50, %s1158_s7 }
 0x52b   : > { %809 = vrot.lane.b32.xlu1 %v804_v51, %s1158_s7 }
 0x597   : > { %v796_v52 = vpop.permute.xlu0 %795 }
 0x598   : > { %v801_v55 = vmul.f32 %v796_v52, %v779_v53 }
 0x599   : > { %v808_v54 = vpop.permute.xlu1 %807 }
 0x59a   : > { %v813_v56 = vmul.f32 %v808_v54, %v685_v27 }
 0x59b   : > { %v798_v57 = vpop.permute.xlu0 %797 }
 0x59c   : > { %v815_v58 = vadd.f32 %v813_v56, %v801_v55  ;;  %v802_v61 = vmul.f32 %v798_v57, %v780_v59 }
 0x59d   : > { %v810_v60 = vpop.permute.xlu1 %809 }
 0x59e   : > { %v814_v62 = vmul.f32 %v810_v60, %v686_v32  ;;  %1106 = vmatprep.mubr.msk.f32.mxu0 %vm307_vm0, %v815_v58 }
 0x5a0   : > { %v816_v63 = vadd.f32 %v814_v62, %v802_v61 }
 0x5a2   : > { %1107 = vmatmul.mubr.msk.f32.vlgmr.msra.gmra.mxu0 %vm307_vm0, %v816_v63 }
 0x662   : > { %v1108_v1 = vpop.f32.mrf.mxu0 }
 0x663   : > { %v904_v2 = vadd.f32 %v1108_v1, %v1045_v0 }
 0x664   : > { %v898_v3 = vpop.f32.mrf.mxu0 }
 0x665   : > { %909 = vst.msk [vmem:[%s295_s16 + $0x8] sm:$0xff] %vm907_vm1, %v904_v2  ;;  %v899_v4 = vadd.f32 %v1045_v0, %v898_v3 }
 0x667   : > { %908 = vst.msk [vmem:[%s295_s16] sm:$0xff] %vm907_vm1, %v899_v4 }
 0x668 PF: > { %s15_s18 = sadd.s32 1, %s1156_s18  }
 0x669   : > { %p12_p4 = scmp.ge.s32.totalorder %s15_s18, 6  }
 0x66b   :  { %14 = sbr.rel (!%p12_p4) target bundleno = 1 (0x1), region = 88 }

// kernel: baseline_forward.12
= control target key start
LH: loop header
LB: loop body
LE: loop exit
PB: predicated region body
PF: predicated region fallthrough
CT: control target
= control target key end

     0   :  { %s1751_s12 = smov 0   ;;  %s2018_s0 = inlined_call_operand.vmem [shape: f32[4,8,2,96], index: 0, kind: input, shape index: {}]   ;;  %s2019_s1 = inlined_call_operand.vmem [shape: f32[4,32,96], index: 1, kind: input, shape index: {}]   ;;  %s2020_s2 = inlined_call_operand.vmem [shape: f32[4,1,96], index: 2, kind: input, shape index: {}]   ;;  %s2021_s3 = inlined_call_operand.vmem [shape: f32[4,8,2,32], index: 3, kind: output, shape index: {}]  }
   0x1 LB: > { %s1423_s13 = sadd.s32 4294967295, %s1721_s12   ;;  %p1427_p0 = scmp.ge.s32.totalorder %s1721_s12, 1  ;;  %s1721_s12 = sphi %s1751_s12, %s13_s12  }
   0x2   : > { %p155_p1 = scmp.lt.s32.totalorder %s1721_s12, 5 }
   0x4   : > { %p156_p2 = pnand %p1427_p0, %p155_p1 }
   0x5   : > { %p187_p3 = scmp.lt.s32.totalorder (!%p156_p2), %s1423_s13, 3  ;;  %s1725_s21 = smov (!%p156_p2), 96  }
   0x6   : > { %159 = sbr.rel (%p156_p2) target bundleno = 5475 (0x1563), region = 32  ;;  %s1726_s26 = smov (!%p156_p2), 32  }
   0x7   : > { %s1727_s27 = smov (!%p156_p2), 112   ;;  %s1728_s28 = smov (!%p156_p2), 80  }
   0x8   : > { %s1729_s5 = smov (!%p156_p2), 16   ;;  %s1730_s6 = smov (!%p156_p2), 48  }
   0xb   : > { %v1723_v0 = vmov 0.0   ;;  %vm1724_vm0 = vmmov 0   ;;  %s2023_s13 = smov (!%p187_p3, %s1423_s13), 3  ;;  %vm354_vm1 = vcmask 255104   ;;  %vm351_vm2 = vcmask 123904  }
   0xc   : > { %1515 = vmatprep.subr.mxu0 %v1723_v0  ;;  %1523 = vmatprep.mubr.msk.f32.mxu0 %vm1724_vm0, %v1723_v0  ;;  %s1473_s14 = sshll.u32 %s2023_s13, 5  ;;  %s199_s20 = scalar_lea.vmem %s2020_s2, %s2023_s13  ;;  %vm349_vm3 = vcmask 130048   ;;  %vm219_vm4 = vcmask 261120  }
   0xd   : > { %1526 = vmatprep.subr.mxu1 %v1723_v0  ;;  %1534 = vmatprep.mubr.msk.f32.mxu1 %vm1724_vm0, %v1723_v0  ;;  %s196_s17 = scalar_lea.vmem %s2019_s1, %s1473_s14  ;;  %v1810_v5 = vld [vmem:[%s199_s20] ss:$0 sm:$0xff]  ;;  %s1472_s22 = sshll.u32 %s2023_s13, 4 }
   0xe   : > { %v1771_v1 = vld [vmem:[%s196_s17 + $0x18] sm:$0xff]  ;;  %v1773_v2 = vld [vmem:[%s196_s17 + $0x10] sm:$0xff]  ;;  %v1778_v3 = vld [vmem:[%s196_s17 + $0x8] sm:$0xff]  ;;  %s1820_s25 = scalar_lea.vmem %s2018_s0, %s1472_s22  ;;  %s1835_s4 = scalar_lea.vmem %s2021_s3, %s1472_s22 }
   0xf   : > { %1516 = vmatpush3.msra.mxu0 %v1771_v1  ;;  %1527 = vmatpush3.msra.mxu1 %v1771_v1  ;;  %v1784_v4 = vld [vmem:[%s196_s17] sm:$0xff]  ;;  %v1434_v10 = vld [vmem:[%s1820_s25 + $0xe] sm:$0x3]  ;;  %v1438_v49 = vld [vmem:[%s1820_s25 + $0xc] sm:$0x3] }
  0x10   : > { %1517 = vmatprep.subr.mxu0 %v1723_v0  ;;  %1528 = vmatprep.subr.mxu1 %v1723_v0  ;;  %v210_v9 = vld [vmem:[%s1820_s25] sm:$0x3]  ;;  %v1437_v48 = vld [vmem:[%s1820_s25 + $0x2] sm:$0x3] }
  0x11   : > { %1518 = vmatpush3.msra.mxu0 %v1773_v2  ;;  %1529 = vmatpush3.msra.mxu1 %v1773_v2 }
  0x12   : > { %1519 = vmatprep.subr.mxu0 %v1723_v0  ;;  %1530 = vmatprep.subr.mxu1 %v1723_v0 }
  0x13   : > { %1520 = vmatpush3.msra.mxu0 %v1778_v3  ;;  %1531 = vmatpush3.msra.mxu1 %v1778_v3 }
  0x14   : > { %1521 = vmatprep.subr.mxu0 %v1723_v0  ;;  %1532 = vmatprep.subr.mxu1 %v1723_v0 }
  0x15   : > { %1522 = vmatpush3.msra.mxu0 %v1784_v4  ;;  %1533 = vmatpush3.msra.mxu1 %v1784_v4 }
  0x16   : > { %1524 = vmatmul.mubr.f32.vlgmr.msra.gmra.mxu0 %v1723_v0  ;;  %1537 = vmatprep.subr.mxu0 %v1723_v0 }
  0x17   : > { %1538 = vmatpush3.msra.mxu0 %v1771_v1  ;;  %1545 = vmatprep.mubr.msk.f32.mxu0 %vm1724_vm0, %v1723_v0 }
  0x18   : > { %1539 = vmatprep.subr.mxu0 %v1723_v0  ;;  %1548 = vmatprep.subr.mxu1 %v1723_v0 }
  0x19   : > { %1540 = vmatpush3.msra.mxu0 %v1773_v2 }
  0x1a   : > { %1541 = vmatprep.subr.mxu0 %v1723_v0 }
  0x1b   : > { %1542 = vmatpush3.msra.mxu0 %v1778_v3 }
  0x1c   : > { %1543 = vmatprep.subr.mxu0 %v1723_v0 }
  0x1d   : > { %1544 = vmatpush3.msra.mxu0 %v1784_v4 }
  0x1e   : > { %1559 = vmatprep.subr.mxu0 %v1723_v0 }
  0xd6   : > { %v289_v6 = vpop.f32.mrf.mxu0 }
  0xd7   : > { %v290_v7 = vadd.f32 %v1810_v5, %v289_v6 }
  0xd8   : > { %v1525_v8 = vpop.f32.mrf.mxu0 }
  0xd9   : > { %301 = vrot.lane.b32.xlu0 %v290_v7, %s1725_s21  ;;  %v293_v11 = vadd.f32 %v290_v7, %v210_v9  ;;  %v319_v12 = vadd.f32 %v1434_v10, %v290_v7 }
  0xdb   : > { %v294_v13 = vsub.f32 0.0, %v293_v11  ;;  %v320_v14 = vsub.f32 0.0, %v319_v12 }
  0xdd   : > { %v295_v15 = vmul.f32 1.442695, %v294_v13  ;;  %v321_v16 = vmul.f32 1.442695, %v320_v14 }
  0xdf   : > { %1619 = vpow2.f32 %v295_v15 }
  0xe0   : > { %1621 = vpow2.f32 %v321_v16 }
  0xec   : > { %v1620_v17 = vpop.eup %1619 }
  0xed   : > { %v1622_v18 = vpop.eup %1621  ;;  %v297_v19 = vadd.f32 1.0, %v1620_v17 }
  0xee   : > { %v323_v20 = vadd.f32 1.0, %v1622_v18 }
  0xef   : > { %1623 = vrcp.f32 %v297_v19 }
  0xf0   : > { %1625 = vrcp.f32 %v323_v20 }
  0xfc   : > { %v1624_v21 = vpop.eup %1623 }
  0xfd   : > { %v1626_v22 = vpop.eup %1625  ;;  %v311_v33 = vsub.f32 1.0, %v1624_v21  ;;  %v317_v38 = vmul.f32 0.0, %v1624_v21 }
  0xfe   : > { %v333_v32 = vsub.f32 1.0, %v1626_v22  ;;  %v339_v36 = vmul.f32 0.0, %v1626_v22 }
 0x14b   : > { %v302_v23 = vpop.permute.xlu0 %301 }
 0x14c   : > { %v304_v24 = vmul.f32 %v1624_v21, %v302_v23  ;;  %v326_v25 = vmul.f32 %v1626_v22, %v302_v23 }
 0x14e   : > { %328 = vrot.lane.b32.xlu1 %v326_v25, %s1726_s26  ;;  %306 = vrot.lane.b32.xlu0 %v304_v24, %s1726_s26 }
 0x1c0   : > { %v329_v26 = vpop.permute.xlu1 %328  ;;  %v307_v27 = vpop.permute.xlu0 %306 }
 0x1c1   : > { %v331_v28 = vadd.f32 %v1434_v10, %v329_v26  ;;  %v309_v29 = vadd.f32 %v307_v27, %v210_v9 }
 0x1c3   : > { %1627 = vtanh.f32 %v331_v28 }
 0x1c4   : > { %1629 = vtanh.f32 %v309_v29 }
 0x1d0   : > { %v1628_v30 = vpop.eup %1627 }
 0x1d1   : > { %v1630_v31 = vpop.eup %1629  ;;  %335 = vrot.lane.b32.xlu0 %v1628_v30, %s1727_s27 }
 0x1d2   : > { %313 = vrot.lane.b32.xlu1 %v1630_v31, %s1727_s27  ;;  %v1442_v31 = vld [vmem:[%s1820_s25 + $0x4] sm:$0x3] }
 0x243   : > { %v336_v34 = vpop.permute.xlu0 %335 }
 0x244   : > { %v314_v35 = vpop.permute.xlu1 %313  ;;  %v338_v37 = vmul.f32 %v336_v34, %v333_v32  ;;  %v1443_v32 = vld [vmem:[%s1820_s25 + $0xa] sm:$0x3] }
 0x245   : > { %v316_v39 = vmul.f32 %v314_v35, %v311_v33 }
 0x246   : > { %v340_v40 = vadd.f32 %v339_v36, %v338_v37 }
 0x247   : > { %v318_v41 = vadd.f32 %v317_v38, %v316_v39 }
 0x248   : > { %346 = vrot.lane.b32.xlu0 %v340_v40, %s1728_s28 }
 0x249   : > { %342 = vrot.lane.b32.xlu1 %v318_v41, %s1727_s27 }
 0x2ba   : > { %v347_v42 = vpop.permute.xlu0 %346 }
 0x2bb   : > { %v343_v43 = vpop.permute.xlu1 %342  ;;  %1436 = vst.msk [vmem:[%s1835_s4 + $0xe] sm:$0x3] %vm354_vm1, %v347_v42 }
 0x2bc   : > { %352 = vst.msk [vmem:[%s1835_s4] sm:$0x3] %vm351_vm2, %v343_v43  ;;  %v350_v44 = vsel %vm349_vm3, %v343_v43, %v347_v42 }
 0x2bd   : > { %1535 = vmatmul.mubr.msk.f32.vlgmr.msra.gmra.mxu1 %vm219_vm4, %v350_v44 }
 0x2be   : > { %1549 = vmatpush3.msra.mxu1 %v1771_v1  ;;  %1556 = vmatprep.mubr.msk.f32.mxu1 %vm1724_vm0, %v1723_v0 }
 0x2bf   : > { %1550 = vmatprep.subr.mxu1 %v1723_v0 }
 0x2c0   : > { %1551 = vmatpush3.msra.mxu1 %v1773_v2 }
 0x2c1   : > { %1552 = vmatprep.subr.mxu1 %v1723_v0 }
 0x2c2   : > { %1553 = vmatpush3.msra.mxu1 %v1778_v3 }
 0x2c3   : > { %1554 = vmatprep.subr.mxu1 %v1723_v0 }
 0x2c4   : > { %1555 = vmatpush3.msra.mxu1 %v1784_v4 }
 0x2c5   : > { %1570 = vmatprep.subr.mxu1 %v1723_v0 }
 0x37d   : > { %v429_v45 = vpop.f32.mrf.mxu1 }
 0x37e   : > { %v430_v46 = vadd.f32 %v1810_v5, %v429_v45 }
 0x37f   : > { %v1536_v47 = vpop.f32.mrf.mxu1 }
 0x380   : > { %441 = vrot.lane.b32.xlu1 %v430_v46, %s1725_s21  ;;  %v433_v50 = vadd.f32 %v1437_v48, %v430_v46  ;;  %v462_v51 = vadd.f32 %v1438_v49, %v430_v46 }
 0x382   : > { %v434_v52 = vsub.f32 0.0, %v433_v50  ;;  %v463_v53 = vsub.f32 0.0, %v462_v51 }
 0x384   : > { %v435_v54 = vmul.f32 1.442695, %v434_v52  ;;  %v464_v55 = vmul.f32 1.442695, %v463_v53 }
 0x386   : > { %1631 = vpow2.f32 %v435_v54 }
 0x387   : > { %1633 = vpow2.f32 %v464_v55 }
 0x393   : > { %v1632_v56 = vpop.eup %1631 }
 0x394   : > { %v1634_v57 = vpop.eup %1633  ;;  %v437_v58 = vadd.f32 1.0, %v1632_v56 }
 0x395   : > { %v466_v59 = vadd.f32 1.0, %v1634_v57 }
 0x396   : > { %1635 = vrcp.f32 %v437_v58 }
 0x397   : > { %1637 = vrcp.f32 %v466_v59 }
 0x3a3   : > { %v1636_v60 = vpop.eup %1635 }
 0x3a4   : > { %v1638_v61 = vpop.eup %1637  ;;  %v451_v14 = vsub.f32 1.0, %v1636_v60 }
 0x3a5   : > { %v476_v20 = vsub.f32 1.0, %v1638_v61 }
 0x3f2   : > { %v442_v62 = vpop.permute.xlu1 %441 }
 0x3f3   : > { %v444_v63 = vmul.f32 %v1636_v60, %v442_v62  ;;  %v469_v6 = vmul.f32 %v1638_v61, %v442_v62 }
 0x3f5   : > { %471 = vrot.lane.b32.xlu1 %v469_v6, %s1726_s26  ;;  %446 = vrot.lane.b32.xlu0 %v444_v63, %s1726_s26 }
 0x3f9   : > { %457 = vrot.lane.b32.xlu1 %v350_v44, %s1729_s5 }
 0x3fd   : > { %482 = vrot.lane.b32.xlu1 %v350_v44, %s1730_s6 }
 0x467   : > { %v447_v7 = vpop.permute.xlu0 %446  ;;  %v472_v8 = vpop.permute.xlu1 %471 }
 0x468   : > { %v449_v9 = vadd.f32 %v1437_v48, %v447_v7  ;;  %v474_v10 = vadd.f32 %v1438_v49, %v472_v8 }
 0x46a   : > { %1639 = vtanh.f32 %v449_v9 }
 0x46b   : > { %1641 = vtanh.f32 %v474_v10  ;;  %v458_v13 = vpop.permute.xlu1 %457 }
 0x46c   : > { %v460_v16 = vmul.f32 %v1636_v60, %v458_v13 }
 0x46f   : > { %v483_v18 = vpop.permute.xlu1 %482 }
 0x470   : > { %v485_v22 = vmul.f32 %v1638_v61, %v483_v18 }
 0x477   : > { %v1640_v11 = vpop.eup %1639 }
 0x478   : > { %453 = vrot.lane.b32.xlu0 %v1640_v11, %s1727_s27  ;;  %v1642_v12 = vpop.eup %1641 }
 0x47c   : > { %478 = vrot.lane.b32.xlu0 %v1642_v12, %s1727_s27 }
 0x4ea   : > { %v454_v15 = vpop.permute.xlu0 %453 }
 0x4eb   : > { %v456_v17 = vmul.f32 %v454_v15, %v451_v14  ;;  %v1447_v14 = vld [vmem:[%s1820_s25 + $0x6] sm:$0x3]  ;;  %v1448_v15 = vld [vmem:[%s1820_s25 + $0x8] sm:$0x3] }
 0x4ed   : > { %v461_v19 = vadd.f32 %v460_v16, %v456_v17 }
 0x4ee   : > { %v479_v21 = vpop.permute.xlu0 %478 }
 0x4ef   : > { %v481_v23 = vmul.f32 %v479_v21, %v476_v20  ;;  %488 = vrot.lane.b32.xlu0 %v461_v19, %s1727_s27 }
 0x4f1   : > { %v486_v24 = vadd.f32 %v485_v22, %v481_v23 }
 0x4f3   : > { %492 = vrot.lane.b32.xlu1 %v486_v24, %s1728_s28 }
 0x561   : > { %v489_v25 = vpop.permute.xlu0 %488 }
 0x562   : > { %1440 = vst.msk [vmem:[%s1835_s4 + $0x2] sm:$0x3] %vm351_vm2, %v489_v25 }
 0x565   : > { %v493_v26 = vpop.permute.xlu1 %492 }
 0x566   : > { %v495_v27 = vsel %vm349_vm3, %v489_v25, %v493_v26  ;;  %1441 = vst.msk [vmem:[%s1835_s4 + $0xc] sm:$0x3] %vm354_vm1, %v493_v26 }
 0x567   : > { %1546 = vmatmul.mubr.msk.f32.vlgmr.msra.gmra.mxu0 %vm219_vm4, %v495_v27 }
 0x568   : > { %1560 = vmatpush3.msra.mxu0 %v1771_v1  ;;  %1567 = vmatprep.mubr.msk.f32.mxu0 %vm1724_vm0, %v1723_v0 }
 0x569   : > { %1561 = vmatprep.subr.mxu0 %v1723_v0 }
 0x56a   : > { %1562 = vmatpush3.msra.mxu0 %v1773_v2 }
 0x56b   : > { %1563 = vmatprep.subr.mxu0 %v1723_v0 }
 0x56c   : > { %1564 = vmatpush3.msra.mxu0 %v1778_v3 }
 0x56d   : > { %1565 = vmatprep.subr.mxu0 %v1723_v0 }
 0x56e   : > { %1566 = vmatpush3.msra.mxu0 %v1784_v4 }
 0x56f   : > { %1581 = vmatprep.subr.mxu0 %v1723_v0 }
 0x627   : > { %v573_v28 = vpop.f32.mrf.mxu0 }
 0x628   : > { %v574_v29 = vadd.f32 %v1810_v5, %v573_v28 }
 0x629   : > { %v1547_v30 = vpop.f32.mrf.mxu0 }
 0x62a   : > { %585 = vrot.lane.b32.xlu0 %v574_v29, %s1725_s21  ;;  %v577_v33 = vadd.f32 %v1442_v31, %v574_v29  ;;  %v606_v34 = vadd.f32 %v1443_v32, %v574_v29 }
 0x62c   : > { %v578_v35 = vsub.f32 0.0, %v577_v33  ;;  %v607_v36 = vsub.f32 0.0, %v606_v34 }
 0x62e   : > { %v579_v37 = vmul.f32 1.442695, %v578_v35  ;;  %v608_v38 = vmul.f32 1.442695, %v607_v36 }
 0x630   : > { %1643 = vpow2.f32 %v579_v37 }
 0x631   : > { %1645 = vpow2.f32 %v608_v38 }
 0x63d   : > { %v1644_v39 = vpop.eup %1643 }
 0x63e   : > { %v1646_v40 = vpop.eup %1645  ;;  %v581_v41 = vadd.f32 1.0, %v1644_v39 }
 0x63f   : > { %v610_v42 = vadd.f32 1.0, %v1646_v40 }
 0x640   : > { %1647 = vrcp.f32 %v581_v41 }
 0x641   : > { %1649 = vrcp.f32 %v610_v42 }
 0x64d   : > { %v1648_v43 = vpop.eup %1647 }
 0x64e   : > { %v1650_v44 = vpop.eup %1649  ;;  %v595_v55 = vsub.f32 1.0, %v1648_v43 }
 0x64f   : > { %v620_v61 = vsub.f32 1.0, %v1650_v44 }
 0x69c   : > { %v586_v45 = vpop.permute.xlu0 %585 }
 0x69d   : > { %v588_v46 = vmul.f32 %v1648_v43, %v586_v45  ;;  %v613_v47 = vmul.f32 %v1650_v44, %v586_v45 }
 0x69f   : > { %615 = vrot.lane.b32.xlu0 %v613_v47, %s1726_s26  ;;  %590 = vrot.lane.b32.xlu1 %v588_v46, %s1726_s26 }
 0x6a3   : > { %601 = vrot.lane.b32.xlu0 %v495_v27, %s1729_s5 }
 0x6a7   : > { %626 = vrot.lane.b32.xlu0 %v495_v27, %s1730_s6 }
 0x711   : > { %v591_v48 = vpop.permute.xlu1 %590  ;;  %v616_v49 = vpop.permute.xlu0 %615 }
 0x712   : > { %v593_v50 = vadd.f32 %v1442_v31, %v591_v48  ;;  %v618_v51 = vadd.f32 %v1443_v32, %v616_v49 }
 0x714   : > { %1651 = vtanh.f32 %v593_v50 }
 0x715   : > { %1653 = vtanh.f32 %v618_v51  ;;  %v602_v54 = vpop.permute.xlu0 %601 }
 0x716   : > { %v604_v57 = vmul.f32 %v1648_v43, %v602_v54 }
 0x719   : > { %v627_v59 = vpop.permute.xlu0 %626 }
 0x71a   : > { %v629_v63 = vmul.f32 %v1650_v44, %v627_v59 }
 0x721   : > { %v1652_v52 = vpop.eup %1651 }
 0x722   : > { %597 = vrot.lane.b32.xlu1 %v1652_v52, %s1727_s27  ;;  %v1654_v53 = vpop.eup %1653 }
 0x726   : > { %622 = vrot.lane.b32.xlu1 %v1654_v53, %s1727_s27 }
 0x794   : > { %v598_v56 = vpop.permute.xlu1 %597 }
 0x795   : > { %v600_v58 = vmul.f32 %v598_v56, %v595_v55  ;;  %v1452_v55 = vld [vmem:[%s1820_s25 + $0x8] sm:$0x3]  ;;  %v1453_v56 = vld [vmem:[%s1820_s25 + $0x6] sm:$0x3] }
 0x797   : > { %v605_v60 = vadd.f32 %v604_v57, %v600_v58 }
 0x798   : > { %v623_v62 = vpop.permute.xlu1 %622 }
 0x799   : > { %v625_v6 = vmul.f32 %v623_v62, %v620_v61  ;;  %632 = vrot.lane.b32.xlu1 %v605_v60, %s1727_s27 }
 0x79b   : > { %v630_v7 = vadd.f32 %v629_v63, %v625_v6 }
 0x79d   : > { %636 = vrot.lane.b32.xlu0 %v630_v7, %s1728_s28 }
 0x80b   : > { %v633_v8 = vpop.permute.xlu1 %632 }
 0x80c   : > { %1445 = vst.msk [vmem:[%s1835_s4 + $0x4] sm:$0x3] %vm351_vm2, %v633_v8 }
 0x80f   : > { %v637_v9 = vpop.permute.xlu0 %636 }
 0x810   : > { %v639_v10 = vsel %vm349_vm3, %v633_v8, %v637_v9  ;;  %1446 = vst.msk [vmem:[%s1835_s4 + $0xa] sm:$0x3] %vm354_vm1, %v637_v9 }
 0x811   : > { %1557 = vmatmul.mubr.msk.f32.vlgmr.msra.gmra.mxu1 %vm219_vm4, %v639_v10 }
 0x812   : > { %1571 = vmatpush3.msra.mxu1 %v1771_v1  ;;  %1578 = vmatprep.mubr.msk.f32.mxu1 %vm1724_vm0, %v1723_v0 }
 0x813   : > { %1572 = vmatprep.subr.mxu1 %v1723_v0 }
 0x814   : > { %1573 = vmatpush3.msra.mxu1 %v1773_v2 }
 0x815   : > { %1574 = vmatprep.subr.mxu1 %v1723_v0 }
 0x816   : > { %1575 = vmatpush3.msra.mxu1 %v1778_v3 }
 0x817   : > { %1576 = vmatprep.subr.mxu1 %v1723_v0 }
 0x818   : > { %1577 = vmatpush3.msra.mxu1 %v1784_v4 }
 0x819   : > { %1592 = vmatprep.subr.mxu1 %v1723_v0 }
 0x8d1   : > { %v717_v11 = vpop.f32.mrf.mxu1 }
 0x8d2   : > { %v718_v12 = vadd.f32 %v1810_v5, %v717_v11 }
 0x8d3   : > { %v1558_v13 = vpop.f32.mrf.mxu1 }
 0x8d4   : > { %729 = vrot.lane.b32.xlu1 %v718_v12, %s1725_s21  ;;  %v721_v16 = vadd.f32 %v1447_v14, %v718_v12  ;;  %v750_v17 = vadd.f32 %v1448_v15, %v718_v12 }
 0x8d6   : > { %v722_v18 = vsub.f32 0.0, %v721_v16  ;;  %v751_v19 = vsub.f32 0.0, %v750_v17 }
 0x8d8   : > { %v723_v20 = vmul.f32 1.442695, %v722_v18  ;;  %v752_v21 = vmul.f32 1.442695, %v751_v19 }
 0x8da   : > { %1655 = vpow2.f32 %v723_v20 }
 0x8db   : > { %1657 = vpow2.f32 %v752_v21 }
 0x8e7   : > { %v1656_v22 = vpop.eup %1655 }
 0x8e8   : > { %v1658_v23 = vpop.eup %1657  ;;  %v725_v24 = vadd.f32 1.0, %v1656_v22 }
 0x8e9   : > { %v754_v25 = vadd.f32 1.0, %v1658_v23 }
 0x8ea   : > { %1659 = vrcp.f32 %v725_v24 }
 0x8eb   : > { %1661 = vrcp.f32 %v754_v25 }
 0x8f7   : > { %v1660_v26 = vpop.eup %1659 }
 0x8f8   : > { %v1662_v27 = vpop.eup %1661  ;;  %v739_v38 = vsub.f32 1.0, %v1660_v26 }
 0x8f9   : > { %v764_v44 = vsub.f32 1.0, %v1662_v27 }
 0x946   : > { %v730_v28 = vpop.permute.xlu1 %729 }
 0x947   : > { %v732_v29 = vmul.f32 %v1660_v26, %v730_v28  ;;  %v757_v30 = vmul.f32 %v1662_v27, %v730_v28 }
 0x949   : > { %759 = vrot.lane.b32.xlu1 %v757_v30, %s1726_s26  ;;  %734 = vrot.lane.b32.xlu0 %v732_v29, %s1726_s26 }
 0x94d   : > { %745 = vrot.lane.b32.xlu1 %v639_v10, %s1729_s5 }
 0x951   : > { %770 = vrot.lane.b32.xlu1 %v639_v10, %s1730_s6 }
 0x9bb   : > { %v735_v31 = vpop.permute.xlu0 %734  ;;  %v760_v32 = vpop.permute.xlu1 %759 }
 0x9bc   : > { %v737_v33 = vadd.f32 %v1447_v14, %v735_v31  ;;  %v762_v34 = vadd.f32 %v1448_v15, %v760_v32 }
 0x9be   : > { %1663 = vtanh.f32 %v737_v33 }
 0x9bf   : > { %1665 = vtanh.f32 %v762_v34  ;;  %v746_v37 = vpop.permute.xlu1 %745 }
 0x9c0   : > { %v748_v40 = vmul.f32 %v1660_v26, %v746_v37 }
 0x9c3   : > { %v771_v42 = vpop.permute.xlu1 %770 }
 0x9c4   : > { %v773_v46 = vmul.f32 %v1662_v27, %v771_v42 }
 0x9cb   : > { %v1664_v35 = vpop.eup %1663 }
 0x9cc   : > { %741 = vrot.lane.b32.xlu0 %v1664_v35, %s1727_s27  ;;  %v1666_v36 = vpop.eup %1665 }
 0x9d0   : > { %766 = vrot.lane.b32.xlu0 %v1666_v36, %s1727_s27 }
 0xa3e   : > { %v742_v39 = vpop.permute.xlu0 %741 }
 0xa3f   : > { %v744_v41 = vmul.f32 %v742_v39, %v739_v38  ;;  %v1458_v38 = vld [vmem:[%s1820_s25 + $0x4] sm:$0x3] }
 0xa41   : > { %v749_v43 = vadd.f32 %v748_v40, %v744_v41 }
 0xa42   : > { %v767_v45 = vpop.permute.xlu0 %766 }
 0xa43   : > { %v769_v47 = vmul.f32 %v767_v45, %v764_v44  ;;  %776 = vrot.lane.b32.xlu0 %v749_v43, %s1727_s27 }
 0xa45   : > { %v774_v48 = vadd.f32 %v773_v46, %v769_v47 }
 0xa47   : > { %780 = vrot.lane.b32.xlu1 %v774_v48, %s1728_s28 }
 0xab5   : > { %v777_v49 = vpop.permute.xlu0 %776 }
 0xab6   : > { %1450 = vst.msk [vmem:[%s1835_s4 + $0x6] sm:$0x3] %vm351_vm2, %v777_v49 }
 0xab9   : > { %v781_v50 = vpop.permute.xlu1 %780 }
 0xaba   : > { %v783_v51 = vsel %vm349_vm3, %v777_v49, %v781_v50  ;;  %1451 = vst.msk [vmem:[%s1835_s4 + $0x8] sm:$0x3] %vm354_vm1, %v781_v50 }
 0xabb   : > { %1568 = vmatmul.mubr.msk.f32.vlgmr.msra.gmra.mxu0 %vm219_vm4, %v783_v51 }
 0xabc   : > { %1582 = vmatpush3.msra.mxu0 %v1771_v1  ;;  %1589 = vmatprep.mubr.msk.f32.mxu0 %vm1724_vm0, %v1723_v0 }
 0xabd   : > { %1583 = vmatprep.subr.mxu0 %v1723_v0 }
 0xabe   : > { %1584 = vmatpush3.msra.mxu0 %v1773_v2 }
 0xabf   : > { %1585 = vmatprep.subr.mxu0 %v1723_v0 }
 0xac0   : > { %1586 = vmatpush3.msra.mxu0 %v1778_v3 }
 0xac1   : > { %1587 = vmatprep.subr.mxu0 %v1723_v0 }
 0xac2   : > { %1588 = vmatpush3.msra.mxu0 %v1784_v4 }
 0xb7b   : > { %v859_v52 = vpop.f32.mrf.mxu0 }
 0xb7c   : > { %v860_v53 = vadd.f32 %v1810_v5, %v859_v52 }
 0xb7d   : > { %v1569_v54 = vpop.f32.mrf.mxu0 }
 0xb7e   : > { %871 = vrot.lane.b32.xlu0 %v860_v53, %s1725_s21  ;;  %v863_v57 = vadd.f32 %v1452_v55, %v860_v53  ;;  %v892_v58 = vadd.f32 %v1453_v56, %v860_v53 }
 0xb80   : > { %v864_v59 = vsub.f32 0.0, %v863_v57  ;;  %v893_v60 = vsub.f32 0.0, %v892_v58 }
 0xb82   : > { %v865_v61 = vmul.f32 1.442695, %v864_v59  ;;  %v894_v62 = vmul.f32 1.442695, %v893_v60 }
 0xb84   : > { %1667 = vpow2.f32 %v865_v61 }
 0xb85   : > { %1669 = vpow2.f32 %v894_v62 }
 0xb91   : > { %v1668_v63 = vpop.eup %1667 }
 0xb92   : > { %v1670_v6 = vpop.eup %1669  ;;  %v867_v7 = vadd.f32 1.0, %v1668_v63 }
 0xb93   : > { %v896_v8 = vadd.f32 1.0, %v1670_v6 }
 0xb94   : > { %1671 = vrcp.f32 %v867_v7 }
 0xb95   : > { %1673 = vrcp.f32 %v896_v8 }
 0xba1   : > { %v1672_v9 = vpop.eup %1671 }
 0xba2   : > { %v1674_v10 = vpop.eup %1673  ;;  %v881_v21 = vsub.f32 1.0, %v1672_v9 }
 0xba3   : > { %v906_v27 = vsub.f32 1.0, %v1674_v10 }
 0xbf0   : > { %v872_v11 = vpop.permute.xlu0 %871 }
 0xbf1   : > { %v874_v12 = vmul.f32 %v1672_v9, %v872_v11  ;;  %v899_v13 = vmul.f32 %v1674_v10, %v872_v11 }
 0xbf3   : > { %901 = vrot.lane.b32.xlu0 %v899_v13, %s1726_s26  ;;  %876 = vrot.lane.b32.xlu1 %v874_v12, %s1726_s26 }
 0xbf7   : > { %887 = vrot.lane.b32.xlu0 %v783_v51, %s1729_s5 }
 0xbfb   : > { %912 = vrot.lane.b32.xlu0 %v783_v51, %s1730_s6 }
 0xc65   : > { %v877_v14 = vpop.permute.xlu1 %876  ;;  %v902_v15 = vpop.permute.xlu0 %901 }
 0xc66   : > { %v879_v16 = vadd.f32 %v1452_v55, %v877_v14  ;;  %v904_v17 = vadd.f32 %v1453_v56, %v902_v15 }
 0xc68   : > { %1675 = vtanh.f32 %v879_v16  ;;  %v1462_v16 = vld [vmem:[%s1820_s25 + $0xc] sm:$0x3] }
 0xc69   : > { %1677 = vtanh.f32 %v904_v17  ;;  %v888_v20 = vpop.permute.xlu0 %887  ;;  %v1463_v17 = vld [vmem:[%s1820_s25 + $0x2] sm:$0x3] }
 0xc6a   : > { %v890_v23 = vmul.f32 %v1672_v9, %v888_v20 }
 0xc6d   : > { %v913_v25 = vpop.permute.xlu0 %912 }
 0xc6e   : > { %v915_v29 = vmul.f32 %v1674_v10, %v913_v25 }
 0xc75   : > { %v1676_v18 = vpop.eup %1675 }
 0xc76   : > { %883 = vrot.lane.b32.xlu1 %v1676_v18, %s1727_s27  ;;  %v1678_v19 = vpop.eup %1677 }
 0xc7a   : > { %908 = vrot.lane.b32.xlu1 %v1678_v19, %s1727_s27 }
 0xce8   : > { %v884_v22 = vpop.permute.xlu1 %883 }
 0xce9   : > { %v886_v24 = vmul.f32 %v884_v22, %v881_v21 }
 0xceb   : > { %v891_v26 = vadd.f32 %v890_v23, %v886_v24 }
 0xcec   : > { %v909_v28 = vpop.permute.xlu1 %908 }
 0xced   : > { %v911_v30 = vmul.f32 %v909_v28, %v906_v27  ;;  %918 = vrot.lane.b32.xlu1 %v891_v26, %s1727_s27 }
 0xcef   : > { %v916_v31 = vadd.f32 %v915_v29, %v911_v30 }
 0xcf1   : > { %922 = vrot.lane.b32.xlu0 %v916_v31, %s1728_s28 }
 0xd5f   : > { %v919_v32 = vpop.permute.xlu1 %918 }
 0xd60   : > { %1455 = vst.msk [vmem:[%s1835_s4 + $0x8] sm:$0x3] %vm351_vm2, %v919_v32 }
 0xd63   : > { %v923_v33 = vpop.permute.xlu0 %922 }
 0xd64   : > { %v925_v34 = vsel %vm349_vm3, %v919_v32, %v923_v33  ;;  %1456 = vst.msk [vmem:[%s1835_s4 + $0x6] sm:$0x3] %vm354_vm1, %v923_v33 }
 0xd65   : > { %1579 = vmatmul.mubr.msk.f32.vlgmr.msra.gmra.mxu1 %vm219_vm4, %v925_v34 }
 0xd66   : > { %1593 = vmatpush3.msra.mxu1 %v1771_v1  ;;  %1600 = vmatprep.mubr.msk.f32.mxu1 %vm1724_vm0, %v1723_v0  ;;  %v1457_v1 = vld [vmem:[%s1820_s25 + $0xa] sm:$0x3] }
 0xd67   : > { %1594 = vmatprep.subr.mxu1 %v1723_v0 }
 0xd68   : > { %1595 = vmatpush3.msra.mxu1 %v1773_v2 }
 0xd69   : > { %1596 = vmatprep.subr.mxu1 %v1723_v0 }
 0xd6a   : > { %1597 = vmatpush3.msra.mxu1 %v1778_v3 }
 0xd6b   : > { %1598 = vmatprep.subr.mxu1 %v1723_v0 }
 0xd6c   : > { %1599 = vmatpush3.msra.mxu1 %v1784_v4 }
 0xe25   : > { %v999_v35 = vpop.f32.mrf.mxu1 }
 0xe26   : > { %v1000_v36 = vadd.f32 %v1810_v5, %v999_v35 }
 0xe27   : > { %v1580_v37 = vpop.f32.mrf.mxu1 }
 0xe28   : > { %1011 = vrot.lane.b32.xlu1 %v1000_v36, %s1725_s21  ;;  %v1003_v39 = vadd.f32 %v1457_v1, %v1000_v36  ;;  %v1032_v40 = vadd.f32 %v1458_v38, %v1000_v36 }
 0xe2a   : > { %v1004_v41 = vsub.f32 0.0, %v1003_v39  ;;  %v1033_v2 = vsub.f32 0.0, %v1032_v40 }
 0xe2c   : > { %v1005_v42 = vmul.f32 1.442695, %v1004_v41  ;;  %v1034_v43 = vmul.f32 1.442695, %v1033_v2 }
 0xe2e   : > { %1679 = vpow2.f32 %v1005_v42 }
 0xe2f   : > { %1681 = vpow2.f32 %v1034_v43 }
 0xe3b   : > { %v1680_v3 = vpop.eup %1679 }
 0xe3c   : > { %v1682_v0 = vpop.eup %1681  ;;  %v1007_v44 = vadd.f32 1.0, %v1680_v3 }
 0xe3d   : > { %v1036_v4 = vadd.f32 1.0, %v1682_v0 }
 0xe3e   : > { %1683 = vrcp.f32 %v1007_v44 }
 0xe3f   : > { %1685 = vrcp.f32 %v1036_v4 }
 0xe4b   : > { %v1684_v45 = vpop.eup %1683 }
 0xe4c   : > { %v1686_v46 = vpop.eup %1685  ;;  %v1021_v57 = vsub.f32 1.0, %v1684_v45 }
 0xe4d   : > { %v1046_v63 = vsub.f32 1.0, %v1686_v46 }
 0xe9a   : > { %v1012_v47 = vpop.permute.xlu1 %1011 }
 0xe9b   : > { %v1014_v48 = vmul.f32 %v1684_v45, %v1012_v47  ;;  %v1039_v49 = vmul.f32 %v1686_v46, %v1012_v47 }
 0xe9d   : > { %1041 = vrot.lane.b32.xlu1 %v1039_v49, %s1726_s26  ;;  %1016 = vrot.lane.b32.xlu0 %v1014_v48, %s1726_s26 }
 0xea1   : > { %1027 = vrot.lane.b32.xlu1 %v925_v34, %s1729_s5 }
 0xea5   : > { %1052 = vrot.lane.b32.xlu1 %v925_v34, %s1730_s6 }
 0xf0f   : > { %v1017_v50 = vpop.permute.xlu0 %1016  ;;  %v1042_v51 = vpop.permute.xlu1 %1041 }
 0xf10   : > { %v1019_v52 = vadd.f32 %v1457_v1, %v1017_v50  ;;  %v1044_v53 = vadd.f32 %v1458_v38, %v1042_v51 }
 0xf12   : > { %1687 = vtanh.f32 %v1019_v52  ;;  %v1467_v52 = vld [vmem:[%s1820_s25 + $0xe] sm:$0x3] }
 0xf13   : > { %1689 = vtanh.f32 %v1044_v53  ;;  %v1028_v56 = vpop.permute.xlu1 %1027  ;;  %v1209_v53 = vld [vmem:[%s1820_s25] sm:$0x3] }
 0xf14   : > { %v1030_v59 = vmul.f32 %v1684_v45, %v1028_v56 }
 0xf17   : > { %v1053_v61 = vpop.permute.xlu1 %1052 }
 0xf18   : > { %v1055_v7 = vmul.f32 %v1686_v46, %v1053_v61 }
 0xf1f   : > { %v1688_v54 = vpop.eup %1687 }
 0xf20   : > { %1023 = vrot.lane.b32.xlu0 %v1688_v54, %s1727_s27  ;;  %v1690_v55 = vpop.eup %1689 }
 0xf24   : > { %1048 = vrot.lane.b32.xlu0 %v1690_v55, %s1727_s27 }
 0xf92   : > { %v1024_v58 = vpop.permute.xlu0 %1023 }
 0xf93   : > { %v1026_v60 = vmul.f32 %v1024_v58, %v1021_v57 }
 0xf95   : > { %v1031_v62 = vadd.f32 %v1030_v59, %v1026_v60 }
 0xf96   : > { %v1049_v6 = vpop.permute.xlu0 %1048 }
 0xf97   : > { %v1051_v8 = vmul.f32 %v1049_v6, %v1046_v63  ;;  %1058 = vrot.lane.b32.xlu0 %v1031_v62, %s1727_s27 }
 0xf99   : > { %v1056_v9 = vadd.f32 %v1055_v7, %v1051_v8 }
 0xf9b   : > { %1062 = vrot.lane.b32.xlu1 %v1056_v9, %s1728_s28 }
0x1009   : > { %v1059_v10 = vpop.permute.xlu0 %1058 }
0x100a   : > { %1460 = vst.msk [vmem:[%s1835_s4 + $0xa] sm:$0x3] %vm351_vm2, %v1059_v10 }
0x100d   : > { %v1063_v11 = vpop.permute.xlu1 %1062 }
0x100e   : > { %v1065_v12 = vsel %vm349_vm3, %v1059_v10, %v1063_v11  ;;  %1461 = vst.msk [vmem:[%s1835_s4 + $0x4] sm:$0x3] %vm354_vm1, %v1063_v11 }
0x100f   : > { %1590 = vmatmul.mubr.msk.f32.vlgmr.msra.gmra.mxu0 %vm219_vm4, %v1065_v12 }
0x10cf   : > { %v1139_v13 = vpop.f32.mrf.mxu0 }
0x10d0   : > { %v1140_v14 = vadd.f32 %v1810_v5, %v1139_v13 }
0x10d1   : > { %v1591_v15 = vpop.f32.mrf.mxu0 }
0x10d2   : > { %1151 = vrot.lane.b32.xlu0 %v1140_v14, %s1725_s21  ;;  %v1143_v18 = vadd.f32 %v1462_v16, %v1140_v14  ;;  %v1172_v19 = vadd.f32 %v1463_v17, %v1140_v14 }
0x10d4   : > { %v1144_v20 = vsub.f32 0.0, %v1143_v18  ;;  %v1173_v21 = vsub.f32 0.0, %v1172_v19 }
0x10d6   : > { %v1145_v22 = vmul.f32 1.442695, %v1144_v20  ;;  %v1174_v23 = vmul.f32 1.442695, %v1173_v21 }
0x10d8   : > { %1691 = vpow2.f32 %v1145_v22 }
0x10d9   : > { %1693 = vpow2.f32 %v1174_v23 }
0x10e5   : > { %v1692_v24 = vpop.eup %1691 }
0x10e6   : > { %v1694_v25 = vpop.eup %1693  ;;  %v1147_v26 = vadd.f32 1.0, %v1692_v24 }
0x10e7   : > { %v1176_v27 = vadd.f32 1.0, %v1694_v25 }
0x10e8   : > { %1695 = vrcp.f32 %v1147_v26 }
0x10e9   : > { %1697 = vrcp.f32 %v1176_v27 }
0x10f5   : > { %v1696_v28 = vpop.eup %1695 }
0x10f6   : > { %v1698_v29 = vpop.eup %1697  ;;  %v1161_v39 = vsub.f32 1.0, %v1696_v28 }
0x10f7   : > { %v1186_v3 = vsub.f32 1.0, %v1698_v29 }
0x1144   : > { %v1152_v30 = vpop.permute.xlu0 %1151 }
0x1145   : > { %v1154_v31 = vmul.f32 %v1696_v28, %v1152_v30  ;;  %v1179_v32 = vmul.f32 %v1698_v29, %v1152_v30 }
0x1147   : > { %1181 = vrot.lane.b32.xlu0 %v1179_v32, %s1726_s26  ;;  %1156 = vrot.lane.b32.xlu1 %v1154_v31, %s1726_s26 }
0x114b   : > { %1167 = vrot.lane.b32.xlu0 %v1065_v12, %s1729_s5 }
0x114f   : > { %1192 = vrot.lane.b32.xlu0 %v1065_v12, %s1730_s6 }
0x11b9   : > { %v1157_v33 = vpop.permute.xlu1 %1156  ;;  %v1182_v34 = vpop.permute.xlu0 %1181 }
0x11ba   : > { %v1159_v35 = vadd.f32 %v1462_v16, %v1157_v33  ;;  %v1184_v36 = vadd.f32 %v1463_v17, %v1182_v34 }
0x11bc   : > { %1699 = vtanh.f32 %v1159_v35 }
0x11bd   : > { %1701 = vtanh.f32 %v1184_v36  ;;  %v1168_v38 = vpop.permute.xlu0 %1167 }
0x11be   : > { %v1170_v41 = vmul.f32 %v1696_v28, %v1168_v38 }
0x11c1   : > { %v1193_v42 = vpop.permute.xlu0 %1192 }
0x11c2   : > { %v1195_v44 = vmul.f32 %v1698_v29, %v1193_v42 }
0x11c9   : > { %v1700_v37 = vpop.eup %1699 }
0x11ca   : > { %1163 = vrot.lane.b32.xlu1 %v1700_v37, %s1727_s27  ;;  %v1702_v1 = vpop.eup %1701 }
0x11ce   : > { %1188 = vrot.lane.b32.xlu1 %v1702_v1, %s1727_s27 }
0x123c   : > { %v1164_v40 = vpop.permute.xlu1 %1163 }
0x123d   : > { %v1166_v2 = vmul.f32 %v1164_v40, %v1161_v39 }
0x123f   : > { %v1171_v43 = vadd.f32 %v1170_v41, %v1166_v2 }
0x1240   : > { %v1189_v0 = vpop.permute.xlu1 %1188 }
0x1241   : > { %v1191_v4 = vmul.f32 %v1189_v0, %v1186_v3  ;;  %1198 = vrot.lane.b32.xlu1 %v1171_v43, %s1727_s27 }
0x1243   : > { %v1196_v45 = vadd.f32 %v1195_v44, %v1191_v4 }
0x1245   : > { %1202 = vrot.lane.b32.xlu0 %v1196_v45, %s1728_s28 }
0x12b3   : > { %v1199_v46 = vpop.permute.xlu1 %1198 }
0x12b4   : > { %1465 = vst.msk [vmem:[%s1835_s4 + $0xc] sm:$0x3] %vm351_vm2, %v1199_v46 }
0x12b7   : > { %v1203_v47 = vpop.permute.xlu0 %1202 }
0x12b8   : > { %v1205_v48 = vsel %vm349_vm3, %v1199_v46, %v1203_v47  ;;  %1466 = vst.msk [vmem:[%s1835_s4 + $0x2] sm:$0x3] %vm354_vm1, %v1203_v47 }
0x12b9   : > { %1601 = vmatmul.mubr.msk.f32.vlgmr.msra.gmra.mxu1 %vm219_vm4, %v1205_v48 }
0x1379   : > { %v1279_v49 = vpop.f32.mrf.mxu1 }
0x137a   : > { %v1280_v50 = vadd.f32 %v1810_v5, %v1279_v49 }
0x137b   : > { %v1602_v51 = vpop.f32.mrf.mxu1 }
0x137c   : > { %1291 = vrot.lane.b32.xlu1 %v1280_v50, %s1725_s21  ;;  %v1283_v54 = vadd.f32 %v1467_v52, %v1280_v50  ;;  %v1312_v55 = vadd.f32 %v1280_v50, %v1209_v53 }
0x137e   : > { %v1284_v56 = vsub.f32 0.0, %v1283_v54  ;;  %v1313_v57 = vsub.f32 0.0, %v1312_v55 }
0x1380   : > { %v1285_v58 = vmul.f32 1.442695, %v1284_v56  ;;  %v1314_v59 = vmul.f32 1.442695, %v1313_v57 }
0x1382   : > { %1703 = vpow2.f32 %v1285_v58 }
0x1383   : > { %1705 = vpow2.f32 %v1314_v59 }
0x138f   : > { %v1704_v60 = vpop.eup %1703 }
0x1390   : > { %v1706_v61 = vpop.eup %1705  ;;  %v1287_v62 = vadd.f32 1.0, %v1704_v60 }
0x1391   : > { %v1316_v63 = vadd.f32 1.0, %v1706_v61 }
0x1392   : > { %1707 = vrcp.f32 %v1287_v62 }
0x1393   : > { %1709 = vrcp.f32 %v1316_v63 }
0x139f   : > { %v1708_v5 = vpop.eup %1707 }
0x13a0   : > { %v1710_v6 = vpop.eup %1709  ;;  %v1301_v17 = vsub.f32 1.0, %v1708_v5 }
0x13a1   : > { %v1326_v23 = vsub.f32 1.0, %v1710_v6 }
0x13ee   : > { %v1292_v7 = vpop.permute.xlu1 %1291 }
0x13ef   : > { %v1294_v8 = vmul.f32 %v1708_v5, %v1292_v7  ;;  %v1319_v9 = vmul.f32 %v1710_v6, %v1292_v7 }
0x13f1   : > { %1321 = vrot.lane.b32.xlu1 %v1319_v9, %s1726_s26  ;;  %1296 = vrot.lane.b32.xlu0 %v1294_v8, %s1726_s26 }
0x13f5   : > { %1307 = vrot.lane.b32.xlu1 %v1205_v48, %s1729_s5 }
0x13f9   : > { %1332 = vrot.lane.b32.xlu1 %v1205_v48, %s1730_s6 }
0x1463   : > { %v1297_v10 = vpop.permute.xlu0 %1296  ;;  %v1322_v11 = vpop.permute.xlu1 %1321 }
0x1464   : > { %v1299_v12 = vadd.f32 %v1467_v52, %v1297_v10  ;;  %v1324_v13 = vadd.f32 %v1322_v11, %v1209_v53 }
0x1466   : > { %1711 = vtanh.f32 %v1299_v12 }
0x1467   : > { %1713 = vtanh.f32 %v1324_v13  ;;  %v1308_v16 = vpop.permute.xlu1 %1307 }
0x1468   : > { %v1310_v19 = vmul.f32 %v1708_v5, %v1308_v16 }
0x146b   : > { %v1333_v21 = vpop.permute.xlu1 %1332 }
0x146c   : > { %v1335_v25 = vmul.f32 %v1710_v6, %v1333_v21 }
0x1473   : > { %v1712_v14 = vpop.eup %1711 }
0x1474   : > { %1303 = vrot.lane.b32.xlu0 %v1712_v14, %s1727_s27  ;;  %v1714_v15 = vpop.eup %1713 }
0x1478   : > { %1328 = vrot.lane.b32.xlu0 %v1714_v15, %s1727_s27 }
0x14e6   : > { %v1304_v18 = vpop.permute.xlu0 %1303 }
0x14e7   : > { %v1306_v20 = vmul.f32 %v1304_v18, %v1301_v17 }
0x14e9   : > { %v1311_v22 = vadd.f32 %v1310_v19, %v1306_v20 }
0x14ea   : > { %v1329_v24 = vpop.permute.xlu0 %1328 }
0x14eb   : > { %v1331_v26 = vmul.f32 %v1329_v24, %v1326_v23  ;;  %1338 = vrot.lane.b32.xlu0 %v1311_v22, %s1727_s27 }
0x14ed   : > { %v1336_v27 = vadd.f32 %v1335_v25, %v1331_v26 }
0x14ef   : > { %1343 = vrot.lane.b32.xlu1 %v1336_v27, %s1728_s28 }
0x155d   : > { %v1339_v28 = vpop.permute.xlu0 %1338 }
0x155e   : > { %1469 = vst.msk [vmem:[%s1835_s4 + $0xe] sm:$0x3] %vm351_vm2, %v1339_v28 }
0x1561   : > { %v1344_v29 = vpop.permute.xlu1 %1343 }
0x1562   : > { %1346 = vst.msk [vmem:[%s1835_s4] sm:$0x3] %vm354_vm1, %v1344_v29 }
0x1563 PF: > { %s13_s12 = sadd.s32 1, %s1721_s12  }
0x1564   : > { %p10_p4 = scmp.ge.s32.totalorder %s13_s12, 6  }
0x1566   :  { %12 = sbr.rel (!%p10_p4) target bundleno = 1 (0x1), region = 82 }

// kernel: baseline_forward.13
= control target key start
LH: loop header
LB: loop body
LE: loop exit
PB: predicated region body
PF: predicated region fallthrough
CT: control target
= control target key end

     0   :  { %s1954_s22 = smov 0   ;;  %s2118_s0 = inlined_call_operand.vmem [shape: f32[2,9,32], index: 0, kind: input, shape index: {}]   ;;  %s2119_s1 = inlined_call_operand.vmem [shape: f32[2,9,32], index: 1, kind: input, shape index: {}]   ;;  %s2120_s2 = inlined_call_operand.vmem [shape: f32[2,9,32], index: 2, kind: input, shape index: {}]   ;;  %s2121_s3 = inlined_call_operand.vmem [shape: f32[2,9,32], index: 3, kind: input, shape index: {}]   ;;  %s2122_s4 = inlined_call_operand.vmem [shape: f32[2,9,1], index: 4, kind: input, shape index: {}]   ;;  %s2123_s5 = inlined_call_operand.vmem [shape: f32[2,1,9], index: 5, kind: input, shape index: {}]   ;;  %s2124_s6 = inlined_call_operand.vmem [shape: f32[32,16], index: 6, kind: input, shape index: {}]   ;;  %s2125_s7 = inlined_call_operand.vmem [shape: f32[32,16], index: 7, kind: input, shape index: {}]   ;;  %s2126_s8 = inlined_call_operand.vmem [shape: f32[32,1], index: 8, kind: input, shape index: {}]   ;;  %s2127_s9 = inlined_call_operand.vmem [shape: f32[32,1], index: 9, kind: input, shape index: {}]   ;;  %s2128_s10 = inlined_call_operand.<no memory space> [shape: f32[1,1], index: 10, kind: input, shape index: {}]   ;;  %s2129_s11 = inlined_call_operand.vmem [shape: f32[32,1], index: 11, kind: input, shape index: {}]   ;;  %s2130_s12 = inlined_call_operand.vmem [shape: f32[32,1], index: 12, kind: input, shape index: {}]   ;;  %s2131_s14 = inlined_call_operand.vmem [shape: f32[2,9,1], index: 14, kind: output, shape index: {0}]   ;;  %s2132_s15 = inlined_call_operand.vmem [shape: f32[2,9,1], index: 15, kind: output, shape index: {1}]   ;;  %s2133_s13 = inlined_call_operand.<no memory space> [shape: f32[1,1], index: 13, kind: input, shape index: {}]  }
   0x1   :  { %v21_v0 = vstv %s2128_s10  ;;  %v23_v1 = vstv %s2133_s13 }
   0x2   :  { %22 = vst [vmem:[#allocation2] sm:$0x1] %v21_v0  ;;  %24 = vst [vmem:[#allocation3] sm:$0x1] %v23_v1 }
   0x3 LB: > { %s1645_s23 = sadd.s32 4294967295, %s1865_s22   ;;  %p1649_p0 = scmp.ge.s32.totalorder %s1865_s22, 1  ;;  %s1865_s22 = sphi %s1954_s22, %s30_s22  }
   0x4   : > { %p492_p1 = scmp.lt.s32.totalorder %s1865_s22, 3 }
   0x6   : > { %p493_p2 = pnand %p1649_p0, %p492_p1 }
   0x7   : > { %p568_p3 = scmp.lt.s32.totalorder (!%p493_p2), %s1645_s23, 1 }
   0x8   : > { %496 = sbr.rel (%p493_p2) target bundleno = 1148 (0x47c), region = 76 }
   0xd   : > { %v703_v2 = vld [vmem:[%s2125_s7 + $0x18] sm:$0xff]  ;;  %v702_v3 = vld [vmem:[%s2125_s7 + $0x10] sm:$0xff]  ;;  %v701_v6 = vld [vmem:[%s2125_s7 + $0x8] sm:$0xff]  ;;  %s2135_s23 = smov (!%p568_p3, %s1645_s23), 1  ;;  %vm618_vm0 = vcmask 261120   ;;  %v1867_v14 = vmov 0  }
   0xe   : > { %v617_v4 = vld [vmem:[%s2124_s6 + $0x18] sm:$0xff]  ;;  %1757 = vmatprep.subr.mxu1 %v703_v2  ;;  %v616_v5 = vld [vmem:[%s2124_s6 + $0x10] sm:$0xff]  ;;  %v615_v7 = vld [vmem:[%s2124_s6 + $0x8] sm:$0xff]  ;;  %s1986_s21 = sshll.u32 %s2135_s23, 4  ;;  %1843 = vset.pattern.permute.xlu1 %v1867_v14  ;;  %vm785_vm1 = vcmask 130048   ;;  %s595_s20 = scalar_lea.vmem %s2123_s5, %s2135_s23  ;;  %vm882_vm2 = vcmask 72704  }
   0xf   : > { %1746 = vmatprep.subr.mxu0 %v617_v4  ;;  %1758 = vmatpush3.msra.mxu1 %v703_v2  ;;  %v700_v8 = vld [vmem:[%s2125_s7] sm:$0xff]  ;;  %s577_s13 = scalar_lea.vmem %s2119_s1, %s1986_s21  ;;  %s572_s29 = scalar_lea.vmem %s2118_s0, %s1986_s21  ;;  %vm886_vm3 = vcmask 65536   ;;  %vm912_vm4 = vcmask 1040384   ;;  %vm1323_vm5 = vcmask 0   ;;  %vm1321_vm6 = vcmask 7168  }
  0x10   : > { %1747 = vmatpush3.msra.mxu0 %v617_v4  ;;  %1759 = vmatprep.subr.mxu1 %v702_v3  ;;  %v614_v9 = vld [vmem:[%s2124_s6] sm:$0xff]  ;;  %v2001_v11 = vld [vmem:[%s577_s13 + $0x8] sm:$0x1]  ;;  %s592_s17 = scalar_lea.vmem %s2122_s4, %s1986_s21  ;;  %s587_s24 = scalar_lea.vmem %s2121_s3, %s1986_s21 }
  0x11   : > { %1748 = vmatprep.subr.mxu0 %v616_v5  ;;  %1760 = vmatpush3.msra.mxu1 %v702_v3  ;;  %v1999_v10 = vld [vmem:[%s577_s13] sm:$0xff]  ;;  %v2005_v13 = vld [vmem:[%s572_s29 + $0x8] sm:$0x1]  ;;  %s582_s26 = scalar_lea.vmem %s2120_s2, %s1986_s21  ;;  %s600_s16 = scalar_lea.vmem %s2131_s14, %s1986_s21 }
  0x12   : > { %1749 = vmatpush3.msra.mxu0 %v616_v5  ;;  %1761 = vmatprep.subr.mxu1 %v701_v6  ;;  %v606_v12 = vld [vmem:[%s572_s29] sm:$0xff]  ;;  %v992_v16 = vld [vmem:[%s592_s17 + $0x8] sm:$0x1]  ;;  %s605_s19 = scalar_lea.vmem %s2132_s15, %s1986_s21 }
  0x13   : > { %1750 = vmatprep.subr.mxu0 %v615_v7  ;;  %1762 = vmatpush3.msra.mxu1 %v701_v6  ;;  %v991_v15 = vld [vmem:[%s592_s17] sm:$0xff]  ;;  %v613_v0 = vld [vmem:[%s587_s24 + $0x8] sm:$0x1] }
  0x14   : > { %1751 = vmatpush3.msra.mxu0 %v615_v7  ;;  %1763 = vmatprep.subr.mxu1 %v700_v8  ;;  %v1672_v22 = vld [vmem:[%s595_s20] ss:$0 sm:$0xff]  ;;  %v611_v4 = vld [vmem:[%s582_s26 + $0x8] sm:$0x1]  ;;  %v1155_v7 = vld [vmem:[%s2127_s9 + $0x18] sm:$0xff] }
  0x15   : > { %1765 = vmatprep.mubr.msk.f32.mxu1 %vm618_vm0, %v1999_v10  ;;  %1764 = vmatpush3.msra.mxu1 %v700_v8  ;;  %v612_v3 = vld [vmem:[%s587_s24] sm:$0xff] }
  0x16   : > { %1752 = vmatprep.subr.mxu0 %v614_v9  ;;  %1766 = vmatmul.mubr.msk.f32.vlgmr.msra.gmra.mxu1 %vm618_vm0, %v2001_v11 }
  0x17   : > { %1753 = vmatpush3.msra.mxu0 %v614_v9  ;;  %1754 = vmatprep.mubr.msk.f32.mxu0 %vm618_vm0, %v606_v12  ;;  %v1154_v9 = vld [vmem:[%s2127_s9 + $0x10] sm:$0xff] }
  0x18   : > { %1755 = vmatmul.mubr.msk.f32.vlgmr.msra.gmra.mxu0 %vm618_vm0, %v2005_v13  ;;  %995 = vperm.xlu1 %1843, %v991_v15  }
  0x19   : > { %1775 = vmatprep.subr.msk.mxu1 %vm912_vm4, %v613_v0 }
  0x1a   : > { %1776 = vmatpush3.msk.msra.mxu1 %vm912_vm4, %v613_v0 }
  0x1b   : > { %1777 = vmatprep.subr.mxu1 %v612_v3 }
  0x1c   : > { %1000 = vperm.xlu1 %1843, %v992_v16   ;;  %1778 = vmatpush3.msra.mxu1 %v612_v3 }
  0x1d   : > { %1782 = vmatprep.subr.msk.mxu1 %vm912_vm4, %v611_v4 }
  0x93   : > { %v996_v28 = vpop.permute.xlu1 %995 }
  0x97   : > { %v1001_v29 = vpop.permute.xlu1 %1000 }
  0xd6   : > { %v1767_v17 = vpop.f32.mrf.mxu1 }
  0xd7   : > { %1768 = vmatprep.subr.msk.mxu0 %vm785_vm1, %v1767_v17 }
  0xd8   : > { %v776_v18 = vpop.f32.mrf.mxu1  ;;  %1769 = vmatpush3.xpose.msk.msra.mxu0 %vm785_vm1, %v1767_v17  ;;  %v1756_v19 = vpop.f32.mrf.mxu0 }
  0xd9   : > { %1770 = vmatprep.subr.msk.mxu0 %vm785_vm1, %v776_v18 }
  0xda   : > { %v691_v20 = vpop.f32.mrf.mxu0 }
  0xdb   : > { %1772 = vmatprep.mubr.msk.f32.mxu0 %vm785_vm1, %v691_v20  ;;  %v610_v20 = vld [vmem:[%s582_s26] sm:$0xff] }
  0xdc   : > { %1771 = vmatpush3.xpose.msk.msra.mxu0 %vm785_vm1, %v776_v18 }
  0xdd   : > { %1789 = vmatprep.subr.mxu0 %v1155_v7 }
  0xdf   : > { %1773 = vmatmul.mubr.msk.f32.vlgmr.msra.gmra.mxu0 %vm785_vm1, %v1756_v19 }
  0xe0   : > { %1797 = vmatprep.mubr.msk.f32.mxu0 %vm618_vm0, %v606_v12  ;;  %1790 = vmatpush3.msra.mxu0 %v1155_v7 }
  0xe1   : > { %1791 = vmatprep.subr.mxu0 %v1154_v9 }
  0xe2   : > { %1792 = vmatpush3.msra.mxu0 %v1154_v9 }
 0x19f   : > { %v1774_v21 = vpop.f32.mrf.mxu0 }
 0x1a0   : > { %v881_v25 = vadd.f32 %v1774_v21, %v1672_v22  ;;  %v1004_v31 = vadd.f32 %v1774_v21, %v1001_v29  ;;  %v1151_v21 = vld [vmem:[%s2126_s8 + $0x18] sm:$0xff]  ;;  %v1331_v29 = vld [vmem:[%s2130_s12 + $0x10] sm:$0xff] }
 0x1a1   : > { %v864_v23 = vpop.f32.mrf.mxu0 }
 0x1a2   : > { %v880_v24 = vadd.f32 %v1672_v22, %v864_v23  ;;  %v887_v27 = vsel %vm886_vm3, %v881_v25, -inf  ;;  %v1003_v30 = vadd.f32 %v996_v28, %v864_v23  ;;  %v1006_v33 = vsel %vm886_vm3, %v1004_v31, -inf  ;;  %v1150_v23 = vld [vmem:[%s2126_s8 + $0x10] sm:$0xff]  ;;  %v1332_v28 = vld [vmem:[%s2130_s12 + $0x18] sm:$0xff] }
 0x1a4   : > { %v883_v26 = vsel %vm882_vm2, %v880_v24, -inf  ;;  %v1005_v32 = vsel %vm882_vm2, %v1003_v30, -inf }
 0x1a5   : > { %884 = vmax.xlane.f32.xlu0 %v883_v26  ;;  %v1007_v34 = vmax.f32 %v1005_v32, %v1006_v33  ;;  %v1152_v26 = vld [vmem:[%s2127_s9] sm:$0xff] }
 0x1a6   : > { %v1329_v32 = vld [vmem:[%s2130_s12] sm:$0xff] }
 0x1a7   : > { %v1008_v35 = vrot.slane %v1007_v34, 4 }
 0x1a9   : > { %888 = vmax.xlane.f32.xlu0 %v887_v27  ;;  %v1009_v36 = vmax.f32 %v1007_v34, %v1008_v35  ;;  %v1148_v27 = vld [vmem:[%s2126_s8] sm:$0xff]  ;;  %v1326_v34 = vld [vmem:[%s2129_s11 + $0x8] sm:$0xff] }
 0x1ab   : > { %v1010_v37 = vrot.slane %v1009_v36, 2 }
 0x1ad   : > { %v1011_v38 = vmax.f32 %v1009_v36, %v1010_v37 }
 0x1af   : > { %v1012_v39 = vrot.slane %v1011_v38, 1 }
 0x1b1   : > { %v1013_v40 = vmax.f32 %v1011_v38, %v1012_v39  ;;  %v1683_v39 = vld [vmem:[#allocation2] ss:$0 sm:$0xff] }
 0x1b3   : > { %v1014_v41 = vsub.f32 %v1003_v30, %v1013_v40  ;;  %v1015_v42 = vsub.f32 %v1004_v31, %v1013_v40  ;;  %v1328_v30 = vld [vmem:[%s2129_s11 + $0x18] sm:$0xff]  ;;  %v1330_v31 = vld [vmem:[%s2130_s12 + $0x8] sm:$0xff] }
 0x1b5   : > { %v1016_v43 = vmul.f32 1.442695, %v1014_v41  ;;  %v1018_v44 = vmul.f32 1.442695, %v1015_v42 }
 0x1b7   : > { %1845 = vpow2.f32 %v1016_v43 }
 0x1b8   : > { %1847 = vpow2.f32 %v1018_v44 }
 0x1c4   : > { %v1846_v51 = vpop.eup %1845 }
 0x1c5   : > { %v1848_v52 = vpop.eup %1847  ;;  %v1020_v53 = vsel %vm882_vm2, %v1846_v51, 0.0 }
 0x1c6   : > { %v1021_v54 = vsel %vm886_vm3, %v1848_v52, 0.0 }
 0x1c7   : > { %v1022_v56 = vadd.f32 %v1021_v54, %v1020_v53 }
 0x1c9   : > { %v1023_v59 = vrot.slane %v1022_v56, 4 }
 0x1cb   : > { %v1024_v61 = vadd.f32 %v1023_v59, %v1022_v56 }
 0x1cd   : > { %v1025_v62 = vrot.slane %v1024_v61, 2 }
 0x1cf   : > { %v1026_v63 = vadd.f32 %v1025_v62, %v1024_v61 }
 0x1d1   : > { %v1027_v1 = vrot.slane %v1026_v63, 1 }
 0x1d3   : > { %v1028_v2 = vadd.f32 %v1027_v1, %v1026_v63 }
 0x22e   : > { %v885_v45 = vpop.xlane.xlu0 %884 }
 0x22f   : > { %v890_v46 = vsub.f32 %v880_v24, %v885_v45  ;;  %v1153_v24 = vld [vmem:[%s2127_s9 + $0x8] sm:$0xff] }
 0x230   : > { %1793 = vmatprep.subr.mxu0 %v1153_v24 }
 0x231   : > { %v892_v47 = vmul.f32 1.442695, %v890_v46  ;;  %1794 = vmatpush3.msra.mxu0 %v1153_v24 }
 0x232   : > { %v889_v48 = vpop.xlane.xlu0 %888  ;;  %1795 = vmatprep.subr.mxu0 %v1152_v26 }
 0x233   : > { %1849 = vpow2.f32 %v892_v47  ;;  %v891_v49 = vsub.f32 %v881_v25, %v889_v48  ;;  %v1149_v25 = vld [vmem:[%s2126_s8 + $0x8] sm:$0xff]  ;;  %1796 = vmatpush3.msra.mxu0 %v1152_v26  ;;  %v1688_v48 = vld [vmem:[#allocation3] ss:$0 sm:$0xff] }
 0x234   : > { %1798 = vmatmul.mubr.msk.f32.vlgmr.msra.gmra.mxu0 %vm618_vm0, %v2005_v13  ;;  %1811 = vmatprep.subr.mxu0 %v1332_v28 }
 0x235   : > { %v894_v50 = vmul.f32 1.442695, %v891_v49  ;;  %1812 = vmatpush3.msra.mxu0 %v1332_v28  ;;  %1819 = vmatprep.mubr.msk.f32.mxu0 %vm618_vm0, %v1999_v10  ;;  %v1327_v10 = vld [vmem:[%s2129_s11 + $0x10] sm:$0xff] }
 0x236   : > { %1813 = vmatprep.subr.mxu0 %v1331_v29 }
 0x237   : > { %1851 = vpow2.f32 %v894_v50  ;;  %1814 = vmatpush3.msra.mxu0 %v1331_v29 }
 0x238   : > { %1853 = vrcp.f32 %v1028_v2  ;;  %1815 = vmatprep.subr.mxu0 %v1330_v31 }
 0x239   : > { %1816 = vmatpush3.msra.mxu0 %v1330_v31 }
 0x23a   : > { %1817 = vmatprep.subr.mxu0 %v1329_v32 }
 0x23b   : > { %1818 = vmatpush3.msra.mxu0 %v1329_v32 }
 0x23c   : > { %1820 = vmatmul.mubr.msk.f32.vlgmr.msra.gmra.mxu0 %vm618_vm0, %v2001_v11  ;;  %v1325_v11 = vld [vmem:[%s2129_s11] sm:$0xff] }
 0x240   : > { %v1850_v55 = vpop.eup %1849 }
 0x241   : > { %v896_v57 = vsel %vm882_vm2, %v1850_v55, 0.0 }
 0x242   : > { %897 = vadd.xlane.f32.xlu0 %v896_v57 }
 0x244   : > { %v1852_v58 = vpop.eup %1851 }
 0x245   : > { %v899_v60 = vsel %vm886_vm3, %v1852_v58, 0.0  ;;  %v1854_v5 = vpop.eup %1853 }
 0x246   : > { %900 = vadd.xlane.f32.xlu1 %v899_v60  ;;  %v1030_v6 = vmul.f32 %v1854_v5, %v1846_v51  ;;  %v1031_v8 = vmul.f32 %v1854_v5, %v1848_v52 }
 0x26f   : > { %1032 = vxpose.xlu0.b32.start [1/2] (short) (narrow) %v1030_v6, 16 }
 0x273   : > { %1033 = vxpose.xlu0.b32.end [2/2] (short) (narrow) %v1031_v8, 16 }
 0x29c   : > { %1844 = vset.pattern.permute.xlu0 %v1867_v14 }
 0x2cb   : > { %v898_v12 = vpop.xlane.xlu0 %897 }
 0x2cc   : > { %1855 = vrcp.f32 %v898_v12 }
 0x2cf   : > { %v901_v15 = vpop.xlane.xlu1 %900 }
 0x2d0   : > { %1857 = vrcp.f32 %v901_v15 }
 0x2d9   : > { %v1856_v16 = vpop.eup %1855 }
 0x2da   : > { %v903_v17 = vmul.f32 %v1856_v16, %v1850_v55 }
 0x2dc   : > { %1779 = vmatprep.mubr.msk.f32.mxu1 %vm882_vm2, %v903_v17 }
 0x2dd   : > { %v1858_v18 = vpop.eup %1857 }
 0x2de   : > { %v905_v19 = vmul.f32 %v1858_v18, %v1852_v58 }
 0x2e0   : > { %1780 = vmatmul.mubr.msk.f32.vlgmr.msra.gmra.mxu1 %vm882_vm2, %v905_v19 }
 0x2e1   : > { %1783 = vmatpush3.msk.msra.mxu1 %vm912_vm4, %v611_v4 }
 0x2e2   : > { %1784 = vmatprep.subr.mxu1 %v610_v20 }
 0x2e3   : > { %1785 = vmatpush3.msra.mxu1 %v610_v20 }
 0x2e4   : > { %1800 = vmatprep.subr.mxu1 %v1151_v21 }
 0x2eb   : > { %v1048_v14 = vpop.trf.xlu0 }
 0x2ec   : > { %1786 = vmatprep.mubr.msk.f32.mxu1 %vm882_vm2, %v1048_v14 }
 0x2ef   : > { %v1049_v22 = vpop.trf.xlu0 }
 0x2f0   : > { %1787 = vmatmul.mubr.msk.f32.vlgmr.msra.gmra.mxu1 %vm882_vm2, %v1049_v22 }
 0x2f1   : > { %1801 = vmatpush3.msra.mxu1 %v1151_v21 }
 0x2f2   : > { %1802 = vmatprep.subr.mxu1 %v1150_v23 }
 0x2f3   : > { %1803 = vmatpush3.msra.mxu1 %v1150_v23 }
 0x2f4   : > { %1804 = vmatprep.subr.mxu1 %v1149_v25  ;;  %v1799_v37 = vpop.f32.mrf.mxu0 }
 0x2f5   : > { %1805 = vmatpush3.msra.mxu1 %v1149_v25 }
 0x2f6   : > { %1806 = vmatprep.subr.mxu1 %v1148_v27  ;;  %v1222_v40 = vpop.f32.mrf.mxu0 }
 0x2f7   : > { %1807 = vmatpush3.msra.mxu1 %v1148_v27 }
 0x2f8   : > { %1822 = vmatprep.subr.mxu1 %v1328_v30 }
 0x2fc   : > { %v1821_v46 = vpop.f32.mrf.mxu0 }
 0x2fe   : > { %v1399_v50 = vpop.f32.mrf.mxu0 }
 0x3a0   : > { %v1781_v13 = vpop.f32.mrf.mxu1 }
 0x3a2   : > { %v982_v33 = vpop.f32.mrf.mxu1 }
 0x3a3   : > { %1808 = vmatprep.mubr.msk.f32.mxu1 %vm618_vm0, %v982_v33 }
 0x3a4   : > { %1809 = vmatmul.mubr.msk.f32.vlgmr.msra.gmra.mxu1 %vm618_vm0, %v1781_v13 }
 0x3a5   : > { %1823 = vmatpush3.msra.mxu1 %v1328_v30 }
 0x3a6   : > { %1824 = vmatprep.subr.mxu1 %v1327_v10 }
 0x3a7   : > { %1825 = vmatpush3.msra.mxu1 %v1327_v10 }
 0x3a8   : > { %1826 = vmatprep.subr.mxu1 %v1326_v34 }
 0x3a9   : > { %1827 = vmatpush3.msra.mxu1 %v1326_v34 }
 0x3aa   : > { %1828 = vmatprep.subr.mxu1 %v1325_v11 }
 0x3ab   : > { %1829 = vmatpush3.msra.mxu1 %v1325_v11 }
 0x3b0   : > { %v1788_v35 = vpop.f32.mrf.mxu1 }
 0x3b2   : > { %v1139_v36 = vpop.f32.mrf.mxu1 }
 0x3b3   : > { %1830 = vmatprep.mubr.msk.f32.mxu1 %vm618_vm0, %v1139_v36 }
 0x3b4   : > { %1831 = vmatmul.mubr.msk.f32.vlgmr.msra.gmra.mxu1 %vm618_vm0, %v1788_v35 }
 0x464   : > { %v1810_v38 = vpop.f32.mrf.mxu1 }
 0x465   : > { %v1309_v41 = vadd.f32 %v1810_v38, %v1799_v37 }
 0x466   : > { %v1303_v42 = vpop.f32.mrf.mxu1 }
 0x467   : > { %v1320_v43 = vadd.f32 %v1683_v39, %v1309_v41  ;;  %v1304_v44 = vadd.f32 %v1303_v42, %v1222_v40 }
 0x469   : > { %1324 = vst.msk [vmem:[%s600_s16 + $0x8] sm:$0x1] %vm1323_vm5, %v1320_v43  ;;  %v1319_v45 = vadd.f32 %v1683_v39, %v1304_v44 }
 0x46b   : > { %1322 = vst.msk [vmem:[%s600_s16] sm:$0xff] %vm1321_vm6, %v1319_v45 }
 0x474   : > { %v1832_v47 = vpop.f32.mrf.mxu1 }
 0x475   : > { %v1486_v49 = vadd.f32 %v1832_v47, %v1821_v46 }
 0x476   : > { %v1480_v51 = vpop.f32.mrf.mxu1 }
 0x477   : > { %v1497_v52 = vadd.f32 %v1688_v48, %v1486_v49  ;;  %v1481_v53 = vadd.f32 %v1480_v51, %v1399_v50 }
 0x479   : > { %1499 = vst.msk [vmem:[%s605_s19 + $0x8] sm:$0x1] %vm1323_vm5, %v1497_v52  ;;  %v1496_v54 = vadd.f32 %v1688_v48, %v1481_v53 }
 0x47b   : > { %1498 = vst.msk [vmem:[%s605_s19] sm:$0xff] %vm1321_vm6, %v1496_v54 }
 0x47c PF: > { %s30_s22 = sadd.s32 1, %s1865_s22  }
 0x47d   : > { %p27_p4 = scmp.ge.s32.totalorder %s30_s22, 4  }
 0x47f   :  { %29 = sbr.rel (!%p27_p4) target bundleno = 3 (0x3), region = 133 }

</bundles_post_ra>
